<compile_context>
chip_gen: v7x
topology: tpu7x:2x2x1
jax: 0.10.0
libtpu: 0.0.40
codegen_flags: <defaults>
</compile_context>

<pallas_src>
import functools

import jax
import jax.numpy as jnp
from jax.experimental import pallas as pl
from jax.experimental.pallas import tpu as pltpu

_PREC = jax.lax.Precision.HIGHEST   # per-dot (reference / wrapper weight fold only)
_F32 = jnp.float32
_BF16 = jnp.bfloat16


def _softmax_last(x):
    m = jnp.max(x, axis=-1, keepdims=True)
    e = jnp.exp(x - m)
    s = jnp.sum(e, axis=-1, keepdims=True)
    return e * pl.reciprocal(s, approx=True)   # divide -> EUP slot


def _run_orientation(row_ref, col_h, s_col, mask_src_ref, out_scratch,
                     w_row, w3e, bias, wm2, bm2, *, T, rc, scale):
    """One orientation of Zigzag_updating, tiled over the row axis.

    row_ref [bb,R,H] (f32 ref): attention batch axis, processed rc rows at a time.
    col_h   [bb,K,H] (bf16)   : axis attended over (queries and keys).
    s_col   [bb,K,Cp] (f32)   : fused column projection (bias already included for
                                the horizontal call; added via `bias` for vertical).
    Writes u_m (already contracted with w_out_m, folded into the v_scalar lane)
    into out_scratch [bb,R,K].
    """
    bb, K, H = col_h.shape
    R = row_ref.shape[1]
    Cp = w3e.shape[1]
    n = R // rc

    def body(ci):
        start = ci * rc
        if not isinstance(start, int):
            start = pl.multiple_of(start, rc)
        row = row_ref[:, pl.ds(start, rc), :].astype(_BF16)               # [bb,rc,H]
        s_row = jnp.dot(row.reshape(bb * rc, H), w_row,
                        preferred_element_type=_F32)
        if bias is not None:
            s_row = s_row + bias
        s_row = s_row.reshape(bb, rc, Cp)

        ee = row[:, :, None, :] * col_h[:, None, :, :]                    # [bb,rc,K,H] bf16
        sx = jnp.dot(ee.reshape(bb * rc * K, H), w3e,
                     preferred_element_type=_F32).reshape(bb, rc, K, Cp)
        f = sx + s_row[:, :, None, :] + s_col[:, None, :, :]              # f32

        fq = f[..., 0 * T:1 * T]
        fk = f[..., 1 * T:2 * T]
        h1 = f[..., 2 * T:3 * T]
        fvs = f[..., 3 * T]                                               # [bb,rc,K] = v.w_out_m

        # obvious_mlp gate (Dropout = identity), folded multiplicatively into K
        obv = jax.nn.sigmoid(jnp.sum(jax.nn.relu(h1) * wm2, axis=-1) + bm2)
        ks = (fk * obv[..., None]).astype(_BF16)
        qs = fq.astype(_BF16)

        m = bb * rc
        logits = jnp.einsum("mqh,mkh->mqk", qs.reshape(m, K, T), ks.reshape(m, K, T),
                            preferred_element_type=_F32) * scale
        keep = (mask_src_ref[:, pl.ds(start, rc), :] != 0).reshape(m, 1, K)
        logits = jnp.where(keep, logits, jnp.float32(-1e9))               # f32 masking
        probs = _softmax_last(logits)                                     # [m,K,K]

        u_m = jnp.sum(probs * fvs.reshape(m, 1, K), axis=-1)              # [m,K]
        out_scratch[:, pl.ds(start, rc), :] = u_m.reshape(bb, rc, K)

    if n == 1:
        body(0)
    else:
        def loop_body(ci, carry):
            body(ci)
            return carry
        jax.lax.fori_loop(0, n, loop_body, 0)


def _zigzag_kernel(
    e_q_ref, e_p_ref, mask_ref, mask_t_ref,
    w1e_ref, w2e_ref, w3e_ref, bias_ref, wm2_ref, bm2_ref,
    weq_ref, wep_ref, wex_ref,
    wl1_ref, wl2_ref, wl3_ref, bl_ref,
    wr1_ref, wr2_ref, wr3_ref, br_ref,
    out_ref,
    u_hor_ref, u_ver_ref,
    *, T, rc_p, rc_q,
):
    Eq = e_q_ref[...]            # [bb,Q,H] f32
    Ep = e_p_ref[...]            # [bb,P,H] f32
    bb, Q, H = Eq.shape
    P = Ep.shape[1]
    Eqh = Eq.astype(_BF16)
    Eph = Ep.astype(_BF16)

    w1e = w1e_ref[...]           # [H,3T+1] bf16 (Eq block of fused q|k|m1|v_scalar)
    w2e = w2e_ref[...]           # [H,3T+1] bf16 (Ep block)
    w3e = w3e_ref[...]           # [H,3T+1] bf16 (Eq*Ep block)
    bias = bias_ref[...]         # [1,3T+1] f32
    wm2 = wm2_ref[...]           # [1,T]    f32
    bm2 = bm2_ref[...]           # [1,1]    f32
    Cp = w1e.shape[1]
    scale = 1.0 / (float(T) ** 0.5)

    # shared fused per-position projections (bias carried once, on the Eq block)
    Sq = (jnp.dot(Eqh.reshape(bb * Q, H), w1e, preferred_element_type=_F32)
          + bias).reshape(bb, Q, Cp)
    Sp = jnp.dot(Eph.reshape(bb * P, H), w2e,
                 preferred_element_type=_F32).reshape(bb, P, Cp)

    # horizontal: rows = P (chunked), keys over Q
    _run_orientation(e_p_ref, Eqh, Sq, mask_ref, u_hor_ref,
                     w2e, w3e, None, wm2, bm2, T=T, rc=rc_p, scale=scale)
    # vertical: rows = Q (chunked), keys over P (bias added with the Eq-block row proj)
    _run_orientation(e_q_ref, Eph, Sp, mask_t_ref, u_ver_ref,
                     w1e, w3e, bias, wm2, bm2, T=T, rc=rc_q, scale=scale)

    # u_e = E . w_out_e from its three blocks (no extra fused-matmul lane needed)
    u_e = (jnp.sum(Ep * wep_ref[...], axis=-1)[:, :, None]
           + jnp.sum(Eq * weq_ref[...], axis=-1)[:, None, :]
           + jnp.einsum("bph,bqh->bpq", Eph * wex_ref[...].astype(_BF16), Eqh,
                        preferred_element_type=_F32))

    keep = mask_ref[...] != 0                                             # [bb,P,Q]
    U = u_e + u_hor_ref[...] + jnp.swapaxes(u_ver_ref[...], 1, 2)
    U = jnp.where(keep, U, jnp.float32(-1e9))

    A_soft = _softmax_last(U)                          # softmax over Q
    B_soft_t = _softmax_last(jnp.swapaxes(U, 1, 2))    # softmax over P, layout [bb,Q,P]

    A__p = jnp.einsum("bpq,bqh->bph", A_soft.astype(_BF16), Eqh,
                      preferred_element_type=_F32)                         # [bb,P,H]
    B__p = jnp.einsum("bqp,bph->bqh", B_soft_t.astype(_BF16), Eph,
                      preferred_element_type=_F32)                         # [bb,Q,H]

    EpA = Ep * A__p
    EqB = Eq * B__p

    def gate(x1h, x2, x3, w1, w2, w3, b, R):
        m2 = bb * R
        g = (jnp.dot(x1h.reshape(m2, H), w1, preferred_element_type=_F32)
             + jnp.dot(x2.astype(_BF16).reshape(m2, H), w2, preferred_element_type=_F32)
             + jnp.dot(x3.astype(_BF16).reshape(m2, H), w3, preferred_element_type=_F32)
             + b)
        return jax.nn.sigmoid(g).reshape(bb, R, -1)

    lg = gate(Eph, A__p, EpA, wl1_ref[...], wl2_ref[...], wl3_ref[...], bl_ref[...], P)
    rg = gate(Eqh, B__p, EqB, wr1_ref[...], wr2_ref[...], wr3_ref[...], br_ref[...], Q)

    def ein_pq(a, b):
        return jnp.einsum("bik,bjk->bij", a.astype(_BF16), b.astype(_BF16),
                          preferred_element_type=_F32)

    # sum of three block einsums == einsum over the concatenated 3H axis
    out = (ein_pq(lg[..., :H] * Ep, rg[..., :H] * Eq)
           + ein_pq(lg[..., H:2 * H] * A__p, rg[..., H:2 * H] * B__p)
           + ein_pq(lg[..., 2 * H:] * EpA, rg[..., 2 * H:] * EqB))
    # TODO(synk): when production Q < 128, present a lane-dense (>=128 last dim)
    # padded output slab instead of this sub-128 masked store.
    out_ref[...] = jnp.maximum(out, 0.0)


# ----------------------------- tiling heuristics -----------------------------

def _orientation_chunk_bytes(bb, rc, K, H, Cp, T):
    per_row = (K * H * 2            # EE (bf16)
               + K * Cp * 4         # fused F (f32)
               + K * 3 * T * 4      # fq/fk/h1 slices
               + K * 2 * T * 2      # bf16 q / gated k
               + 2 * K * K * 4)     # logits + probs
    return bb * rc * per_row


def _resident_bytes(bb, P, Q, H, Cp):
    return bb * (3 * (P + Q) * H * 4        # Eq/Ep (double-buffered) + bf16 copies
                 + 4 * P * Q                # int8 masks (both, double-buffered)
                 + (P + Q) * Cp * 4         # Sq / Sp
                 + 12 * P * Q * 4           # scratches, U, softmaxes, u_e, out dbuf
                 + 10 * (P + Q) * H * 4)    # A__p/B__p, products, gates, gated blocks


def _choose_tiling(B, P, Q, H, Cp, T, batch_block, budget=36 * 1024 * 1024):
    def chunk_opts(R):
        opts = [d for d in range(R, 0, -1) if R % d == 0 and (d % 8 == 0 or d == R)]
        return opts or [R]

    def fits(bbv, rp, rq):
        total = (_resident_bytes(bbv, P, Q, H, Cp)
                 + max(_orientation_chunk_bytes(bbv, rp, Q, H, Cp, T),
                       _orientation_chunk_bytes(bbv, rq, P, H, Cp, T))
                 + (1 << 20))
        return total <= budget

    bb_opts = ([batch_block] if batch_block is not None
               else [d for d in range(B, 0, -1) if B % d == 0])
    # prefer >=2 grid steps (keeps both v7x TensorCores busy), even step counts,
    # then the largest batch block fitting the VMEM budget.
    bb_opts = sorted(bb_opts, key=lambda bbv: ((B // bbv) < 2 and B >= 2,
                                               (B // bbv) % 2 != 0, -bbv))
    for bbv in bb_opts:
        for rp in chunk_opts(P):
            for rq in chunk_opts(Q):
                if fits(bbv, rp, rq):
                    return bbv, rp, rq
    return min(bb_opts), chunk_opts(P)[-1], chunk_opts(Q)[-1]


# --------------------------------- wrapper -----------------------------------

def zigzag_iteration_forward(e_q, e_p, mask, params, batch_block=None):
    B, Q, H = e_q.shape
    _, P, _ = e_p.shape
    T = params["wq"].shape[0]                 # tiny hidden = H // 8
    assert params["w_in"].shape[0] == 3 * H   # r_h_dim == 3 * hidden_size

    dot = functools.partial(jnp.dot, precision=_PREC, preferred_element_type=_F32)

    # ---- weight fusion (pure XLA, outside the kernel, f32 HIGHEST) ----
    # fold dual_att_linear_in through wq|wk|wm1, fold w_out_m into wv (-> 1 column),
    # split by input block of E.  Fused column layout: q(T) | k(T) | mlp1(T) | v_scalar.
    wv_col = dot(params["wv"], params["w_out_m"].T)                        # [T,1]
    bv_col = dot(params["bv"], params["w_out_m"].T)                        # [1,1]
    w_qkm = jnp.concatenate([params["wq"], params["wk"], params["wm1"], wv_col], 1)
    w_big = dot(params["w_in"], w_qkm)                                     # [3H,3T+1]
    w1e = w_big[:H].astype(_BF16)
    w2e = w_big[H:2 * H].astype(_BF16)
    w3e = w_big[2 * H:].astype(_BF16)
    b_fused = jnp.concatenate(
        [params["bq"], params["bk"], params["bm1"], bv_col], 1).astype(_F32)

    we = params["w_out_e"]                                                 # [1,3H]
    we_q, we_p, we_x = we[:, :H], we[:, H:2 * H], we[:, 2 * H:]

    wl = params["wl"].astype(_BF16)
    wr = params["wr"].astype(_BF16)
    wl1, wl2, wl3 = wl[:H], wl[H:2 * H], wl[2 * H:]
    wr1, wr2, wr3 = wr[:H], wr[H:2 * H], wr[2 * H:]

    mask_i8 = (mask >= 0.5).astype(jnp.int8)
    mask_t_i8 = jnp.swapaxes(mask_i8, 1, 2)

    Cp = 3 * T + 1
    if batch_block is not None:
        assert B % batch_block == 0
    bb, rc_p, rc_q = _choose_tiling(B, P, Q, H, Cp, T, batch_block)
    steps = B // bb

    tensor_args = [e_q, e_p, mask_i8, mask_t_i8]
    weight_args = [w1e, w2e, w3e, b_fused, params["wm2"], params["bm2"],
                   we_q, we_p, we_x,
                   wl1, wl2, wl3, params["bl"],
                   wr1, wr2, wr3, params["br"]]

    def batch_spec(r, c):
        return pl.BlockSpec((bb, r, c), lambda i: (i, 0, 0))

    in_specs = ([batch_spec(Q, H), batch_spec(P, H), batch_spec(P, Q), batch_spec(Q, P)]
                + [pl.BlockSpec(w.shape, lambda i: (0, 0)) for w in weight_args])

    kernel = functools.partial(_zigzag_kernel, T=T, rc_p=rc_p, rc_q=rc_q)

    return pl.pallas_call(
        kernel,
        out_shape=jax.ShapeDtypeStruct((B, P, Q), _F32),
        grid=(steps,),
        in_specs=in_specs,
        out_specs=pl.BlockSpec((bb, P, Q), lambda i: (i, 0, 0)),
        scratch_shapes=[pltpu.VMEM((bb, P, Q), _F32),     # u_m horizontal
                        pltpu.VMEM((bb, Q, P), _F32)],    # u_m vertical (transposed)
        compiler_params=pltpu.CompilerParams(
            dimension_semantics=("parallel",),
            vmem_limit_bytes=56 * 1024 * 1024),           # safe on v5e/v6e/v7x
    )(*tensor_args, *weight_args)


# ------------------------------ pure-JAX reference ----------------------------

def reference_forward(e_q, e_p, mask, p):
    """Pure-JAX mirror of the PyTorch module (f32, HIGHEST precision per-dot)."""
    B, Q, H = e_q.shape
    P = e_p.shape[1]
    T = p["wq"].shape[0]
    scale = 1.0 / (float(T) ** 0.5)

    def mm(a, b):
        return jnp.einsum("...k,kn->...n", a, b,
                          precision=_PREC, preferred_element_type=_F32)

    def ein(eq, *ops):
        return jnp.einsum(eq, *ops, precision=_PREC, preferred_element_type=_F32)

    Eq_t = jnp.broadcast_to(e_q[:, None, :, :], (B, P, Q, H))
    Ep_t = jnp.broadcast_to(e_p[:, :, None, :], (B, P, Q, H))
    E = jnp.concatenate([Eq_t, Ep_t, Eq_t * Ep_t], axis=-1)                 # [B,P,Q,3H]
    E1 = mm(E, p["w_in"])

    fq = mm(E1, p["wq"]) + p["bq"][0]
    fk = mm(E1, p["wk"]) + p["bk"][0]
    fv = mm(E1, p["wv"]) + p["bv"][0]
    h1 = jax.nn.relu(mm(E1, p["wm1"]) + p["bm1"][0])
    obv = jax.nn.sigmoid(jnp.sum(h1 * p["wm2"][0], -1) + p["bm2"][0, 0])     # [B,P,Q]

    lh = ein("bpqh,bpkh->bpqk", fq, fk) * scale
    lh = lh * obv[:, :, None, :]
    lh = jnp.where(mask[:, :, None, :] < 0.5, -1e9, lh)
    hor = ein("bpqk,bpkh->bpqh", jax.nn.softmax(lh, -1), fv)

    obv_t = jnp.swapaxes(obv, 1, 2)
    mask_t = jnp.swapaxes(mask, 1, 2)
    lv = ein("bpqh,bjqh->bpqj", fq, fk) * scale
    lv = lv * obv_t[:, None, :, :]
    lv = jnp.where(mask_t[:, None, :, :] < 0.5, -1e9, lv)
    ver = ein("bpqj,bjqh->bpqh", jax.nn.softmax(lv, -1), fv)

    M = hor + ver
    U = jnp.sum(E * p["w_out_e"][0], -1) + jnp.sum(M * p["w_out_m"][0], -1)
    U = jnp.where(mask < 0.5, -1e9, U)

    A_soft = jax.nn.softmax(U, axis=2)
    B_soft = jax.nn.softmax(U, axis=1)
    A__p = ein("bpq,bqh->bph", A_soft, e_q)
    B__p = ein("bpq,bph->bqh", B_soft, e_p)
    G_q_p = jnp.concatenate([e_p, A__p, e_p * A__p], -1)
    G_p_q = jnp.concatenate([e_q, B__p, e_q * B__p], -1)
    lg = jax.nn.sigmoid(mm(G_q_p, p["wl"]) + p["bl"][0])
    rg = jax.nn.sigmoid(mm(G_p_q, p["wr"]) + p["br"][0])
    out = ein("bik,bjk->bij", lg * G_q_p, rg * G_p_q)
    return jax.nn.relu(out)


def init_params(key, hidden_size):
    tiny = hidden_size // 8
    th = 3 * hidden_size          # r_h_dim must equal 3*hidden_size for forward to run
    ks = jax.random.split(key, 17)

    def w(k, shape):
        return jax.random.normal(k, shape, _F32) * 0.1

    return {
        "w_in": w(ks[0], (th, tiny)),
        "wq": w(ks[1], (tiny, tiny)), "bq": w(ks[2], (1, tiny)),
        "wk": w(ks[3], (tiny, tiny)), "bk": w(ks[4], (1, tiny)),
        "wv": w(ks[5], (tiny, tiny)), "bv": w(ks[6], (1, tiny)),
        "wm1": w(ks[7], (tiny, tiny)), "bm1": w(ks[8], (1, tiny)),
        "wm2": w(ks[9], (1, tiny)), "bm2": w(ks[10], (1, 1)),
        "w_out_e": w(ks[11], (1, th)), "w_out_m": w(ks[12], (1, tiny)),
        "wl": w(ks[13], (th, th)), "bl": w(ks[14], (1, th)),
        "wr": w(ks[15], (th, th)), "br": w(ks[16], (1, th)),
    }


if __name__ == "__main__":
    B, H, P, Q = 2, 32, 8, 8          # hidden_size=32 -> tiny=4, r_h_dim=96
    key = jax.random.PRNGKey(0)
    k1, k2, k3, kp = jax.random.split(key, 4)

    e_q = jax.random.normal(k1, (B, Q, H), _F32)     # encode_input1
    e_p = jax.random.normal(k2, (B, P, H), _F32)     # encode_input2
    mask = (jax.random.uniform(k3, (B, P, Q)) < 0.8).astype(_F32)
    params = init_params(kp, H)

    out = zigzag_iteration_forward(e_q, e_p, mask, params)
    out = jax.block_until_ready(out)
    assert out.shape == (B, P, Q)

    ref = reference_forward(e_q, e_p, mask, params)
    max_err = float(jnp.max(jnp.abs(out - ref)))
    # bf16 MXU operands vs. f32/HIGHEST reference -> slightly relaxed tolerance.
    if not jnp.allclose(out, ref, atol=5e-2, rtol=5e-2):
        raise AssertionError(f"kernel mismatch vs reference, max abs err = {max_err}")

    print("KERNEL_OK")
</pallas_src>

<mosaic_0001>
module attributes {stable_mosaic.version = 11 : i64} {
  func.func @_zigzag_kernel(%arg0: i32, %arg1: memref<1x8x32xf32, #tpu.memory_space<vmem>>, %arg2: memref<1x8x32xf32, #tpu.memory_space<vmem>>, %arg3: memref<1x8x8xi8, #tpu.memory_space<vmem>>, %arg4: memref<1x8x8xi8, #tpu.memory_space<vmem>>, %arg5: memref<32x13xbf16, #tpu.memory_space<vmem>>, %arg6: memref<32x13xbf16, #tpu.memory_space<vmem>>, %arg7: memref<32x13xbf16, #tpu.memory_space<vmem>>, %arg8: memref<1x13xf32, #tpu.memory_space<vmem>>, %arg9: memref<1x4xf32, #tpu.memory_space<vmem>>, %arg10: memref<1x1xf32, #tpu.memory_space<vmem>>, %arg11: memref<1x32xf32, #tpu.memory_space<vmem>>, %arg12: memref<1x32xf32, #tpu.memory_space<vmem>>, %arg13: memref<1x32xf32, #tpu.memory_space<vmem>>, %arg14: memref<32x96xbf16, #tpu.memory_space<vmem>>, %arg15: memref<32x96xbf16, #tpu.memory_space<vmem>>, %arg16: memref<32x96xbf16, #tpu.memory_space<vmem>>, %arg17: memref<1x96xf32, #tpu.memory_space<vmem>>, %arg18: memref<32x96xbf16, #tpu.memory_space<vmem>>, %arg19: memref<32x96xbf16, #tpu.memory_space<vmem>>, %arg20: memref<32x96xbf16, #tpu.memory_space<vmem>>, %arg21: memref<1x96xf32, #tpu.memory_space<vmem>>, %arg22: memref<1x8x8xf32, #tpu.memory_space<vmem>>, %arg23: memref<1x8x8xf32, #tpu.memory_space<vmem>>, %arg24: memref<1x8x8xf32, #tpu.memory_space<vmem>>) attributes {dimension_semantics = [#tpu.dimension_semantics<parallel>], iteration_bounds = array<i64: 2>, scalar_prefetch = 0 : i64, scratch_operands = 2 : i64, tpu.core_type = #tpu.core_type<tc>, window_params = [{transform_indices = @transform_0, window_bounds = array<i64: 1, 8, 32>}, {transform_indices = @transform_1, window_bounds = array<i64: 1, 8, 32>}, {transform_indices = @transform_2, window_bounds = array<i64: 1, 8, 8>}, {transform_indices = @transform_3, window_bounds = array<i64: 1, 8, 8>}, {pipeline_mode = #tpu.pipeline_mode<synchronous>, transform_indices = @transform_4, window_bounds = array<i64: 32, 13>}, {pipeline_mode = #tpu.pipeline_mode<synchronous>, transform_indices = @transform_5, window_bounds = array<i64: 32, 13>}, {pipeline_mode = #tpu.pipeline_mode<synchronous>, transform_indices = @transform_6, window_bounds = array<i64: 32, 13>}, {pipeline_mode = #tpu.pipeline_mode<synchronous>, transform_indices = @transform_7, window_bounds = array<i64: 1, 13>}, {pipeline_mode = #tpu.pipeline_mode<synchronous>, transform_indices = @transform_8, window_bounds = array<i64: 1, 4>}, {pipeline_mode = #tpu.pipeline_mode<synchronous>, transform_indices = @transform_9, window_bounds = array<i64: 1, 1>}, {pipeline_mode = #tpu.pipeline_mode<synchronous>, transform_indices = @transform_10, window_bounds = array<i64: 1, 32>}, {pipeline_mode = #tpu.pipeline_mode<synchronous>, transform_indices = @transform_11, window_bounds = array<i64: 1, 32>}, {pipeline_mode = #tpu.pipeline_mode<synchronous>, transform_indices = @transform_12, window_bounds = array<i64: 1, 32>}, {pipeline_mode = #tpu.pipeline_mode<synchronous>, transform_indices = @transform_13, window_bounds = array<i64: 32, 96>}, {pipeline_mode = #tpu.pipeline_mode<synchronous>, transform_indices = @transform_14, window_bounds = array<i64: 32, 96>}, {pipeline_mode = #tpu.pipeline_mode<synchronous>, transform_indices = @transform_15, window_bounds = array<i64: 32, 96>}, {pipeline_mode = #tpu.pipeline_mode<synchronous>, transform_indices = @transform_16, window_bounds = array<i64: 1, 96>}, {pipeline_mode = #tpu.pipeline_mode<synchronous>, transform_indices = @transform_17, window_bounds = array<i64: 32, 96>}, {pipeline_mode = #tpu.pipeline_mode<synchronous>, transform_indices = @transform_18, window_bounds = array<i64: 32, 96>}, {pipeline_mode = #tpu.pipeline_mode<synchronous>, transform_indices = @transform_19, window_bounds = array<i64: 32, 96>}, {pipeline_mode = #tpu.pipeline_mode<synchronous>, transform_indices = @transform_20, window_bounds = array<i64: 1, 96>}, {transform_indices = @transform_21, window_bounds = array<i64: 1, 8, 8>}]} {
    %c0 = arith.constant 0 : index
    %c0_0 = arith.constant 0 : index
    %c0_1 = arith.constant 0 : index
    %0 = vector.load %arg1[%c0, %c0_0, %c0_1] : memref<1x8x32xf32, #tpu.memory_space<vmem>>, vector<1x8x32xf32>
    %c0_2 = arith.constant 0 : index
    %c0_3 = arith.constant 0 : index
    %c0_4 = arith.constant 0 : index
    %1 = vector.load %arg2[%c0_2, %c0_3, %c0_4] : memref<1x8x32xf32, #tpu.memory_space<vmem>>, vector<1x8x32xf32>
    %2 = arith.truncf %0 : vector<1x8x32xf32> to vector<1x8x32xbf16>
    %3 = arith.truncf %1 : vector<1x8x32xf32> to vector<1x8x32xbf16>
    %c0_5 = arith.constant 0 : index
    %c0_6 = arith.constant 0 : index
    %4 = vector.load %arg5[%c0_5, %c0_6] : memref<32x13xbf16, #tpu.memory_space<vmem>>, vector<32x13xbf16>
    %c0_7 = arith.constant 0 : index
    %c0_8 = arith.constant 0 : index
    %5 = vector.load %arg6[%c0_7, %c0_8] : memref<32x13xbf16, #tpu.memory_space<vmem>>, vector<32x13xbf16>
    %c0_9 = arith.constant 0 : index
    %c0_10 = arith.constant 0 : index
    %6 = vector.load %arg7[%c0_9, %c0_10] : memref<32x13xbf16, #tpu.memory_space<vmem>>, vector<32x13xbf16>
    %c0_11 = arith.constant 0 : index
    %c0_12 = arith.constant 0 : index
    %7 = vector.load %arg8[%c0_11, %c0_12] : memref<1x13xf32, #tpu.memory_space<vmem>>, vector<1x13xf32>
    %c0_13 = arith.constant 0 : index
    %c0_14 = arith.constant 0 : index
    %8 = vector.load %arg9[%c0_13, %c0_14] : memref<1x4xf32, #tpu.memory_space<vmem>>, vector<1x4xf32>
    %c0_15 = arith.constant 0 : index
    %c0_16 = arith.constant 0 : index
    %9 = vector.load %arg10[%c0_15, %c0_16] : memref<1x1xf32, #tpu.memory_space<vmem>>, vector<1x1xf32>
    %10 = vector.shape_cast %2 : vector<1x8x32xbf16> to vector<8x32xbf16>
    %cst = arith.constant dense<0.000000e+00> : vector<8x13xf32>
    %11 = tpu.matmul %10, %4, %cst {dimension_numbers = #tpu.dot_dimension_numbers<[1], [0], [0], [1], [0, 0, 1, 1], [], []>} : vector<8x32xbf16>, vector<32x13xbf16>, vector<8x13xf32> -> vector<8x13xf32>
    %12 = vector.broadcast %7 : vector<1x13xf32> to vector<8x13xf32>
    %13 = arith.addf %11, %12 : vector<8x13xf32>
    %14 = vector.shape_cast %13 : vector<8x13xf32> to vector<1x8x13xf32>
    %15 = vector.shape_cast %3 : vector<1x8x32xbf16> to vector<8x32xbf16>
    %cst_17 = arith.constant dense<0.000000e+00> : vector<8x13xf32>
    %16 = tpu.matmul %15, %5, %cst_17 {dimension_numbers = #tpu.dot_dimension_numbers<[1], [0], [0], [1], [0, 0, 1, 1], [], []>} : vector<8x32xbf16>, vector<32x13xbf16>, vector<8x13xf32> -> vector<8x13xf32>
    %17 = vector.shape_cast %16 : vector<8x13xf32> to vector<1x8x13xf32>
    %c0_18 = arith.constant 0 : index
    %c0_19 = arith.constant 0 : index
    %c0_20 = arith.constant 0 : index
    %18 = vector.load %arg2[%c0_18, %c0_19, %c0_20] : memref<1x8x32xf32, #tpu.memory_space<vmem>>, vector<1x8x32xf32>
    %19 = arith.truncf %18 : vector<1x8x32xf32> to vector<1x8x32xbf16>
    %20 = vector.shape_cast %19 : vector<1x8x32xbf16> to vector<8x32xbf16>
    %cst_21 = arith.constant dense<0.000000e+00> : vector<8x13xf32>
    %21 = tpu.matmul %20, %5, %cst_21 {dimension_numbers = #tpu.dot_dimension_numbers<[1], [0], [0], [1], [0, 0, 1, 1], [], []>} : vector<8x32xbf16>, vector<32x13xbf16>, vector<8x13xf32> -> vector<8x13xf32>
    %22 = vector.shape_cast %21 : vector<8x13xf32> to vector<1x8x13xf32>
    %23 = vector.shape_cast %19 : vector<1x8x32xbf16> to vector<1x8x1x32xbf16>
    %24 = vector.shape_cast %2 : vector<1x8x32xbf16> to vector<1x1x8x32xbf16>
    %25 = vector.broadcast %23 : vector<1x8x1x32xbf16> to vector<1x8x8x32xbf16>
    %26 = vector.broadcast %24 : vector<1x1x8x32xbf16> to vector<1x8x8x32xbf16>
    %27 = arith.mulf %25, %26 : vector<1x8x8x32xbf16>
    %28 = vector.shape_cast %27 : vector<1x8x8x32xbf16> to vector<64x32xbf16>
    %cst_22 = arith.constant dense<0.000000e+00> : vector<64x13xf32>
    %29 = tpu.matmul %28, %6, %cst_22 {dimension_numbers = #tpu.dot_dimension_numbers<[1], [0], [0], [1], [0, 0, 1, 1], [], []>} : vector<64x32xbf16>, vector<32x13xbf16>, vector<64x13xf32> -> vector<64x13xf32>
    %30 = vector.shape_cast %29 : vector<64x13xf32> to vector<1x8x8x13xf32>
    %31 = vector.shape_cast %22 : vector<1x8x13xf32> to vector<1x8x1x13xf32>
    %32 = vector.broadcast %31 : vector<1x8x1x13xf32> to vector<1x8x8x13xf32>
    %33 = arith.addf %30, %32 : vector<1x8x8x13xf32>
    %34 = vector.shape_cast %14 : vector<1x8x13xf32> to vector<1x1x8x13xf32>
    %35 = vector.broadcast %34 : vector<1x1x8x13xf32> to vector<1x8x8x13xf32>
    %36 = arith.addf %33, %35 : vector<1x8x8x13xf32>
    %37 = vector.extract_strided_slice %36 {offsets = [0, 0, 0, 0], sizes = [1, 8, 8, 4], strides = [1, 1, 1, 1]} : vector<1x8x8x13xf32> to vector<1x8x8x4xf32>
    %38 = vector.extract_strided_slice %36 {offsets = [0, 0, 0, 4], sizes = [1, 8, 8, 4], strides = [1, 1, 1, 1]} : vector<1x8x8x13xf32> to vector<1x8x8x4xf32>
    %39 = vector.extract_strided_slice %36 {offsets = [0, 0, 0, 8], sizes = [1, 8, 8, 4], strides = [1, 1, 1, 1]} : vector<1x8x8x13xf32> to vector<1x8x8x4xf32>
    %40 = vector.extract_strided_slice %36 {offsets = [0, 0, 0, 12], sizes = [1, 8, 8, 1], strides = [1, 1, 1, 1]} : vector<1x8x8x13xf32> to vector<1x8x8x1xf32>
    %41 = vector.shape_cast %40 : vector<1x8x8x1xf32> to vector<1x8x8xf32>
    %cst_23 = arith.constant 0.000000e+00 : f32
    %42 = vector.broadcast %cst_23 : f32 to vector<1x8x8x4xf32>
    %43 = arith.maximumf %39, %42 : vector<1x8x8x4xf32>
    %44 = vector.shape_cast %8 : vector<1x4xf32> to vector<1x1x1x4xf32>
    %45 = vector.broadcast %44 : vector<1x1x1x4xf32> to vector<1x8x8x4xf32>
    %46 = arith.mulf %43, %45 : vector<1x8x8x4xf32>
    %cst_24 = arith.constant dense<0.000000e+00> : vector<1x8x8xf32>
    %47 = vector.multi_reduction <add>, %46, %cst_24 [3] : vector<1x8x8x4xf32> to vector<1x8x8xf32>
    %48 = vector.shape_cast %9 : vector<1x1xf32> to vector<1x1x1xf32>
    %49 = vector.broadcast %48 : vector<1x1x1xf32> to vector<1x8x8xf32>
    %50 = arith.addf %47, %49 : vector<1x8x8xf32>
    %51 = arith.negf %50 : vector<1x8x8xf32>
    %52 = math.exp %51 : vector<1x8x8xf32>
    %cst_25 = arith.constant 1.000000e+00 : f32
    %53 = vector.broadcast %cst_25 : f32 to vector<1x8x8xf32>
    %54 = arith.addf %53, %52 : vector<1x8x8xf32>
    %55 = arith.divf %53, %54 : vector<1x8x8xf32>
    %56 = vector.shape_cast %55 : vector<1x8x8xf32> to vector<1x8x8x1xf32>
    %57 = vector.broadcast %56 : vector<1x8x8x1xf32> to vector<1x8x8x4xf32>
    %58 = arith.mulf %38, %57 : vector<1x8x8x4xf32>
    %59 = arith.truncf %58 : vector<1x8x8x4xf32> to vector<1x8x8x4xbf16>
    %60 = arith.truncf %37 : vector<1x8x8x4xf32> to vector<1x8x8x4xbf16>
    %61 = vector.shape_cast %60 : vector<1x8x8x4xbf16> to vector<8x8x4xbf16>
    %62 = vector.shape_cast %59 : vector<1x8x8x4xbf16> to vector<8x8x4xbf16>
    "tpu.trace_start"() <{level = 10 : i32, message = "mqh,mkh->mqk"}> : () -> ()
    %cst_26 = arith.constant dense<0.000000e+00> : vector<8x8x8xf32>
    %63 = tpu.matmul %61, %62, %cst_26 {dimension_numbers = #tpu.dot_dimension_numbers<[2], [2], [1], [1], [0, 0, 0, 1, 1, 1], [0], [0]>} : vector<8x8x4xbf16>, vector<8x8x4xbf16>, vector<8x8x8xf32> -> vector<8x8x8xf32>
    "tpu.trace_stop"() : () -> ()
    %cst_27 = arith.constant 5.000000e-01 : f32
    %64 = vector.broadcast %cst_27 : f32 to vector<8x8x8xf32>
    %65 = arith.mulf %63, %64 : vector<8x8x8xf32>
    %c0_28 = arith.constant 0 : index
    %c0_29 = arith.constant 0 : index
    %c0_30 = arith.constant 0 : index
    %66 = vector.load %arg3[%c0_28, %c0_29, %c0_30] : memref<1x8x8xi8, #tpu.memory_space<vmem>>, vector<1x8x8xi8>
    %c0_i8 = arith.constant 0 : i8
    %67 = vector.broadcast %c0_i8 : i8 to vector<1x8x8xi8>
    %68 = arith.cmpi ne, %66, %67 : vector<1x8x8xi8>
    %69 = vector.shape_cast %68 : vector<1x8x8xi1> to vector<8x1x8xi1>
    %cst_31 = arith.constant -1.000000e+09 : f32
    %70 = vector.shape_cast %69 : vector<8x1x8xi1> to vector<8x1x8xi1>
    %71 = vector.broadcast %70 : vector<8x1x8xi1> to vector<8x8x8xi1>
    %72 = vector.broadcast %cst_31 : f32 to vector<8x8x8xf32>
    %73 = arith.select %71, %65, %72 : vector<8x8x8xi1>, vector<8x8x8xf32>
    %cst_32 = arith.constant dense<0xFF800000> : vector<8x8xf32>
    %74 = vector.multi_reduction <maximumf>, %73, %cst_32 [2] : vector<8x8x8xf32> to vector<8x8xf32>
    %75 = vector.shape_cast %74 : vector<8x8xf32> to vector<8x8x1xf32>
    %76 = vector.broadcast %75 : vector<8x8x1xf32> to vector<8x8x8xf32>
    %77 = arith.subf %73, %76 : vector<8x8x8xf32>
    %78 = math.exp %77 : vector<8x8x8xf32>
    %cst_33 = arith.constant dense<0.000000e+00> : vector<8x8xf32>
    %79 = vector.multi_reduction <add>, %78, %cst_33 [2] : vector<8x8x8xf32> to vector<8x8xf32>
    %80 = vector.shape_cast %79 : vector<8x8xf32> to vector<8x8x1xf32>
    %81 = tpu.reciprocal %80 {approx = true} : vector<8x8x1xf32> -> vector<8x8x1xf32>
    %82 = vector.broadcast %81 : vector<8x8x1xf32> to vector<8x8x8xf32>
    %83 = arith.mulf %78, %82 : vector<8x8x8xf32>
    %84 = vector.shape_cast %41 : vector<1x8x8xf32> to vector<8x1x8xf32>
    %85 = vector.broadcast %84 : vector<8x1x8xf32> to vector<8x8x8xf32>
    %86 = arith.mulf %83, %85 : vector<8x8x8xf32>
    %cst_34 = arith.constant dense<0.000000e+00> : vector<8x8xf32>
    %87 = vector.multi_reduction <add>, %86, %cst_34 [2] : vector<8x8x8xf32> to vector<8x8xf32>
    %88 = vector.shape_cast %87 : vector<8x8xf32> to vector<1x8x8xf32>
    %c0_35 = arith.constant 0 : index
    %c0_36 = arith.constant 0 : index
    %c0_37 = arith.constant 0 : index
    %89 = vector.load %arg23[%c0_35, %c0_36, %c0_37] : memref<1x8x8xf32, #tpu.memory_space<vmem>>, vector<1x8x8xf32>
    tpu.vector_store %arg23[%c0_35, %c0_36, %c0_37], %88 {strides = array<i32>} : memref<1x8x8xf32, #tpu.memory_space<vmem>>, vector<1x8x8xf32>,
    %c0_38 = arith.constant 0 : index
    %c0_39 = arith.constant 0 : index
    %c0_40 = arith.constant 0 : index
    %90 = vector.load %arg1[%c0_38, %c0_39, %c0_40] : memref<1x8x32xf32, #tpu.memory_space<vmem>>, vector<1x8x32xf32>
    %91 = arith.truncf %90 : vector<1x8x32xf32> to vector<1x8x32xbf16>
    %92 = vector.shape_cast %91 : vector<1x8x32xbf16> to vector<8x32xbf16>
    %cst_41 = arith.constant dense<0.000000e+00> : vector<8x13xf32>
    %93 = tpu.matmul %92, %4, %cst_41 {dimension_numbers = #tpu.dot_dimension_numbers<[1], [0], [0], [1], [0, 0, 1, 1], [], []>} : vector<8x32xbf16>, vector<32x13xbf16>, vector<8x13xf32> -> vector<8x13xf32>
    %94 = vector.broadcast %7 : vector<1x13xf32> to vector<8x13xf32>
    %95 = arith.addf %93, %94 : vector<8x13xf32>
    %96 = vector.shape_cast %95 : vector<8x13xf32> to vector<1x8x13xf32>
    %97 = vector.shape_cast %91 : vector<1x8x32xbf16> to vector<1x8x1x32xbf16>
    %98 = vector.shape_cast %3 : vector<1x8x32xbf16> to vector<1x1x8x32xbf16>
    %99 = vector.broadcast %97 : vector<1x8x1x32xbf16> to vector<1x8x8x32xbf16>
    %100 = vector.broadcast %98 : vector<1x1x8x32xbf16> to vector<1x8x8x32xbf16>
    %101 = arith.mulf %99, %100 : vector<1x8x8x32xbf16>
    %102 = vector.shape_cast %101 : vector<1x8x8x32xbf16> to vector<64x32xbf16>
    %cst_42 = arith.constant dense<0.000000e+00> : vector<64x13xf32>
    %103 = tpu.matmul %102, %6, %cst_42 {dimension_numbers = #tpu.dot_dimension_numbers<[1], [0], [0], [1], [0, 0, 1, 1], [], []>} : vector<64x32xbf16>, vector<32x13xbf16>, vector<64x13xf32> -> vector<64x13xf32>
    %104 = vector.shape_cast %103 : vector<64x13xf32> to vector<1x8x8x13xf32>
    %105 = vector.shape_cast %96 : vector<1x8x13xf32> to vector<1x8x1x13xf32>
    %106 = vector.broadcast %105 : vector<1x8x1x13xf32> to vector<1x8x8x13xf32>
    %107 = arith.addf %104, %106 : vector<1x8x8x13xf32>
    %108 = vector.shape_cast %17 : vector<1x8x13xf32> to vector<1x1x8x13xf32>
    %109 = vector.broadcast %108 : vector<1x1x8x13xf32> to vector<1x8x8x13xf32>
    %110 = arith.addf %107, %109 : vector<1x8x8x13xf32>
    %111 = vector.extract_strided_slice %110 {offsets = [0, 0, 0, 0], sizes = [1, 8, 8, 4], strides = [1, 1, 1, 1]} : vector<1x8x8x13xf32> to vector<1x8x8x4xf32>
    %112 = vector.extract_strided_slice %110 {offsets = [0, 0, 0, 4], sizes = [1, 8, 8, 4], strides = [1, 1, 1, 1]} : vector<1x8x8x13xf32> to vector<1x8x8x4xf32>
    %113 = vector.extract_strided_slice %110 {offsets = [0, 0, 0, 8], sizes = [1, 8, 8, 4], strides = [1, 1, 1, 1]} : vector<1x8x8x13xf32> to vector<1x8x8x4xf32>
    %114 = vector.extract_strided_slice %110 {offsets = [0, 0, 0, 12], sizes = [1, 8, 8, 1], strides = [1, 1, 1, 1]} : vector<1x8x8x13xf32> to vector<1x8x8x1xf32>
    %115 = vector.shape_cast %114 : vector<1x8x8x1xf32> to vector<1x8x8xf32>
    %cst_43 = arith.constant 0.000000e+00 : f32
    %116 = vector.broadcast %cst_43 : f32 to vector<1x8x8x4xf32>
    %117 = arith.maximumf %113, %116 : vector<1x8x8x4xf32>
    %118 = vector.shape_cast %8 : vector<1x4xf32> to vector<1x1x1x4xf32>
    %119 = vector.broadcast %118 : vector<1x1x1x4xf32> to vector<1x8x8x4xf32>
    %120 = arith.mulf %117, %119 : vector<1x8x8x4xf32>
    %cst_44 = arith.constant dense<0.000000e+00> : vector<1x8x8xf32>
    %121 = vector.multi_reduction <add>, %120, %cst_44 [3] : vector<1x8x8x4xf32> to vector<1x8x8xf32>
    %122 = vector.shape_cast %9 : vector<1x1xf32> to vector<1x1x1xf32>
    %123 = vector.broadcast %122 : vector<1x1x1xf32> to vector<1x8x8xf32>
    %124 = arith.addf %121, %123 : vector<1x8x8xf32>
    %125 = arith.negf %124 : vector<1x8x8xf32>
    %126 = math.exp %125 : vector<1x8x8xf32>
    %cst_45 = arith.constant 1.000000e+00 : f32
    %127 = vector.broadcast %cst_45 : f32 to vector<1x8x8xf32>
    %128 = arith.addf %127, %126 : vector<1x8x8xf32>
    %129 = arith.divf %127, %128 : vector<1x8x8xf32>
    %130 = vector.shape_cast %129 : vector<1x8x8xf32> to vector<1x8x8x1xf32>
    %131 = vector.broadcast %130 : vector<1x8x8x1xf32> to vector<1x8x8x4xf32>
    %132 = arith.mulf %112, %131 : vector<1x8x8x4xf32>
    %133 = arith.truncf %132 : vector<1x8x8x4xf32> to vector<1x8x8x4xbf16>
    %134 = arith.truncf %111 : vector<1x8x8x4xf32> to vector<1x8x8x4xbf16>
    %135 = vector.shape_cast %134 : vector<1x8x8x4xbf16> to vector<8x8x4xbf16>
    %136 = vector.shape_cast %133 : vector<1x8x8x4xbf16> to vector<8x8x4xbf16>
    "tpu.trace_start"() <{level = 10 : i32, message = "mqh,mkh->mqk"}> : () -> ()
    %cst_46 = arith.constant dense<0.000000e+00> : vector<8x8x8xf32>
    %137 = tpu.matmul %135, %136, %cst_46 {dimension_numbers = #tpu.dot_dimension_numbers<[2], [2], [1], [1], [0, 0, 0, 1, 1, 1], [0], [0]>} : vector<8x8x4xbf16>, vector<8x8x4xbf16>, vector<8x8x8xf32> -> vector<8x8x8xf32>
    "tpu.trace_stop"() : () -> ()
    %cst_47 = arith.constant 5.000000e-01 : f32
    %138 = vector.broadcast %cst_47 : f32 to vector<8x8x8xf32>
    %139 = arith.mulf %137, %138 : vector<8x8x8xf32>
    %c0_48 = arith.constant 0 : index
    %c0_49 = arith.constant 0 : index
    %c0_50 = arith.constant 0 : index
    %140 = vector.load %arg4[%c0_48, %c0_49, %c0_50] : memref<1x8x8xi8, #tpu.memory_space<vmem>>, vector<1x8x8xi8>
    %c0_i8_51 = arith.constant 0 : i8
    %141 = vector.broadcast %c0_i8_51 : i8 to vector<1x8x8xi8>
    %142 = arith.cmpi ne, %140, %141 : vector<1x8x8xi8>
    %143 = vector.shape_cast %142 : vector<1x8x8xi1> to vector<8x1x8xi1>
    %cst_52 = arith.constant -1.000000e+09 : f32
    %144 = vector.shape_cast %143 : vector<8x1x8xi1> to vector<8x1x8xi1>
    %145 = vector.broadcast %144 : vector<8x1x8xi1> to vector<8x8x8xi1>
    %146 = vector.broadcast %cst_52 : f32 to vector<8x8x8xf32>
    %147 = arith.select %145, %139, %146 : vector<8x8x8xi1>, vector<8x8x8xf32>
    %cst_53 = arith.constant dense<0xFF800000> : vector<8x8xf32>
    %148 = vector.multi_reduction <maximumf>, %147, %cst_53 [2] : vector<8x8x8xf32> to vector<8x8xf32>
    %149 = vector.shape_cast %148 : vector<8x8xf32> to vector<8x8x1xf32>
    %150 = vector.broadcast %149 : vector<8x8x1xf32> to vector<8x8x8xf32>
    %151 = arith.subf %147, %150 : vector<8x8x8xf32>
    %152 = math.exp %151 : vector<8x8x8xf32>
    %cst_54 = arith.constant dense<0.000000e+00> : vector<8x8xf32>
    %153 = vector.multi_reduction <add>, %152, %cst_54 [2] : vector<8x8x8xf32> to vector<8x8xf32>
    %154 = vector.shape_cast %153 : vector<8x8xf32> to vector<8x8x1xf32>
    %155 = tpu.reciprocal %154 {approx = true} : vector<8x8x1xf32> -> vector<8x8x1xf32>
    %156 = vector.broadcast %155 : vector<8x8x1xf32> to vector<8x8x8xf32>
    %157 = arith.mulf %152, %156 : vector<8x8x8xf32>
    %158 = vector.shape_cast %115 : vector<1x8x8xf32> to vector<8x1x8xf32>
    %159 = vector.broadcast %158 : vector<8x1x8xf32> to vector<8x8x8xf32>
    %160 = arith.mulf %157, %159 : vector<8x8x8xf32>
    %cst_55 = arith.constant dense<0.000000e+00> : vector<8x8xf32>
    %161 = vector.multi_reduction <add>, %160, %cst_55 [2] : vector<8x8x8xf32> to vector<8x8xf32>
    %162 = vector.shape_cast %161 : vector<8x8xf32> to vector<1x8x8xf32>
    %c0_56 = arith.constant 0 : index
    %c0_57 = arith.constant 0 : index
    %c0_58 = arith.constant 0 : index
    %163 = vector.load %arg24[%c0_56, %c0_57, %c0_58] : memref<1x8x8xf32, #tpu.memory_space<vmem>>, vector<1x8x8xf32>
    tpu.vector_store %arg24[%c0_56, %c0_57, %c0_58], %162 {strides = array<i32>} : memref<1x8x8xf32, #tpu.memory_space<vmem>>, vector<1x8x8xf32>,
    %c0_59 = arith.constant 0 : index
    %c0_60 = arith.constant 0 : index
    %164 = vector.load %arg12[%c0_59, %c0_60] : memref<1x32xf32, #tpu.memory_space<vmem>>, vector<1x32xf32>
    %165 = vector.shape_cast %164 : vector<1x32xf32> to vector<1x1x32xf32>
    %166 = vector.broadcast %165 : vector<1x1x32xf32> to vector<1x8x32xf32>
    %167 = arith.mulf %1, %166 : vector<1x8x32xf32>
    %cst_61 = arith.constant dense<0.000000e+00> : vector<1x8xf32>
    %168 = vector.multi_reduction <add>, %167, %cst_61 [2] : vector<1x8x32xf32> to vector<1x8xf32>
    %169 = vector.shape_cast %168 : vector<1x8xf32> to vector<1x8x1xf32>
    %c0_62 = arith.constant 0 : index
    %c0_63 = arith.constant 0 : index
    %170 = vector.load %arg11[%c0_62, %c0_63] : memref<1x32xf32, #tpu.memory_space<vmem>>, vector<1x32xf32>
    %171 = vector.shape_cast %170 : vector<1x32xf32> to vector<1x1x32xf32>
    %172 = vector.broadcast %171 : vector<1x1x32xf32> to vector<1x8x32xf32>
    %173 = arith.mulf %0, %172 : vector<1x8x32xf32>
    %cst_64 = arith.constant dense<0.000000e+00> : vector<1x8xf32>
    %174 = vector.multi_reduction <add>, %173, %cst_64 [2] : vector<1x8x32xf32> to vector<1x8xf32>
    %175 = vector.shape_cast %174 : vector<1x8xf32> to vector<1x1x8xf32>
    %176 = vector.broadcast %169 : vector<1x8x1xf32> to vector<1x8x8xf32>
    %177 = vector.broadcast %175 : vector<1x1x8xf32> to vector<1x8x8xf32>
    %178 = arith.addf %176, %177 : vector<1x8x8xf32>
    %c0_65 = arith.constant 0 : index
    %c0_66 = arith.constant 0 : index
    %179 = vector.load %arg13[%c0_65, %c0_66] : memref<1x32xf32, #tpu.memory_space<vmem>>, vector<1x32xf32>
    %180 = arith.truncf %179 : vector<1x32xf32> to vector<1x32xbf16>
    %181 = vector.shape_cast %180 : vector<1x32xbf16> to vector<1x1x32xbf16>
    %182 = vector.broadcast %181 : vector<1x1x32xbf16> to vector<1x8x32xbf16>
    %183 = arith.mulf %3, %182 : vector<1x8x32xbf16>
    "tpu.trace_start"() <{level = 10 : i32, message = "bph,bqh->bpq"}> : () -> ()
    %cst_67 = arith.constant dense<0.000000e+00> : vector<1x8x8xf32>
    %184 = tpu.matmul %183, %2, %cst_67 {dimension_numbers = #tpu.dot_dimension_numbers<[2], [2], [1], [1], [0, 0, 0, 1, 1, 1], [0], [0]>} : vector<1x8x32xbf16>, vector<1x8x32xbf16>, vector<1x8x8xf32> -> vector<1x8x8xf32>
    "tpu.trace_stop"() : () -> ()
    %185 = arith.addf %178, %184 : vector<1x8x8xf32>
    %c0_68 = arith.constant 0 : index
    %c0_69 = arith.constant 0 : index
    %c0_70 = arith.constant 0 : index
    %186 = vector.load %arg3[%c0_68, %c0_69, %c0_70] : memref<1x8x8xi8, #tpu.memory_space<vmem>>, vector<1x8x8xi8>
    %c0_i8_71 = arith.constant 0 : i8
    %187 = vector.broadcast %c0_i8_71 : i8 to vector<1x8x8xi8>
    %188 = arith.cmpi ne, %186, %187 : vector<1x8x8xi8>
    %c0_72 = arith.constant 0 : index
    %c0_73 = arith.constant 0 : index
    %c0_74 = arith.constant 0 : index
    %189 = vector.load %arg23[%c0_72, %c0_73, %c0_74] : memref<1x8x8xf32, #tpu.memory_space<vmem>>, vector<1x8x8xf32>
    %190 = arith.addf %185, %189 : vector<1x8x8xf32>
    %c0_75 = arith.constant 0 : index
    %c0_76 = arith.constant 0 : index
    %c0_77 = arith.constant 0 : index
    %191 = vector.load %arg24[%c0_75, %c0_76, %c0_77] : memref<1x8x8xf32, #tpu.memory_space<vmem>>, vector<1x8x8xf32>
    %192 = tpu.transpose %191, [0, 2, 1] : vector<1x8x8xf32> -> vector<1x8x8xf32>
    %193 = arith.addf %190, %192 : vector<1x8x8xf32>
    %cst_78 = arith.constant -1.000000e+09 : f32
    %194 = vector.broadcast %cst_78 : f32 to vector<1x8x8xf32>
    %195 = arith.select %188, %193, %194 : vector<1x8x8xi1>, vector<1x8x8xf32>
    %cst_79 = arith.constant dense<0xFF800000> : vector<1x8xf32>
    %196 = vector.multi_reduction <maximumf>, %195, %cst_79 [2] : vector<1x8x8xf32> to vector<1x8xf32>
    %197 = vector.shape_cast %196 : vector<1x8xf32> to vector<1x8x1xf32>
    %198 = vector.broadcast %197 : vector<1x8x1xf32> to vector<1x8x8xf32>
    %199 = arith.subf %195, %198 : vector<1x8x8xf32>
    %200 = math.exp %199 : vector<1x8x8xf32>
    %cst_80 = arith.constant dense<0.000000e+00> : vector<1x8xf32>
    %201 = vector.multi_reduction <add>, %200, %cst_80 [2] : vector<1x8x8xf32> to vector<1x8xf32>
    %202 = vector.shape_cast %201 : vector<1x8xf32> to vector<1x8x1xf32>
    %203 = tpu.reciprocal %202 {approx = true} : vector<1x8x1xf32> -> vector<1x8x1xf32>
    %204 = vector.broadcast %203 : vector<1x8x1xf32> to vector<1x8x8xf32>
    %205 = arith.mulf %200, %204 : vector<1x8x8xf32>
    %206 = tpu.transpose %195, [0, 2, 1] : vector<1x8x8xf32> -> vector<1x8x8xf32>
    %cst_81 = arith.constant dense<0xFF800000> : vector<1x8xf32>
    %207 = vector.multi_reduction <maximumf>, %206, %cst_81 [2] : vector<1x8x8xf32> to vector<1x8xf32>
    %208 = vector.shape_cast %207 : vector<1x8xf32> to vector<1x8x1xf32>
    %209 = vector.broadcast %208 : vector<1x8x1xf32> to vector<1x8x8xf32>
    %210 = arith.subf %206, %209 : vector<1x8x8xf32>
    %211 = math.exp %210 : vector<1x8x8xf32>
    %cst_82 = arith.constant dense<0.000000e+00> : vector<1x8xf32>
    %212 = vector.multi_reduction <add>, %211, %cst_82 [2] : vector<1x8x8xf32> to vector<1x8xf32>
    %213 = vector.shape_cast %212 : vector<1x8xf32> to vector<1x8x1xf32>
    %214 = tpu.reciprocal %213 {approx = true} : vector<1x8x1xf32> -> vector<1x8x1xf32>
    %215 = vector.broadcast %214 : vector<1x8x1xf32> to vector<1x8x8xf32>
    %216 = arith.mulf %211, %215 : vector<1x8x8xf32>
    %217 = arith.truncf %205 : vector<1x8x8xf32> to vector<1x8x8xbf16>
    "tpu.trace_start"() <{level = 10 : i32, message = "bpq,bqh->bph"}> : () -> ()
    %cst_83 = arith.constant dense<0.000000e+00> : vector<1x8x32xf32>
    %218 = tpu.matmul %217, %2, %cst_83 {dimension_numbers = #tpu.dot_dimension_numbers<[2], [1], [1], [2], [0, 0, 0, 1, 1, 2], [0], [0]>} : vector<1x8x8xbf16>, vector<1x8x32xbf16>, vector<1x8x32xf32> -> vector<1x8x32xf32>
    "tpu.trace_stop"() : () -> ()
    %219 = arith.truncf %216 : vector<1x8x8xf32> to vector<1x8x8xbf16>
    "tpu.trace_start"() <{level = 10 : i32, message = "bqp,bph->bqh"}> : () -> ()
    %cst_84 = arith.constant dense<0.000000e+00> : vector<1x8x32xf32>
    %220 = tpu.matmul %219, %3, %cst_84 {dimension_numbers = #tpu.dot_dimension_numbers<[2], [1], [1], [2], [0, 0, 0, 1, 1, 2], [0], [0]>} : vector<1x8x8xbf16>, vector<1x8x32xbf16>, vector<1x8x32xf32> -> vector<1x8x32xf32>
    "tpu.trace_stop"() : () -> ()
    %221 = arith.mulf %1, %218 : vector<1x8x32xf32>
    %222 = arith.mulf %0, %220 : vector<1x8x32xf32>
    %c0_85 = arith.constant 0 : index
    %c0_86 = arith.constant 0 : index
    %223 = vector.load %arg14[%c0_85, %c0_86] : memref<32x96xbf16, #tpu.memory_space<vmem>>, vector<32x96xbf16>
    %c0_87 = arith.constant 0 : index
    %c0_88 = arith.constant 0 : index
    %224 = vector.load %arg15[%c0_87, %c0_88] : memref<32x96xbf16, #tpu.memory_space<vmem>>, vector<32x96xbf16>
    %c0_89 = arith.constant 0 : index
    %c0_90 = arith.constant 0 : index
    %225 = vector.load %arg16[%c0_89, %c0_90] : memref<32x96xbf16, #tpu.memory_space<vmem>>, vector<32x96xbf16>
    %c0_91 = arith.constant 0 : index
    %c0_92 = arith.constant 0 : index
    %226 = vector.load %arg17[%c0_91, %c0_92] : memref<1x96xf32, #tpu.memory_space<vmem>>, vector<1x96xf32>
    %227 = vector.shape_cast %3 : vector<1x8x32xbf16> to vector<8x32xbf16>
    %cst_93 = arith.constant dense<0.000000e+00> : vector<8x96xf32>
    %228 = tpu.matmul %227, %223, %cst_93 {dimension_numbers = #tpu.dot_dimension_numbers<[1], [0], [0], [1], [0, 0, 1, 1], [], []>} : vector<8x32xbf16>, vector<32x96xbf16>, vector<8x96xf32> -> vector<8x96xf32>
    %229 = arith.truncf %218 : vector<1x8x32xf32> to vector<1x8x32xbf16>
    %230 = vector.shape_cast %229 : vector<1x8x32xbf16> to vector<8x32xbf16>
    %cst_94 = arith.constant dense<0.000000e+00> : vector<8x96xf32>
    %231 = tpu.matmul %230, %224, %cst_94 {dimension_numbers = #tpu.dot_dimension_numbers<[1], [0], [0], [1], [0, 0, 1, 1], [], []>} : vector<8x32xbf16>, vector<32x96xbf16>, vector<8x96xf32> -> vector<8x96xf32>
    %232 = arith.addf %228, %231 : vector<8x96xf32>
    %233 = arith.truncf %221 : vector<1x8x32xf32> to vector<1x8x32xbf16>
    %234 = vector.shape_cast %233 : vector<1x8x32xbf16> to vector<8x32xbf16>
    %cst_95 = arith.constant dense<0.000000e+00> : vector<8x96xf32>
    %235 = tpu.matmul %234, %225, %cst_95 {dimension_numbers = #tpu.dot_dimension_numbers<[1], [0], [0], [1], [0, 0, 1, 1], [], []>} : vector<8x32xbf16>, vector<32x96xbf16>, vector<8x96xf32> -> vector<8x96xf32>
    %236 = arith.addf %232, %235 : vector<8x96xf32>
    %237 = vector.broadcast %226 : vector<1x96xf32> to vector<8x96xf32>
    %238 = arith.addf %236, %237 : vector<8x96xf32>
    %239 = arith.negf %238 : vector<8x96xf32>
    %240 = math.exp %239 : vector<8x96xf32>
    %cst_96 = arith.constant 1.000000e+00 : f32
    %241 = vector.broadcast %cst_96 : f32 to vector<8x96xf32>
    %242 = arith.addf %241, %240 : vector<8x96xf32>
    %243 = arith.divf %241, %242 : vector<8x96xf32>
    %244 = vector.shape_cast %243 : vector<8x96xf32> to vector<1x8x96xf32>
    %c0_97 = arith.constant 0 : index
    %c0_98 = arith.constant 0 : index
    %245 = vector.load %arg18[%c0_97, %c0_98] : memref<32x96xbf16, #tpu.memory_space<vmem>>, vector<32x96xbf16>
    %c0_99 = arith.constant 0 : index
    %c0_100 = arith.constant 0 : index
    %246 = vector.load %arg19[%c0_99, %c0_100] : memref<32x96xbf16, #tpu.memory_space<vmem>>, vector<32x96xbf16>
    %c0_101 = arith.constant 0 : index
    %c0_102 = arith.constant 0 : index
    %247 = vector.load %arg20[%c0_101, %c0_102] : memref<32x96xbf16, #tpu.memory_space<vmem>>, vector<32x96xbf16>
    %c0_103 = arith.constant 0 : index
    %c0_104 = arith.constant 0 : index
    %248 = vector.load %arg21[%c0_103, %c0_104] : memref<1x96xf32, #tpu.memory_space<vmem>>, vector<1x96xf32>
    %249 = vector.shape_cast %2 : vector<1x8x32xbf16> to vector<8x32xbf16>
    %cst_105 = arith.constant dense<0.000000e+00> : vector<8x96xf32>
    %250 = tpu.matmul %249, %245, %cst_105 {dimension_numbers = #tpu.dot_dimension_numbers<[1], [0], [0], [1], [0, 0, 1, 1], [], []>} : vector<8x32xbf16>, vector<32x96xbf16>, vector<8x96xf32> -> vector<8x96xf32>
    %251 = arith.truncf %220 : vector<1x8x32xf32> to vector<1x8x32xbf16>
    %252 = vector.shape_cast %251 : vector<1x8x32xbf16> to vector<8x32xbf16>
    %cst_106 = arith.constant dense<0.000000e+00> : vector<8x96xf32>
    %253 = tpu.matmul %252, %246, %cst_106 {dimension_numbers = #tpu.dot_dimension_numbers<[1], [0], [0], [1], [0, 0, 1, 1], [], []>} : vector<8x32xbf16>, vector<32x96xbf16>, vector<8x96xf32> -> vector<8x96xf32>
    %254 = arith.addf %250, %253 : vector<8x96xf32>
    %255 = arith.truncf %222 : vector<1x8x32xf32> to vector<1x8x32xbf16>
    %256 = vector.shape_cast %255 : vector<1x8x32xbf16> to vector<8x32xbf16>
    %cst_107 = arith.constant dense<0.000000e+00> : vector<8x96xf32>
    %257 = tpu.matmul %256, %247, %cst_107 {dimension_numbers = #tpu.dot_dimension_numbers<[1], [0], [0], [1], [0, 0, 1, 1], [], []>} : vector<8x32xbf16>, vector<32x96xbf16>, vector<8x96xf32> -> vector<8x96xf32>
    %258 = arith.addf %254, %257 : vector<8x96xf32>
    %259 = vector.broadcast %248 : vector<1x96xf32> to vector<8x96xf32>
    %260 = arith.addf %258, %259 : vector<8x96xf32>
    %261 = arith.negf %260 : vector<8x96xf32>
    %262 = math.exp %261 : vector<8x96xf32>
    %cst_108 = arith.constant 1.000000e+00 : f32
    %263 = vector.broadcast %cst_108 : f32 to vector<8x96xf32>
    %264 = arith.addf %263, %262 : vector<8x96xf32>
    %265 = arith.divf %263, %264 : vector<8x96xf32>
    %266 = vector.shape_cast %265 : vector<8x96xf32> to vector<1x8x96xf32>
    %267 = vector.extract_strided_slice %244 {offsets = [0, 0, 0], sizes = [1, 8, 32], strides = [1, 1, 1]} : vector<1x8x96xf32> to vector<1x8x32xf32>
    %268 = arith.mulf %267, %1 : vector<1x8x32xf32>
    %269 = vector.extract_strided_slice %266 {offsets = [0, 0, 0], sizes = [1, 8, 32], strides = [1, 1, 1]} : vector<1x8x96xf32> to vector<1x8x32xf32>
    %270 = arith.mulf %269, %0 : vector<1x8x32xf32>
    %271 = arith.truncf %268 : vector<1x8x32xf32> to vector<1x8x32xbf16>
    %272 = arith.truncf %270 : vector<1x8x32xf32> to vector<1x8x32xbf16>
    "tpu.trace_start"() <{level = 10 : i32, message = "bik,bjk->bij"}> : () -> ()
    %cst_109 = arith.constant dense<0.000000e+00> : vector<1x8x8xf32>
    %273 = tpu.matmul %271, %272, %cst_109 {dimension_numbers = #tpu.dot_dimension_numbers<[2], [2], [1], [1], [0, 0, 0, 1, 1, 1], [0], [0]>} : vector<1x8x32xbf16>, vector<1x8x32xbf16>, vector<1x8x8xf32> -> vector<1x8x8xf32>
    "tpu.trace_stop"() : () -> ()
    %274 = vector.extract_strided_slice %244 {offsets = [0, 0, 32], sizes = [1, 8, 32], strides = [1, 1, 1]} : vector<1x8x96xf32> to vector<1x8x32xf32>
    %275 = arith.mulf %274, %218 : vector<1x8x32xf32>
    %276 = vector.extract_strided_slice %266 {offsets = [0, 0, 32], sizes = [1, 8, 32], strides = [1, 1, 1]} : vector<1x8x96xf32> to vector<1x8x32xf32>
    %277 = arith.mulf %276, %220 : vector<1x8x32xf32>
    %278 = arith.truncf %275 : vector<1x8x32xf32> to vector<1x8x32xbf16>
    %279 = arith.truncf %277 : vector<1x8x32xf32> to vector<1x8x32xbf16>
    "tpu.trace_start"() <{level = 10 : i32, message = "bik,bjk->bij"}> : () -> ()
    %cst_110 = arith.constant dense<0.000000e+00> : vector<1x8x8xf32>
    %280 = tpu.matmul %278, %279, %cst_110 {dimension_numbers = #tpu.dot_dimension_numbers<[2], [2], [1], [1], [0, 0, 0, 1, 1, 1], [0], [0]>} : vector<1x8x32xbf16>, vector<1x8x32xbf16>, vector<1x8x8xf32> -> vector<1x8x8xf32>
    "tpu.trace_stop"() : () -> ()
    %281 = arith.addf %273, %280 : vector<1x8x8xf32>
    %282 = vector.extract_strided_slice %244 {offsets = [0, 0, 64], sizes = [1, 8, 32], strides = [1, 1, 1]} : vector<1x8x96xf32> to vector<1x8x32xf32>
    %283 = arith.mulf %282, %221 : vector<1x8x32xf32>
    %284 = vector.extract_strided_slice %266 {offsets = [0, 0, 64], sizes = [1, 8, 32], strides = [1, 1, 1]} : vector<1x8x96xf32> to vector<1x8x32xf32>
    %285 = arith.mulf %284, %222 : vector<1x8x32xf32>
    %286 = arith.truncf %283 : vector<1x8x32xf32> to vector<1x8x32xbf16>
    %287 = arith.truncf %285 : vector<1x8x32xf32> to vector<1x8x32xbf16>
    "tpu.trace_start"() <{level = 10 : i32, message = "bik,bjk->bij"}> : () -> ()
    %cst_111 = arith.constant dense<0.000000e+00> : vector<1x8x8xf32>
    %288 = tpu.matmul %286, %287, %cst_111 {dimension_numbers = #tpu.dot_dimension_numbers<[2], [2], [1], [1], [0, 0, 0, 1, 1, 1], [0], [0]>} : vector<1x8x32xbf16>, vector<1x8x32xbf16>, vector<1x8x8xf32> -> vector<1x8x8xf32>
    "tpu.trace_stop"() : () -> ()
    %289 = arith.addf %281, %288 : vector<1x8x8xf32>
    %cst_112 = arith.constant 0.000000e+00 : f32
    %290 = vector.broadcast %cst_112 : f32 to vector<1x8x8xf32>
    %291 = arith.maximumf %289, %290 : vector<1x8x8xf32>
    %c0_113 = arith.constant 0 : index
    %c0_114 = arith.constant 0 : index
    %c0_115 = arith.constant 0 : index
    %292 = vector.load %arg22[%c0_113, %c0_114, %c0_115] : memref<1x8x8xf32, #tpu.memory_space<vmem>>, vector<1x8x8xf32>
    tpu.vector_store %arg22[%c0_113, %c0_114, %c0_115], %291 {strides = array<i32>} : memref<1x8x8xf32, #tpu.memory_space<vmem>>, vector<1x8x8xf32>,
    return
  }
  func.func @transform_0(%arg0: i32) -> (i32, i32, i32) {
    %c0_i32 = arith.constant 0 : i32
    %c0_i32_0 = arith.constant 0 : i32
    %c0_i32_1 = arith.constant 0 : i32
    return %arg0, %c0_i32, %c0_i32_0 : i32, i32, i32
  }
  func.func @transform_1(%arg0: i32) -> (i32, i32, i32) {
    %c0_i32 = arith.constant 0 : i32
    %c0_i32_0 = arith.constant 0 : i32
    %c0_i32_1 = arith.constant 0 : i32
    return %arg0, %c0_i32, %c0_i32_0 : i32, i32, i32
  }
  func.func @transform_2(%arg0: i32) -> (i32, i32, i32) {
    %c0_i32 = arith.constant 0 : i32
    %c0_i32_0 = arith.constant 0 : i32
    %c0_i32_1 = arith.constant 0 : i32
    return %arg0, %c0_i32, %c0_i32_0 : i32, i32, i32
  }
  func.func @transform_3(%arg0: i32) -> (i32, i32, i32) {
    %c0_i32 = arith.constant 0 : i32
    %c0_i32_0 = arith.constant 0 : i32
    %c0_i32_1 = arith.constant 0 : i32
    return %arg0, %c0_i32, %c0_i32_0 : i32, i32, i32
  }
  func.func @transform_4(%arg0: i32) -> (i32, i32) {
    %c0_i32 = arith.constant 0 : i32
    %c0_i32_0 = arith.constant 0 : i32
    %c0_i32_1 = arith.constant 0 : i32
    return %c0_i32, %c0_i32_0 : i32, i32
  }
  func.func @transform_5(%arg0: i32) -> (i32, i32) {
    %c0_i32 = arith.constant 0 : i32
    %c0_i32_0 = arith.constant 0 : i32
    %c0_i32_1 = arith.constant 0 : i32
    return %c0_i32, %c0_i32_0 : i32, i32
  }
  func.func @transform_6(%arg0: i32) -> (i32, i32) {
    %c0_i32 = arith.constant 0 : i32
    %c0_i32_0 = arith.constant 0 : i32
    %c0_i32_1 = arith.constant 0 : i32
    return %c0_i32, %c0_i32_0 : i32, i32
  }
  func.func @transform_7(%arg0: i32) -> (i32, i32) {
    %c0_i32 = arith.constant 0 : i32
    %c0_i32_0 = arith.constant 0 : i32
    %c0_i32_1 = arith.constant 0 : i32
    return %c0_i32, %c0_i32_0 : i32, i32
  }
  func.func @transform_8(%arg0: i32) -> (i32, i32) {
    %c0_i32 = arith.constant 0 : i32
    %c0_i32_0 = arith.constant 0 : i32
    %c0_i32_1 = arith.constant 0 : i32
    return %c0_i32, %c0_i32_0 : i32, i32
  }
  func.func @transform_9(%arg0: i32) -> (i32, i32) {
    %c0_i32 = arith.constant 0 : i32
    %c0_i32_0 = arith.constant 0 : i32
    %c0_i32_1 = arith.constant 0 : i32
    return %c0_i32, %c0_i32_0 : i32, i32
  }
  func.func @transform_10(%arg0: i32) -> (i32, i32) {
    %c0_i32 = arith.constant 0 : i32
    %c0_i32_0 = arith.constant 0 : i32
    %c0_i32_1 = arith.constant 0 : i32
    return %c0_i32, %c0_i32_0 : i32, i32
  }
  func.func @transform_11(%arg0: i32) -> (i32, i32) {
    %c0_i32 = arith.constant 0 : i32
    %c0_i32_0 = arith.constant 0 : i32
    %c0_i32_1 = arith.constant 0 : i32
    return %c0_i32, %c0_i32_0 : i32, i32
  }
  func.func @transform_12(%arg0: i32) -> (i32, i32) {
    %c0_i32 = arith.constant 0 : i32
    %c0_i32_0 = arith.constant 0 : i32
    %c0_i32_1 = arith.constant 0 : i32
    return %c0_i32, %c0_i32_0 : i32, i32
  }
  func.func @transform_13(%arg0: i32) -> (i32, i32) {
    %c0_i32 = arith.constant 0 : i32
    %c0_i32_0 = arith.constant 0 : i32
    %c0_i32_1 = arith.constant 0 : i32
    return %c0_i32, %c0_i32_0 : i32, i32
  }
  func.func @transform_14(%arg0: i32) -> (i32, i32) {
    %c0_i32 = arith.constant 0 : i32
    %c0_i32_0 = arith.constant 0 : i32
    %c0_i32_1 = arith.constant 0 : i32
    return %c0_i32, %c0_i32_0 : i32, i32
  }
  func.func @transform_15(%arg0: i32) -> (i32, i32) {
    %c0_i32 = arith.constant 0 : i32
    %c0_i32_0 = arith.constant 0 : i32
    %c0_i32_1 = arith.constant 0 : i32
    return %c0_i32, %c0_i32_0 : i32, i32
  }
  func.func @transform_16(%arg0: i32) -> (i32, i32) {
    %c0_i32 = arith.constant 0 : i32
    %c0_i32_0 = arith.constant 0 : i32
    %c0_i32_1 = arith.constant 0 : i32
    return %c0_i32, %c0_i32_0 : i32, i32
  }
  func.func @transform_17(%arg0: i32) -> (i32, i32) {
    %c0_i32 = arith.constant 0 : i32
    %c0_i32_0 = arith.constant 0 : i32
    %c0_i32_1 = arith.constant 0 : i32
    return %c0_i32, %c0_i32_0 : i32, i32
  }
  func.func @transform_18(%arg0: i32) -> (i32, i32) {
    %c0_i32 = arith.constant 0 : i32
    %c0_i32_0 = arith.constant 0 : i32
    %c0_i32_1 = arith.constant 0 : i32
    return %c0_i32, %c0_i32_0 : i32, i32
  }
  func.func @transform_19(%arg0: i32) -> (i32, i32) {
    %c0_i32 = arith.constant 0 : i32
    %c0_i32_0 = arith.constant 0 : i32
    %c0_i32_1 = arith.constant 0 : i32
    return %c0_i32, %c0_i32_0 : i32, i32
  }
  func.func @transform_20(%arg0: i32) -> (i32, i32) {
    %c0_i32 = arith.constant 0 : i32
    %c0_i32_0 = arith.constant 0 : i32
    %c0_i32_1 = arith.constant 0 : i32
    return %c0_i32, %c0_i32_0 : i32, i32
  }
  func.func @transform_21(%arg0: i32) -> (i32, i32, i32) {
    %c0_i32 = arith.constant 0 : i32
    %c0_i32_0 = arith.constant 0 : i32
    %c0_i32_1 = arith.constant 0 : i32
    return %arg0, %c0_i32, %c0_i32_0 : i32, i32, i32
  }
}

</mosaic_0001>

<bundles_post_ra>
// kernel: tpu_custom_call.1
= control target key start
LH: loop header
LB: loop body
LE: loop exit
PB: predicated region body
PF: predicated region fallthrough
CT: control target
= control target key end

     0   :  { %s7206_s0 = inlined_call_operand.vmem [shape: f32[2,8,32], index: 0, kind: input, shape index: {}]   ;;  %s7207_s1 = inlined_call_operand.vmem [shape: f32[2,8,32], index: 1, kind: input, shape index: {}]   ;;  %s7208_s2 = inlined_call_operand.hbm [shape: s8[2,8,8], index: 2, kind: input, shape index: {}]   ;;  %s7209_s3 = inlined_call_operand.hbm [shape: s8[2,8,8], index: 3, kind: input, shape index: {}]   ;;  %s7210_s4 = inlined_call_operand.vmem [shape: bf16[32,13], index: 4, kind: input, shape index: {}]   ;;  %s7211_s5 = inlined_call_operand.vmem [shape: bf16[32,13], index: 5, kind: input, shape index: {}]   ;;  %s7212_s6 = inlined_call_operand.vmem [shape: bf16[32,13], index: 6, kind: input, shape index: {}]   ;;  %s7213_s7 = inlined_call_operand.hbm [shape: f32[1,13], index: 7, kind: input, shape index: {}]   ;;  %s7214_s8 = inlined_call_operand.hbm [shape: f32[1,4], index: 8, kind: input, shape index: {}]   ;;  %s7215_s9 = inlined_call_operand.<no memory space> [shape: f32[1,1], index: 9, kind: input, shape index: {}]   ;;  %s7216_s10 = inlined_call_operand.hbm [shape: f32[1,32], index: 10, kind: input, shape index: {}]   ;;  %s7217_s11 = inlined_call_operand.hbm [shape: f32[1,32], index: 11, kind: input, shape index: {}]   ;;  %s7218_s12 = inlined_call_operand.hbm [shape: f32[1,32], index: 12, kind: input, shape index: {}]   ;;  %s7219_s13 = inlined_call_operand.vmem [shape: bf16[32,96], index: 13, kind: input, shape index: {}]   ;;  %s7220_s14 = inlined_call_operand.vmem [shape: bf16[32,96], index: 14, kind: input, shape index: {}]   ;;  %s7221_s15 = inlined_call_operand.vmem [shape: bf16[32,96], index: 15, kind: input, shape index: {}]   ;;  %s7222_s16 = inlined_call_operand.vmem [shape: f32[1,96], index: 16, kind: input, shape index: {}]   ;;  %s7223_s17 = inlined_call_operand.vmem [shape: bf16[32,96], index: 17, kind: input, shape index: {}]   ;;  %s7224_s18 = inlined_call_operand.vmem [shape: bf16[32,96], index: 18, kind: input, shape index: {}]   ;;  %s7225_s19 = inlined_call_operand.vmem [shape: bf16[32,96], index: 19, kind: input, shape index: {}]   ;;  %s7226_s20 = inlined_call_operand.vmem [shape: f32[1,96], index: 20, kind: input, shape index: {}]   ;;  %s7227_s21 = inlined_call_operand.hbm [shape: f32[2,8,8], index: 21, kind: output, shape index: {}]  }
   0x1   :  { %7242 = sst [smem:[#allocation27_spill]] %s7206_s0  ;;  %v26_v0 = vstv %s7215_s9 }
   0x2   :  { %7243 = sst [smem:[#allocation28_spill]] %s7207_s1  ;;  %27 = vst [vmem:[#allocation4] sm:$0x1] %v26_v0 }
   0x3   :  { %7244 = sst [smem:[#allocation29_spill]] %s7208_s2 }
   0x4   :  { %7245 = sst [smem:[#allocation30_spill]] %s7209_s3 }
   0x5   :  { %7246 = sst [smem:[#allocation31_spill]] %s7210_s4 }
   0x6   :  { %7247 = sst [smem:[#allocation32_spill]] %s7211_s5 }
   0x7   :  { %7248 = sst [smem:[#allocation33_spill]] %s7213_s7 }
   0x8   :  { %7249 = sst [smem:[#allocation34_spill]] %s7214_s8 }
   0x9   :  { %7250 = sst [smem:[#allocation35_spill]] %s7216_s10 }
   0xa   :  { %7251 = sst [smem:[#allocation36_spill]] %s7217_s11 }
   0xb   :  { %7252 = sst [smem:[#allocation37_spill]] %s7218_s12 }
   0xc   :  { %7253 = sst [smem:[#allocation38_spill]] %s7222_s16 }
   0xd   :  { %7254 = sst [smem:[#allocation39_spill]] %s7223_s17 }
   0xe   :  { %7255 = sst [smem:[#allocation40_spill]] %s7225_s19 }
   0xf   :  { %7256 = sst [smem:[#allocation41_spill]] %s7226_s20 }
  0x10   :  { %7257 = sst [smem:[#allocation42_spill]] %s7227_s21 }
  0x11   :  { %28 = vsyncpa [#allocation6], 0 }
  0x12   :  { %30 = vsyncpa [#allocation6 + $0x1], 0 }
  0x13   :  { %31 = vsyncpa [#allocation9], 0 }
  0x14   :  { %33 = vsyncpa [#allocation9 + $0x1], 0 }
  0x15   :  { %34 = vsyncpa [#allocation12], 0 }
  0x16   :  { %35 = vsyncpa [#allocation15], 0 }
  0x17   :  { %36 = vsyncpa [#allocation7], 0 }
  0x18   :  { %38 = vsyncpa [#allocation7 + $0x1], 0  ;;  %s5900_s26 = smov 0   ;;  %s5902_s27 = smov 0  }
  0x19   :  { %s5904_s3 = smov 0   ;;  %s5906_s28 = smov 0  }
  0x1a LB: > { %7258 = sst [smem:[#allocation24_spill]] %s5762_s3  ;;  %s5768_s9 = smov [#allocation10]   ;;  %s5766_s28 = sphi %s5906_s28, %s7296_s28   ;;  %s5762_s3 = sphi %s5904_s3, %s7298_s3   ;;  %s5758_s27 = sphi %s5902_s27, %s7300_s27   ;;  %s5754_s26 = sphi %s5900_s26, %s7299_s26  }
  0x1b   : > { %s558_s29 = sshll.u32 %s5768_s9, 4  ;;  %s5921_s0 = sadd.s32 4294967295, %s5766_s28   ;;  %s5926_s29 = int_to_ptr.vmem [resolvable:$true] %s558_s29 }
  0x1c   : > { %p4761_p0 = scmp.ge.s32.totalorder %s5766_s28, 1  ;;  %p7235_p1 = scmp.eq.s32.totalorder %s5921_s0, 0 }
  0x1d   : > { %p536_p2 = scmp.lt.s32.totalorder %s5766_s28, 3  ;;  %s5769_s30 = smov [#allocation11]  }
  0x1e   : > { %s569_s5 = sshll.u32 %s5769_s30, 4  ;;  %s5770_s22 = smov [#allocation14]   ;;  %s5935_s5 = int_to_ptr.vmem [resolvable:$true] %s569_s5 }
  0x1f   : > { %p5928_p3 = pnand %p4761_p0, %p536_p2  ;;  %s594_s23 = sshll.u32 %s5770_s22, 4  ;;  %s5943_s23 = int_to_ptr.vmem [resolvable:$true] %s594_s23 }
  0x20   : > { %s5771_s24 = smov [#allocation13]   ;;  %s7261_s7 = sld [smem:[#allocation33_spill]] }
  0x21   : > { %s7259_s4 = scalar_select %p5928_p3, 1, 0 }
  0x22   : > { %p5230_p5 = pneg %p5928_p3  ;;  %s5945_s2 = sshll.u32 %s5771_s24, 4  ;;  %s584_s2 = int_to_ptr.vmem [resolvable:$true] %s5945_s2 }
  0x24   : > { %p5939_p6 = pnand %p5230_p5, %p7235_p1 }
  0x26   : > { %s5484_s21 = scalar_lea.hbm %s7261_s7, 16  ;;  %p5955_p8 = pneg %p5939_p6 }
  0x27   : > { %p5485_p7 = scmp.ne.s32.totalorder %s7261_s7, %s5484_s21  ;;  %p5491_p11 = scmp.lt.u32.totalorder %s5484_s21, %s7261_s7 }
  0x29   : > { %p5487_p9 = pnand %p5955_p8, %p5485_p7 }
  0x2b   : > { %p5488_p10 = pneg %p5487_p9 }
  0x2d   : > { %p5493_p12 = pnand %p5491_p11, %p5488_p10 }
  0x2f   : > { %5496 = shalt.err (!%p5493_p12)
}
  0x30   : > { %s5497_s20 = scalar_lea.vmem %s5926_s29, 16  ;;  %s5504_s25 = scalar_lea.vmem %s5926_s29, 32 }
  0x31   : > { %p5498_p13 = scmp.ne.s32.totalorder %s5926_s29, %s5497_s20  ;;  %p5505_p5 = scmp.lt.s32.totalorder %s5926_s29, %s5926_s29 }
  0x32   : > { %p5506_p7 = scmp.lt.s32.totalorder %s5504_s25, %s5497_s20 }
  0x33   : > { %p5500_p0 = pnand %p5498_p13, %p5955_p8 }
  0x34   : > { %p5507_p9 = por %p5506_p7, %p5505_p5 }
  0x35   : > { %p5501_p2 = pneg %p5500_p0 }
  0x37   : > { %p5508_p4 = pnand %p5507_p9, %p5501_p2 }
  0x39   : > { %5511 = shalt.err (!%p5508_p4)
}
  0x3a   : > { %5233 = dma.hbm_to_vmem [thread:$0]  (!%p5939_p6), %s7261_s7, 16, %s5926_s29, [#allocation9]  }
  0x3b   : > { %s7263_s8 = sld [smem:[#allocation34_spill]] }
  0x41   : > { %s5512_s24 = scalar_lea.hbm %s7263_s8, 16 }
  0x42   : > { %p5513_p10 = scmp.ne.s32.totalorder %s7263_s8, %s5512_s24  ;;  %p5519_p4 = scmp.lt.u32.totalorder %s5512_s24, %s7263_s8 }
  0x44   : > { %p5515_p11 = pnand %p5513_p10, %p5955_p8 }
  0x46   : > { %p5516_p12 = pneg %p5515_p11 }
  0x48   : > { %p5521_p13 = pnand %p5519_p4, %p5516_p12 }
  0x4a   : > { %5524 = shalt.err (!%p5521_p13)
}
  0x4b   : > { %s5525_s29 = scalar_lea.vmem %s5935_s5, 16  ;;  %s5532_s17 = scalar_lea.vmem %s5935_s5, 32 }
  0x4c   : > { %p5526_p0 = scmp.ne.s32.totalorder %s5935_s5, %s5525_s29  ;;  %p5533_p7 = scmp.lt.s32.totalorder %s5935_s5, %s5935_s5 }
  0x4d   : > { %p5534_p9 = scmp.lt.s32.totalorder %s5532_s17, %s5525_s29 }
  0x4e   : > { %p5528_p2 = pnand %p5526_p0, %p5955_p8 }
  0x4f   : > { %p5535_p10 = por %p5534_p9, %p5533_p7 }
  0x50   : > { %p5529_p5 = pneg %p5528_p2 }
  0x52   : > { %p5536_p11 = pnand %p5535_p10, %p5529_p5 }
  0x54   : > { %5539 = shalt.err (!%p5536_p11)
}
  0x55   : > { %5236 = dma.hbm_to_vmem [thread:$0]  (!%p5939_p6), %s7263_s8, 16, %s5935_s5, [#allocation12]  }
  0x56   : > { %s7264_s11 = sld [smem:[#allocation36_spill]] }
  0x5c   : > { %s5540_s30 = scalar_lea.hbm %s7264_s11, 16 }
  0x5d   : > { %p5541_p12 = scmp.ne.s32.totalorder %s7264_s11, %s5540_s30  ;;  %p5547_p0 = scmp.lt.u32.totalorder %s5540_s30, %s7264_s11 }
  0x5f   : > { %p5543_p4 = pnand %p5541_p12, %p5955_p8 }
  0x61   : > { %p5544_p13 = pneg %p5543_p4 }
  0x63   : > { %p5549_p2 = pnand %p5547_p0, %p5544_p13 }
  0x65   : > { %5552 = shalt.err (!%p5549_p2)
}
  0x66   : > { %s5553_s5 = scalar_lea.vmem %s5943_s23, 16  ;;  %s5560_s17 = scalar_lea.vmem %s5943_s23, 32 }
  0x67   : > { %p5554_p5 = scmp.ne.s32.totalorder %s5943_s23, %s5553_s5  ;;  %p5561_p10 = scmp.lt.s32.totalorder %s5943_s23, %s5943_s23 }
  0x68   : > { %p5562_p11 = scmp.lt.s32.totalorder %s5560_s17, %s5553_s5 }
  0x69   : > { %p5556_p7 = pnand %p5554_p5, %p5955_p8 }
  0x6a   : > { %p5563_p12 = por %p5562_p11, %p5561_p10 }
  0x6b   : > { %p5557_p9 = pneg %p5556_p7 }
  0x6d   : > { %p5564_p4 = pnand %p5563_p12, %p5557_p9 }
  0x6f   : > { %5567 = shalt.err (!%p5564_p4)
}
  0x70   : > { %5242 = dma.hbm_to_vmem [thread:$0]  (!%p5939_p6), %s7264_s11, 16, %s5943_s23, [#allocation15]  }
  0x71   : > { %s5772_s21 = smov [#allocation16]   ;;  %s7265_s10 = sld [smem:[#allocation35_spill]] }
  0x72   : > { %s605_s9 = sshll.u32 %s5772_s21, 4  ;;  %s606_s9 = int_to_ptr.vmem [resolvable:$true] %s605_s9 }
  0x77   : > { %s5568_s20 = scalar_lea.hbm %s7265_s10, 16 }
  0x78   : > { %p5569_p13 = scmp.ne.s32.totalorder %s7265_s10, %s5568_s20  ;;  %p5575_p5 = scmp.lt.u32.totalorder %s5568_s20, %s7265_s10 }
  0x7a   : > { %p5571_p0 = pnand %p5569_p13, %p5955_p8 }
  0x7c   : > { %p5572_p2 = pneg %p5571_p0 }
  0x7e   : > { %p5577_p7 = pnand %p5575_p5, %p5572_p2 }
  0x80   : > { %5580 = shalt.err (!%p5577_p7)
}
  0x81   : > { %s5581_s23 = scalar_lea.vmem %s584_s2, 16  ;;  %s5588_s19 = scalar_lea.vmem %s584_s2, 32 }
  0x82   : > { %p5582_p9 = scmp.ne.s32.totalorder %s584_s2, %s5581_s23  ;;  %p5589_p12 = scmp.lt.s32.totalorder %s584_s2, %s584_s2 }
  0x83   : > { %p5590_p4 = scmp.lt.s32.totalorder %s5588_s19, %s5581_s23 }
  0x84   : > { %p5584_p10 = pnand %p5582_p9, %p5955_p8 }
  0x85   : > { %p5591_p1 = por %p5590_p4, %p5589_p12 }
  0x86   : > { %p5585_p11 = pneg %p5584_p10 }
  0x88   : > { %p5592_p3 = pnand %p5591_p1, %p5585_p11 }
  0x8a   : > { %5595 = shalt.err (!%p5592_p3)
}
  0x8b   : > { %5239 = dma.hbm_to_vmem [thread:$0]  (!%p5939_p6), %s7265_s10, 16, %s584_s2, [#allocation12]  }
  0x8c   : > { %s7266_s12 = sld [smem:[#allocation37_spill]] }
  0x92   : > { %s5596_s20 = scalar_lea.hbm %s7266_s12, 16 }
  0x93   : > { %p5597_p13 = scmp.ne.s32.totalorder %s7266_s12, %s5596_s20  ;;  %p5603_p3 = scmp.lt.u32.totalorder %s5596_s20, %s7266_s12 }
  0x95   : > { %p5599_p0 = pnand %p5597_p13, %p5955_p8 }
  0x97   : > { %p5600_p1 = pneg %p5599_p0 }
  0x99   : > { %p5605_p2 = pnand %p5603_p3, %p5600_p1 }
  0x9b   : > { %5608 = shalt.err (!%p5605_p2)
}
  0x9c   : > { %s5609_s23 = scalar_lea.vmem %s606_s9, 16  ;;  %s5616_s2 = scalar_lea.vmem %s606_s9, 32 }
  0x9d   : > { %p5610_p5 = scmp.ne.s32.totalorder %s606_s9, %s5609_s23  ;;  %p5617_p10 = scmp.lt.s32.totalorder %s606_s9, %s606_s9 }
  0x9e   : > { %p5618_p11 = scmp.lt.s32.totalorder %s5616_s2, %s5609_s23 }
  0x9f   : > { %p5612_p7 = pnand %p5610_p5, %p5955_p8 }
  0xa0   : > { %p5619_p12 = por %p5618_p11, %p5617_p10 }
  0xa1   : > { %p5613_p9 = pneg %p5612_p7 }
  0xa3   : > { %p5620_p4 = pnand %p5619_p12, %p5613_p9 }
  0xa5   : > { %5623 = shalt.err (!%p5620_p4)
}
  0xa6   : > { %5245 = dma.hbm_to_vmem [thread:$0]  (!%p5939_p6), %s7266_s12, 16, %s606_s9, [#allocation15]  }
  0xa7   : > { %s4760_s22 = sadd.s32 4294967294, %s5766_s28   ;;  %s6064_s1 = sadd.s32 1, %s5766_s28  }
  0xa8   : > { %7267 = sst [smem:[#allocation25_spill]] %s6064_s1  ;;  %s103_s21 = sadd.s32 1, %s5762_s3 }
  0xa9   : > { %s100_s30 = ssub.s32 %s5766_s28, %s6064_s1  ;;  %p110_p8 = scmp.ne.s32.totalorder %s5762_s3, %s5758_s27 }
  0xaa   : > { %p101_p13 = scmp.eq.s32.totalorder %s100_s30, 0  ;;  %p111_p0 = scmp.eq.s32.totalorder %s5766_s28, 0 }
  0xab   : > { %p116_p1 = scmp.ne.s32.totalorder %s5758_s27, %s5754_s26  ;;  %p523_p3 = scmp.eq.s32.totalorder %s5921_s0, 1 }
  0xac   : > { %s6076_s24 = scalar_select %p101_p13, %s5762_s3, %s103_s21  }
  0xad   : > { %p112_p2 = por %p111_p0, %p110_p8  ;;  %p7269_p5 = scmp.eq.s32.totalorder %s5921_s0, 0 }
  0xae   : > { %7268 = sst [smem:[#allocation26_spill]] %s6076_s24  ;;  %p6084_p6 = por %p523_p3, %p110_p8 }
  0xaf   : > { %p6080_p7 = por %p7269_p5, %p116_p1  ;;  %p529_p9 = scmp.eq.s32.totalorder %s4760_s22, 1 }
  0xb0   : > { %s7271_s9 = scalar_select %p6084_p6, 1, 0 }
  0xb1   : > { %s7270_s20 = scalar_select %p6080_p7, 1, 0 }
  0xb2   : > { %p5262_p10 = scmp.lt.s32.totalorder %s5766_s28, 2  ;;  %s654_s25 = sand.u32 1, %s5762_s3  }
  0xb3   : > { %p6090_p11 = por %p529_p9, %p116_p1  ;;  %s6094_s5 = sshll.u32 %s654_s25, 1 }
  0xb4   : > { %s4769_s17 = sshll.u32 %s5766_s28, 5  ;;  %s7273_s19 = sld [smem:[#allocation29_spill]] }
  0xb5   : > { %s7272_s29 = scalar_select %p6090_p11, 1, 0 }
  0xb6   : > { %s658_s22 = scalar_lea.vmem [#allocation5], %s6094_s5  ;;  %p6103_p12 = pnand %p5262_p10, %p112_p2 }
  0xb7   : > { %s665_s21 = sshll.u32 %s658_s22, 4  ;;  %s7275_s10 = sld [smem:[#allocation30_spill]]  ;;  %s6107_s21 = int_to_ptr.vmem [resolvable:$true] %s665_s21 }
  0xb8   : > { %s655_s2 = scalar_lea.sflag [#allocation6], %s654_s25  ;;  %p5626_p8 = pneg %p6103_p12 }
  0xba   : > { %s6100_s16 = scalar_lea.hbm %s7273_s19, %s4769_s17  ;;  %s5629_s24 = scalar_lea.hbm %s7273_s19, 64 }
  0xbb   : > { %s5624_s11 = scalar_lea.hbm %s6100_s16, 32  ;;  %p5630_p1 = scmp.lt.u32.totalorder %s6100_s16, %s7273_s19 }
  0xbc   : > { %p5625_p4 = scmp.ne.s32.totalorder %s6100_s16, %s5624_s11  ;;  %p5631_p3 = scmp.lt.u32.totalorder %s5629_s24, %s5624_s11 }
  0xbd   : > { %s6112_s23 = scalar_lea.hbm %s7275_s10, %s4769_s17  ;;  %p5633_p5 = scmp.lt.u32.totalorder %s5624_s11, %s6100_s16 }
  0xbe   : > { %p5627_p13 = pnand %p5626_p8, %p5625_p4  ;;  %p5632_p2 = por %p5631_p3, %p5630_p1 }
  0xc0   : > { %p5628_p0 = pneg %p5627_p13  ;;  %p5634_p9 = por %p5633_p5, %p5632_p2 }
  0xc2   : > { %p5635_p10 = pnand %p5634_p9, %p5628_p0 }
  0xc4   : > { %5638 = shalt.err (!%p5635_p10)
}
  0xc5   : > { %s5639_s7 = scalar_lea.vmem %s6107_s21, 32  ;;  %s5773_s8 = smov [#allocation5]  }
  0xc6   : > { %p5640_p4 = scmp.ne.s32.totalorder %s6107_s21, %s5639_s7  ;;  %s5644_s12 = sshll.u32 %s5773_s8, 4  ;;  %s5645_s12 = int_to_ptr.vmem [resolvable:$false] %s5644_s12 }
  0xc7   : > { %s5646_s3 = scalar_lea.vmem %s5645_s12, 64  ;;  %p5647_p6 = scmp.lt.s32.totalorder %s6107_s21, %s5645_s12 }
  0xc8   : > { %p5642_p13 = pnand %p5640_p4, %p5626_p8  ;;  %p5648_p1 = scmp.lt.s32.totalorder %s5646_s3, %s5639_s7 }
  0xca   : > { %p5643_p11 = pneg %p5642_p13  ;;  %p5649_p3 = por %p5648_p1, %p5647_p6 }
  0xcc   : > { %p5650_p2 = pnand %p5649_p3, %p5643_p11 }
  0xce   : > { %5653 = shalt.err (!%p5650_p2)
}
  0xcf   : > { %5249 = dma.hbm_to_vmem [thread:$0]  (!%p6103_p12), %s6100_s16, 32, %s6107_s21, %s655_s2  }
  0xd0   : > { %s672_s11 = sand.u32 1, %s5766_s28   ;;  %s676_s1 = scalar_lea.vmem [#allocation8], %s6094_s5 }
  0xd1   : > { %s683_s24 = sshll.u32 %s676_s1, 4  ;;  %s673_s25 = scalar_lea.sflag [#allocation9], %s672_s11  ;;  %s684_s24 = int_to_ptr.vmem [resolvable:$true] %s683_s24 }
  0xd2   : > { %s5654_s17 = scalar_lea.hbm %s6112_s23, 32  ;;  %s5659_s8 = scalar_lea.hbm %s7275_s10, 64 }
  0xd3   : > { %p5655_p6 = scmp.ne.s32.totalorder %s6112_s23, %s5654_s17  ;;  %p5660_p5 = scmp.lt.u32.totalorder %s6112_s23, %s7275_s10 }
  0xd4   : > { %p5661_p9 = scmp.lt.u32.totalorder %s5659_s8, %s5654_s17  ;;  %p5663_p4 = scmp.lt.u32.totalorder %s5654_s17, %s6112_s23 }
  0xd5   : > { %p5657_p11 = pnand %p5655_p6, %p5626_p8 }
  0xd6   : > { %p5662_p10 = por %p5661_p9, %p5660_p5 }
  0xd7   : > { %p5658_p0 = pneg %p5657_p11 }
  0xd8   : > { %p5664_p13 = por %p5663_p4, %p5662_p10 }
  0xda   : > { %p5665_p1 = pnand %p5664_p13, %p5658_p0 }
  0xdc   : > { %5668 = shalt.err (!%p5665_p1)
}
  0xdd   : > { %s5669_s5 = scalar_lea.vmem %s684_s24, 32  ;;  %s5774_s16 = smov [#allocation8]  }
  0xde   : > { %p5670_p3 = scmp.ne.s32.totalorder %s684_s24, %s5669_s5  ;;  %s5674_s21 = sshll.u32 %s5774_s16, 4  ;;  %s5675_s21 = int_to_ptr.vmem [resolvable:$false] %s5674_s21 }
  0xdf   : > { %s5676_s2 = scalar_lea.vmem %s5675_s21, 64  ;;  %p5677_p11 = scmp.lt.s32.totalorder %s684_s24, %s5675_s21 }
  0xe0   : > { %p5672_p2 = pnand %p5670_p3, %p5626_p8  ;;  %p5678_p7 = scmp.lt.s32.totalorder %s5676_s2, %s5669_s5 }
  0xe2   : > { %p5673_p6 = pneg %p5672_p2  ;;  %p5679_p5 = por %p5678_p7, %p5677_p11 }
  0xe4   : > { %p5680_p9 = pnand %p5679_p5, %p5673_p6 }
  0xe6   : > { %5683 = shalt.err (!%p5680_p9)
}
  0xe7   : > { %5252 = dma.hbm_to_vmem [thread:$0]  (!%p6103_p12), %s6112_s23, 32, %s684_s24, %s673_s25  }
  0xe8   : > { %p7276_p0 = scmp.ne.s32.totalorder %s7259_s4, 0 }
  0xe9   : > { %s6163_s11 = sand.u32 (!%p7276_p0), 1, %s5758_s27   ;;  %p7277_p7 = scmp.ne.s32.totalorder (!%p7276_p0), %s7270_s20, 0 }
  0xea   : > { %692 = sbr.rel (%p7276_p0) target bundleno = 3781 (0xec5), region = 104  ;;  %s4773_s1 = sshll.u32 (!%p7276_p0), %s6163_s11, 1 }
  0xeb   : > { %s695_s17 = scalar_lea.sflag (!%p7276_p0), [#allocation6], %s6163_s11  ;;  %s6167_s22 = scalar_lea.vmem (!%p7276_p0), [#allocation5], %s4773_s1 }
  0xf1   : > { %5729 = dma.done.wait (%p7277_p7), %s695_s17, 32  }
  0xf2   : > { %5731 = vsyncadd (%p7277_p7), %s695_s17, 4294967264  ;;  %s703_s30 = sand.u32 1, %s5921_s0   ;;  %s6174_s23 = scalar_lea.vmem [#allocation8], %s4773_s1 }
  0xf3   : > { %s704_s4 = scalar_lea.sflag [#allocation9], %s703_s30 }
  0xf4   : > { %5733 = dma.done.wait (%p7277_p7), %s704_s4, 32  }
  0xf5   : > { %5735 = vsyncadd (%p7277_p7), %s704_s4, 4294967264  ;;  %p7278_p12 = scmp.eq.s32.totalorder %s5921_s0, 0 }
  0xf7   : > { %5737 = dma.done.wait (%p7278_p12), [#allocation9], 16   ;;  %p7279_p8 = pmov %p7278_p12 }
  0xf9   : > { %5739 = vsyncadd (%p7279_p8), [#allocation9], 4294967280  ;;  %p7280_p10 = pmov %p7279_p8 }
  0xfa   : > { %p7281_p4 = pmov %p7279_p8 }
  0xfb   : > { %5741 = dma.done.wait (%p7280_p10), [#allocation12], 32  }
  0xfc   : > { %5743 = vsyncadd (%p7281_p4), [#allocation12], 4294967264  ;;  %p7282_p13 = pmov %p7281_p4 }
  0xfd   : > { %p7283_p1 = pmov %p7281_p4 }
  0xfe   : > { %5745 = dma.done.wait (%p7282_p13), [#allocation15], 32  }
  0xff   : > { %5747 = vsyncadd (%p7283_p1), [#allocation15], 4294967264  ;;  %p799_p3 = scmp.lt.s32.totalorder %s5921_s0, 1  ;;  %v950_v1 = vlaneseq  ;;  %v5775_v2 = vmov 0.0   ;;  %vm5776_vm0 = vmmov 0   ;;  %s7284_s8 = sld [smem:[#allocation27_spill]] }
 0x100   : > { %4968 = vmatprep.subr.bf16.mxu1 %v5775_v2  ;;  %4972 = vmatprep.mubr.msk.bf16.mxu1 %vm5776_vm0, %v5775_v2  ;;  %v5777_v3 = vmov 1966171168   ;;  %s7285_s16 = sld [smem:[#allocation28_spill]]  ;;  %s7286_s17 = sld [smem:[#allocation31_spill]]  ;;  %v6235_v17 = vld [vmem:[%s7212_s6] sm:$0xff]   ;;  %vm847_vm1 = vcmask 261120  }
 0x101   : > { %s800_s20 = scalar_select %p799_p3, %s5921_s0, 1  ;;  %v948_v4 = vunpack.c.l.s4 %v5777_v3  ;;  %v951_v5 = vshrl.u32 %v950_v1, 7  ;;  %v2163_v6 = vand.u32 127, %v950_v1  ;;  %v6243_v19 = vld [vmem:[%s7212_s6 + $0x8] sm:$0xff]   ;;  %v4804_v20 = vld [vmem:[#allocation11] ss:$0 sm:$0xff]  ;;  %4984 = vmatprep.subr.bf16.mxu0 %v6235_v17 }
 0x102   : > { %s7287_s25 = sld [smem:[#allocation32_spill]]  ;;  %4985 = vmatpush3.bf16.msra.mxu0 %v6235_v17  ;;  %s5778_s1 = smov 8   ;;  %vm1354_vm2 = vcmask 31744  }
 0x103   : > { %s4781_s24 = sshll.u32 %s800_s20, 3  ;;  %v949_v7 = vunpack.c.0.s8 %v948_v4  ;;  %v6197_v8 = vsub.s32 %v2163_v6, %v951_v5  ;;  %v6248_v23 = vsub.s32 0, %v951_v5  ;;  %1311 = vrot.lane.b32.xlu0 %v4804_v20, %s5778_s1  ;;  %4986 = vmatprep.subr.bf16.mxu0 %v6243_v19  ;;  %s5780_s30 = smov 120  }
 0x104   : > { %s5781_s4 = smov 124   ;;  %s5783_s1 = smov 32  }
 0x105   : > { %s6202_s12 = scalar_lea.vmem %s7284_s8, %s4781_s24  ;;  %v6219_v11 = vsub.s32 %v949_v7, %v951_v5  ;;  %s7288_s20 = sld [smem:[#allocation39_spill]] }
 0x106   : > { %s6207_s21 = scalar_lea.vmem %s7285_s16, %s4781_s24  ;;  %v6212_v9 = vld [vmem:[%s7286_s17] sm:$0xff]   ;;  %v6217_v10 = vld [vmem:[%s7286_s17 + $0x8] sm:$0xff]   ;;  %4987 = vmatpush3.bf16.msra.mxu0 %v6243_v19  ;;  %s7289_s5 = sld [smem:[#allocation40_spill]] }
 0x107   : > { %4969 = vmatpush3.bf16.msra.mxu1 %v6212_v9  ;;  %v810_v12 = vld [vmem:[%s6202_s12] sm:$0xff]  ;;  %5008 = vmatprep.subr.bf16.mxu0 %v5775_v2  ;;  %s5784_s16 = smov 64   ;;  %s7291_s24 = sld [smem:[#allocation41_spill]] }
 0x108   : > { %v811_v13 = vld [vmem:[%s6207_s21] sm:$0xff]  ;;  %4970 = vmatprep.subr.bf16.mxu1 %v5775_v2  ;;  %v6230_v16 = vpack.c.bf16 %v810_v12, %v810_v12  ;;  %v5323_v24 = vld [vmem:[%s7287_s25 + $0x8] sm:$0xff]   ;;  %s4780_s7 = sshll.u32 %s6163_s11, 3  ;;  %s4882_s8 = sshll.u32 %s5921_s0, 7 }
 0x109   : > { %v6225_v14 = vpack.c.bf16 %v811_v13, %v811_v13  ;;  %v5322_v15 = vld [vmem:[%s7287_s25] sm:$0xff]   ;;  %s798_s3 = scalar_lea.vmem [#allocation17], %s4780_s7  ;;  %s4583_s0 = scalar_lea.sflag [#allocation7], %s6163_s11 }
 0x10a   : > { %p7293_p6 = scmp.ne.s32.totalorder %s7271_s9, 0 }
 0x10b   : > { %v953_v18 = vrot.slane %v6225_v14, %v6219_v11  ;;  %4971 = vmatpush3.bf16.msra.mxu1 %v6217_v10 }
 0x10c   : > { %4976 = vmatprep.subr.bf16.mxu1 %v5775_v2 }
 0x10d   : > { %v954_v21 = vcombine.high %v953_v18, %v953_v18  ;;  %v961_v22 = vrot.slane %v953_v18, %v6219_v11 }
 0x10e   : > { %4973 = vmatmul.mubr.msk.bf16.vlgmr.msra.gmra.mrb[0].mxu1 %vm847_vm1, %v6230_v16 }
 0x10f   : > { %v972_v25 = vunpack.i.h.s16 %v961_v22  ;;  %v4790_v26 = vpack.i.b16 %v961_v22, %v961_v22  ;;  %v968_v27 = vrot.slane %v954_v21, %v6219_v11  ;;  %v969_v28 = vcombine.high %v961_v22, %v961_v22  ;;  %4977 = vmatpush3.bf16.msra.mxu1 %v5322_v15  ;;  %4980 = vmatprep.mubr.msk.bf16.mxu1 %vm5776_vm0, %v5775_v2 }
 0x110   : > { %4978 = vmatprep.subr.bf16.mxu1 %v5775_v2  ;;  %v5779_v21 = vmov 0  }
 0x111   : > { %v980_v29 = vpack.i.b16 %v972_v25, %v972_v25  ;;  %v990_v30 = vrot.slane %v4790_v26, %v6248_v23  ;;  %v974_v31 = vunpack.i.h.s16 %v968_v27  ;;  %v4791_v32 = vpack.i.b16 %v968_v27, %v968_v27  ;;  %5317 = vset.pattern.permute.xlu0 %v5779_v21 }
 0x112   : > { %v976_v33 = vunpack.i.h.s16 %v969_v28  ;;  %v4792_v34 = vpack.i.b16 %v969_v28, %v969_v28  ;;  %v970_v35 = vcombine.high %v968_v27, %v968_v27 }
 0x113   : > { %v994_v36 = vrot.slane %v980_v29, %v6248_v23  ;;  %v1020_v37 = vpack.i.b16 %v990_v30, %v990_v30  ;;  %v982_v38 = vpack.i.b16 %v974_v31, %v974_v31  ;;  %v998_v39 = vrot.slane %v4791_v32, %v6248_v23  ;;  %4979 = vmatpush3.bf16.msra.mxu1 %v5323_v24 }
 0x114   : > { %v984_v40 = vpack.i.b16 %v976_v33, %v976_v33  ;;  %v1006_v41 = vrot.slane %v4792_v34, %v6248_v23  ;;  %v978_v42 = vunpack.i.h.s16 %v970_v35  ;;  %v4793_v43 = vpack.i.b16 %v970_v35, %v970_v35  ;;  %4996 = vmatprep.subr.bf16.mxu1 %v5775_v2 }
 0x115   : > { %v1025_v44 = vrot.slane %v1020_v37, %v6248_v23  ;;  %v1027_v45 = vpack.i.b16 %v994_v36, %v994_v36  ;;  %v1002_v46 = vrot.slane %v982_v38, %v6248_v23  ;;  %v1034_v47 = vpack.i.b16 %v998_v39, %v998_v39  ;;  %v6308_v38 = vld [vmem:[#allocation10] ss:$0 sm:$0xff] }
 0x116   : > { %v1010_v48 = vrot.slane %v984_v40, %v6248_v23  ;;  %v1048_v49 = vpack.i.b16 %v1006_v41, %v1006_v41  ;;  %v986_v50 = vpack.i.b16 %v978_v42, %v978_v42  ;;  %v1014_v51 = vrot.slane %v4793_v43, %v6248_v23  ;;  %4981 = vmatmul.mubr.msk.bf16.vlgmr.msra.gmra.mrb[4].mxu1 %vm847_vm1, %v6225_v14 }
 0x117   : > { %v1032_v52 = vrot.slane %v1027_v45, %v6248_v23  ;;  %v1075_v53 = vmul.bf16 %v1025_v44, %v6230_v16  ;;  %v1039_v54 = vrot.slane %v1034_v47, %v6248_v23  ;;  %v1041_v55 = vpack.i.b16 %v1002_v46, %v1002_v46  ;;  %4998 = vmatprep.mubr.msk.bf16.mxu1 %vm5776_vm0, %v5775_v2 }
 0x118   : > { %v1053_v56 = vrot.slane %v1048_v49, %v6248_v23  ;;  %v1055_v57 = vpack.i.b16 %v1010_v48, %v1010_v48  ;;  %v1018_v58 = vrot.slane %v986_v50, %v6248_v23  ;;  %v1062_v59 = vpack.i.b16 %v1014_v51, %v1014_v51 }
 0x119   : > { %v1076_v60 = vmul.bf16 %v1032_v52, %v6230_v16  ;;  %v1046_v61 = vrot.slane %v1041_v55, %v6248_v23  ;;  %v1077_v62 = vmul.bf16 %v1039_v54, %v6230_v16 }
 0x11a   : > { %v1060_v63 = vrot.slane %v1055_v57, %v6248_v23  ;;  %v1079_v0 = vmul.bf16 %v1053_v56, %v6230_v16  ;;  %v1069_v1 = vpack.i.b16 %v1018_v58, %v1018_v58  ;;  %v1067_v5 = vrot.slane %v1062_v59, %v6248_v23 }
 0x11b   : > { %v4794_v3 = vcombine.low %v1075_v53, %v1076_v60  ;;  %v1078_v4 = vmul.bf16 %v1046_v61, %v6230_v16 }
 0x11c   : > { %v1080_v6 = vmul.bf16 %v1060_v63, %v6230_v16  ;;  %v1074_v7 = vrot.slane %v1069_v1, %v6248_v23  ;;  %v1081_v15 = vmul.bf16 %v1067_v5, %v6230_v16 }
 0x11d   : > { %4988 = vmatprep.mubr.msk.bf16.mxu0 %vm847_vm1, %v4794_v3  ;;  %v4795_v12 = vcombine.low %v1077_v62, %v1078_v4 }
 0x11e   : > { %v4796_v13 = vcombine.low %v1079_v0, %v1080_v6  ;;  %v1082_v18 = vmul.bf16 %v1074_v7, %v6230_v16 }
 0x11f   : > { %4989 = vmatmul.mubr.msk.bf16.vlgmr.msra.gmra.mrb[0].mxu0 %vm847_vm1, %v4795_v12 }
 0x120   : > { %4992 = vmatprep.mubr.msk.bf16.mxu0 %vm847_vm1, %v4796_v13  ;;  %v4797_v20 = vcombine.low %v1081_v15, %v1082_v18 }
 0x127   : > { %4993 = vmatmul.mubr.msk.bf16.gmra.mrb[4].mxu0 %vm847_vm1, %v4797_v20 }
 0x128   : > { %5010 = vmatprep.mubr.msk.bf16.mxu0 %vm5776_vm0, %v5775_v2 }
 0x175   : > { %v6323_v60 = vpop.permute.xlu0 %1311 }
 0x1e1   : > { %v885_v22 = vpop.f32.mrb[0].mxu1 }
 0x1e2   : > { %v4974_v24 = vpop.f32.mrb[1].mxu1  ;;  %v886_v46 = vadd.f32 %v6308_v38, %v885_v22 }
 0x1e3   : > { %v888_v25 = vpop.f32.mrb[2].mxu1 }
 0x1e4   : > { %v4975_v26 = vpop.f32.mrb[3].mxu1 }
 0x1e9   : > { %v6299_v27 = vpop.f32.mrb[4].mxu1 }
 0x1ea   : > { %v4982_v28 = vpop.f32.mrb[5].mxu1  ;;  %v1200_v29 = vrot.slane %v6299_v27, %v6219_v11  ;;  %v1193_v30 = vcombine.high %v6299_v27, %v6299_v27 }
 0x1eb   : > { %v943_v31 = vpop.f32.mrb[6].mxu1 }
 0x1ec   : > { %v4983_v32 = vpop.f32.mrb[7].mxu1  ;;  %v1216_v33 = vrot.slane %v1200_v29, %v6219_v11  ;;  %v1208_v34 = vcombine.high %v1200_v29, %v1200_v29  ;;  %v1207_v35 = vrot.slane %v1193_v30, %v6219_v11 }
 0x1ee   : > { %v1238_v36 = vcombine.high %v1216_v33, %v1216_v33  ;;  %v1230_v37 = vrot.slane %v1208_v34, %v6219_v11  ;;  %v1245_v39 = vrot.slane %v1216_v33, %v6248_v23  ;;  %v1209_v40 = vcombine.high %v1207_v35, %v1207_v35 }
 0x1ef   : > { %v1223_v43 = vrot.slane %v1207_v35, %v6219_v11 }
 0x1f0   : > { %v1253_v41 = vrot.slane %v1238_v36, %v6248_v23  ;;  %v1240_v42 = vcombine.high %v1230_v37, %v1230_v37  ;;  %v1249_v45 = vrot.slane %v1230_v37, %v6248_v23  ;;  %v1237_v50 = vrot.slane %v1209_v40, %v6219_v11 }
 0x1f1   : > { %v1239_v56 = vcombine.high %v1223_v43, %v1223_v43  ;;  %v1261_v4 = vrot.slane %v1223_v43, %v6248_v23 }
 0x1f2   : > { %v4990_v44 = vpop.f32.mrb[0].mxu0  ;;  %v1257_v49 = vrot.slane %v1240_v42, %v6248_v23  ;;  %v1241_v61 = vcombine.high %v1237_v50, %v1237_v50  ;;  %v1265_v15 = vrot.slane %v1237_v50, %v6248_v23 }
 0x1f3   : > { %v1284_v47 = vadd.f32 %v4990_v44, %v1253_v41  ;;  %v1161_v48 = vpop.f32.mrb[1].mxu0  ;;  %v1269_v0 = vrot.slane %v1239_v56, %v6248_v23  ;;  %v4805_v44 = vld [vmem:[#allocation4] ss:$0 sm:$0xff] }
 0x1f4   : > { %v1282_v51 = vadd.f32 %v1245_v39, %v1161_v48  ;;  %v4991_v52 = vpop.f32.mrb[2].mxu0  ;;  %v1273_v13 = vrot.slane %v1241_v61, %v6248_v23 }
 0x1f5   : > { %v6317_v53 = vadd.f32 %v1284_v47, %v886_v46  ;;  %v1285_v54 = vadd.f32 %v4991_v52, %v1257_v49  ;;  %v1164_v55 = vpop.f32.mrb[3].mxu0 }
 0x1f6   : > { %v6319_v57 = vadd.f32 %v1282_v51, %v886_v46  ;;  %v1283_v58 = vadd.f32 %v1249_v45, %v1164_v55 }
 0x1f7   : > { %v6321_v59 = vadd.f32 %v1285_v54, %v886_v46  ;;  %v1300_v25 = vmax.f32 %v6317_v53, 0.0 }
 0x1f8   : > { %v6325_v62 = vadd.f32 %v1283_v58, %v886_v46  ;;  %v1298_v63 = vmax.f32 %v6319_v57, 0.0 }
 0x1f9   : > { %v1301_v1 = vmax.f32 %v6321_v59, 0.0  ;;  %v1316_v34 = vmul.f32 %v6323_v60, %v1300_v25 }
 0x1fa   : > { %v4994_v3 = vpop.f32.mrb[4].mxu0  ;;  %v1314_v5 = vmul.f32 %v6323_v60, %v1298_v63  ;;  %v1299_v6 = vmax.f32 %v6325_v62, 0.0 }
 0x1fb   : > { %v1288_v7 = vadd.f32 %v4994_v3, %v1269_v0  ;;  %v1177_v12 = vpop.f32.mrb[5].mxu0  ;;  %v1317_v24 = vmul.f32 %v6323_v60, %v1301_v1 }
 0x1fc   : > { %v1286_v18 = vadd.f32 %v1261_v4, %v1177_v12  ;;  %v4995_v20 = vpop.f32.mrb[6].mxu0  ;;  %1330 = vrot.lane.b32.xlu0 %v1314_v5, %s5780_s30  ;;  %v1315_v22 = vmul.f32 %v6323_v60, %v1299_v6 }
 0x1fd   : > { %v6339_v26 = vadd.f32 %v1288_v7, %v886_v46  ;;  %v1289_v28 = vadd.f32 %v4995_v20, %v1273_v13  ;;  %v1180_v29 = vpop.f32.mrb[7].mxu0 }
 0x1fe   : > { %v6341_v30 = vadd.f32 %v1286_v18, %v886_v46  ;;  %v1287_v31 = vadd.f32 %v1265_v15, %v1180_v29  ;;  %1332 = vrot.lane.b32.xlu1 %v1315_v22, %s5780_s30 }
 0x1ff   : > { %v6344_v32 = vadd.f32 %v1289_v28, %v886_v46  ;;  %v1304_v41 = vmax.f32 %v6339_v26, 0.0 }
 0x200   : > { %v6346_v33 = vadd.f32 %v1287_v31, %v886_v46  ;;  %1336 = vrot.lane.b32.xlu0 %v1317_v24, %s5780_s30  ;;  %v1302_v35 = vmax.f32 %v6341_v30, 0.0 }
 0x201   : > { %v1305_v36 = vmax.f32 %v6344_v32, 0.0  ;;  %v1320_v43 = vmul.f32 %v6323_v60, %v1304_v41 }
 0x202   : > { %1334 = vrot.lane.b32.xlu1 %v1316_v34, %s5780_s30  ;;  %v1303_v39 = vmax.f32 %v6346_v33, 0.0  ;;  %v1318_v40 = vmul.f32 %v6323_v60, %v1302_v35 }
 0x203   : > { %v1321_v37 = vmul.f32 %v6323_v60, %v1305_v36 }
 0x204   : > { %v1319_v42 = vmul.f32 %v6323_v60, %v1303_v39 }
 0x205   : > { %1344 = vrot.lane.b32.xlu0 %v1321_v37, %s5780_s30 }
 0x206   : > { %1338 = vrot.lane.b32.xlu1 %v1318_v40, %s5780_s30 }
 0x209   : > { %1340 = vrot.lane.b32.xlu0 %v1319_v42, %s5780_s30 }
 0x20a   : > { %1342 = vrot.lane.b32.xlu1 %v1320_v43, %s5780_s30 }
 0x20d   : > { %1385 = vperm.xlu0 %5317, %v4805_v44  }
 0x26e   : > { %v1331_v45 = vpop.permute.xlu0 %1330 }
 0x26f   : > { %v1355_v46 = vsel %vm1354_vm2, %v1331_v45, 0.0 }
 0x270   : > { %v1333_v47 = vpop.permute.xlu1 %1332  ;;  %1356 = vadd.xlane.f32.xlu1 %v1355_v46 }
 0x271   : > { %v1358_v48 = vsel %vm1354_vm2, %v1333_v47, 0.0 }
 0x272   : > { %v1337_v49 = vpop.permute.xlu0 %1336  ;;  %1359 = vadd.xlane.f32.xlu0 %v1358_v48 }
 0x273   : > { %v1364_v55 = vsel %vm1354_vm2, %v1337_v49, 0.0 }
 0x274   : > { %v1335_v50 = vpop.permute.xlu1 %1334 }
 0x275   : > { %v1361_v51 = vsel %vm1354_vm2, %v1335_v50, 0.0 }
 0x276   : > { %1362 = vadd.xlane.f32.xlu1 %v1361_v51 }
 0x277   : > { %v1345_v52 = vpop.permute.xlu0 %1344 }
 0x278   : > { %v1339_v54 = vpop.permute.xlu1 %1338  ;;  %v1376_v1 = vsel %vm1354_vm2, %v1345_v52, 0.0 }
 0x279   : > { %v1367_v56 = vsel %vm1354_vm2, %v1339_v54, 0.0 }
 0x27a   : > { %1365 = vadd.xlane.f32.xlu1 %v1364_v55  ;;  %1368 = vadd.xlane.f32.xlu0 %v1367_v56 }
 0x27b   : > { %v1341_v58 = vpop.permute.xlu0 %1340 }
 0x27c   : > { %v1343_v61 = vpop.permute.xlu1 %1342  ;;  %v1370_v63 = vsel %vm1354_vm2, %v1341_v58, 0.0 }
 0x27d   : > { %v1373_v0 = vsel %vm1354_vm2, %v1343_v61, 0.0 }
 0x27e   : > { %1374 = vadd.xlane.f32.xlu0 %v1373_v0  ;;  %1371 = vadd.xlane.f32.xlu1 %v1370_v63 }
 0x282   : > { %1377 = vadd.xlane.f32.xlu1 %v1376_v1 }
 0x28c   : > { %v6371_v3 = vpop.permute.xlu0 %1385 }
 0x2fd   : > { %v1357_v4 = vpop.xlane.xlu1 %1356 }
 0x2fe   : > { %v1388_v5 = vadd.f32 %v6371_v3, %v1357_v4 }
 0x2ff   : > { %v1360_v6 = vpop.xlane.xlu0 %1359 }
 0x300   : > { %v4806_v7 = vmul.f32 -1.442695, %v1388_v5  ;;  %v1389_v12 = vadd.f32 %v6371_v3, %v1360_v6 }
 0x302   : > { %5338 = vpow2.f32 %v4806_v7  ;;  %v4807_v13 = vmul.f32 -1.442695, %v1389_v12 }
 0x303   : > { %v1363_v15 = vpop.xlane.xlu1 %1362 }
 0x304   : > { %5340 = vpow2.f32 %v4807_v13  ;;  %v1390_v18 = vadd.f32 %v6371_v3, %v1363_v15 }
 0x306   : > { %v4808_v20 = vmul.f32 -1.442695, %v1390_v18 }
 0x307   : > { %v1366_v22 = vpop.xlane.xlu1 %1365  ;;  %v1369_v24 = vpop.xlane.xlu0 %1368 }
 0x308   : > { %5342 = vpow2.f32 %v4808_v20  ;;  %v1391_v25 = vadd.f32 %v6371_v3, %v1366_v22  ;;  %v1392_v28 = vadd.f32 %v6371_v3, %v1369_v24 }
 0x30a   : > { %v4809_v29 = vmul.f32 -1.442695, %v1391_v25  ;;  %v4810_v31 = vmul.f32 -1.442695, %v1392_v28 }
 0x30b   : > { %v1372_v34 = vpop.xlane.xlu1 %1371  ;;  %v1375_v35 = vpop.xlane.xlu0 %1374 }
 0x30c   : > { %v5339_v36 = vpop.eup %5338  ;;  %5344 = vpow2.f32 %v4809_v29  ;;  %v1393_v37 = vadd.f32 %v6371_v3, %v1372_v34  ;;  %v1394_v39 = vadd.f32 %v6371_v3, %v1375_v35 }
 0x30d   : > { %v1420_v40 = vadd.f32 1.0, %v5339_v36  ;;  %5346 = vpow2.f32 %v4810_v31 }
 0x30e   : > { %v5341_v41 = vpop.eup %5340  ;;  %v4811_v42 = vmul.f32 -1.442695, %v1393_v37  ;;  %v4812_v43 = vmul.f32 -1.442695, %v1394_v39 }
 0x30f   : > { %5348 = vrcp.f32 %v1420_v40  ;;  %v1421_v44 = vadd.f32 1.0, %v5341_v41  ;;  %v1378_v45 = vpop.xlane.xlu1 %1377 }
 0x310   : > { %5350 = vpow2.f32 %v4811_v42  ;;  %v1395_v46 = vadd.f32 %v6371_v3, %v1378_v45 }
 0x311   : > { %5352 = vrcp.f32 %v1421_v44 }
 0x312   : > { %v5343_v47 = vpop.eup %5342  ;;  %5354 = vpow2.f32 %v4812_v43  ;;  %v4813_v48 = vmul.f32 -1.442695, %v1395_v46 }
 0x313   : > { %v1422_v49 = vadd.f32 1.0, %v5343_v47  ;;  %v2392_v47 = vrot.slane %v6230_v16, %v6219_v11 }
 0x314   : > { %5356 = vpow2.f32 %v4813_v48  ;;  %v1460_v48 = vpack.c.bf16 %v6319_v57, %v6319_v57 }
 0x315   : > { %5358 = vrcp.f32 %v1422_v49 }
 0x316   : > { %v5345_v50 = vpop.eup %5344 }
 0x317   : > { %v5347_v51 = vpop.eup %5346  ;;  %v1423_v52 = vadd.f32 1.0, %v5345_v50 }
 0x318   : > { %v1424_v54 = vadd.f32 1.0, %v5347_v51  ;;  %v2400_v51 = vrot.slane %v2392_v47, %v6219_v11 }
 0x319   : > { %v5349_v55 = vpop.eup %5348  ;;  %5360 = vrcp.f32 %v1423_v52 }
 0x31a   : > { %v5351_v56 = vpop.eup %5350  ;;  %5362 = vrcp.f32 %v1424_v54  ;;  %v1444_v58 = vmul.f32 %v5349_v55, %v6319_v57  ;;  %v2393_v54 = vcombine.high %v2392_v47, %v2392_v47  ;;  %v1462_v55 = vpack.c.bf16 %v6317_v53, %v6317_v53 }
 0x31b   : > { %v5353_v61 = vpop.eup %5352  ;;  %v1425_v63 = vadd.f32 1.0, %v5351_v56 }
 0x31c   : > { %v5355_v0 = vpop.eup %5354  ;;  %v1452_v1 = vpack.c.bf16 %v1444_v58, %v1444_v58  ;;  %v1445_v4 = vmul.f32 %v5353_v61, %v6325_v62  ;;  %v2411_v58 = vunpack.i.h.s16 %v2400_v51  ;;  %v1461_v61 = vpack.c.bf16 %v6325_v62, %v6325_v62 }
 0x31d   : > { %5364 = vrcp.f32 %v1425_v63  ;;  %v1426_v5 = vadd.f32 1.0, %v5355_v0  ;;  %v2407_v0 = vrot.slane %v2393_v54, %v6219_v11 }
 0x31e   : > { %v5357_v6 = vpop.eup %5356  ;;  %1469 = vrot.lane.b32.xlu0 %v1452_v1, %s5781_s4  ;;  %v1453_v7 = vpack.c.bf16 %v1445_v4, %v1445_v4  ;;  %v4823_v4 = vpack.i.b16 %v2400_v51, %v2400_v51 }
 0x31f   : > { %v5359_v12 = vpop.eup %5358  ;;  %5366 = vrcp.f32 %v1426_v5  ;;  %v1427_v13 = vadd.f32 1.0, %v5357_v6  ;;  %v2419_v5 = vpack.i.b16 %v2411_v58, %v2411_v58  ;;  %v2408_v6 = vcombine.high %v2400_v51, %v2400_v51 }
 0x320   : > { %1518 = vrot.lane.b32.xlu1 %v1453_v7, %s5781_s4  ;;  %v1446_v15 = vmul.f32 %v5359_v12, %v6317_v53  ;;  %v2413_v12 = vunpack.i.h.s16 %v2407_v0 }
 0x321   : > { %5368 = vrcp.f32 %v1427_v13  ;;  %v1464_v13 = vpack.c.bf16 %v6341_v30, %v6341_v30 }
 0x322   : > { %v1454_v18 = vpack.c.bf16 %v1446_v15, %v1446_v15  ;;  %v2429_v15 = vrot.slane %v4823_v4, %v6248_v23 }
 0x323   : > { %v5361_v20 = vpop.eup %5360 }
 0x324   : > { %v5363_v22 = vpop.eup %5362  ;;  %1567 = vrot.lane.b32.xlu1 %v1454_v18, %s5781_s4  ;;  %v1447_v24 = vmul.f32 %v5361_v20, %v6321_v59  ;;  %v2433_v20 = vrot.slane %v2419_v5, %v6248_v23 }
 0x325   : > { %v1448_v25 = vmul.f32 %v5363_v22, %v6341_v30  ;;  %v2415_v22 = vunpack.i.h.s16 %v2408_v6 }
 0x326   : > { %v1455_v28 = vpack.c.bf16 %v1447_v24, %v1447_v24  ;;  %v1463_v24 = vpack.c.bf16 %v6321_v59, %v6321_v59 }
 0x327   : > { %v5365_v29 = vpop.eup %5364  ;;  %v1456_v31 = vpack.c.bf16 %v1448_v25, %v1448_v25 }
 0x328   : > { %1616 = vrot.lane.b32.xlu0 %v1455_v28, %s5781_s4  ;;  %v1449_v34 = vmul.f32 %v5365_v29, %v6346_v33  ;;  %v4824_v28 = vpack.i.b16 %v2407_v0, %v2407_v0  ;;  %v2421_v29 = vpack.i.b16 %v2413_v12, %v2413_v12  ;;  %v1467_v12 = vpack.c.bf16 %v6344_v32, %v6344_v32 }
 0x329   : > { %v5367_v35 = vpop.eup %5366  ;;  %1665 = vrot.lane.b32.xlu1 %v1456_v31, %s5781_s4 }
 0x32a   : > { %v1457_v36 = vpack.c.bf16 %v1449_v34, %v1449_v34  ;;  %v1450_v37 = vmul.f32 %v5367_v35, %v6339_v26  ;;  %v2459_v34 = vpack.i.b16 %v2429_v15, %v2429_v15  ;;  %v2409_v35 = vcombine.high %v2407_v0, %v2407_v0 }
 0x32b   : > { %v5369_v39 = vpop.eup %5368 }
 0x32c   : > { %1714 = vrot.lane.b32.xlu0 %v1457_v36, %s5781_s4  ;;  %v1458_v40 = vpack.c.bf16 %v1450_v37, %v1450_v37  ;;  %v1451_v41 = vmul.f32 %v5369_v39, %v6344_v32  ;;  %v2466_v36 = vpack.i.b16 %v2433_v20, %v2433_v20  ;;  %v4825_v37 = vpack.i.b16 %v2408_v6, %v2408_v6 }
 0x32d   : > { %v2423_v39 = vpack.i.b16 %v2415_v22, %v2415_v22 }
 0x32e   : > { %1763 = vrot.lane.b32.xlu1 %v1458_v40, %s5781_s4  ;;  %v1459_v42 = vpack.c.bf16 %v1451_v41, %v1451_v41  ;;  %v2437_v40 = vrot.slane %v4824_v28, %v6248_v23  ;;  %v2441_v41 = vrot.slane %v2421_v29, %v6248_v23  ;;  %v2445_v47 = vrot.slane %v4825_v37, %v6248_v23 }
 0x330   : > { %1812 = vrot.lane.b32.xlu0 %v1459_v42, %s5781_s4  ;;  %v1466_v42 = vpack.c.bf16 %v6339_v26, %v6339_v26  ;;  %v2480_v51 = vpack.i.b16 %v2441_v41, %v2441_v41  ;;  %v2487_v58 = vpack.i.b16 %v2445_v47, %v2445_v47 }
 0x332   : > { %v2485_v0 = vrot.slane %v2480_v51, %v6248_v23  ;;  %v2492_v6 = vrot.slane %v2487_v58, %v6248_v23 }
 0x334   : > { %v2518_v20 = vmul.bf16 %v2492_v6, %v6225_v14 }
 0x390   : > { %v1470_v43 = vpop.permute.xlu0 %1469 }
 0x391   : > { %v1475_v44 = vsel %vm1354_vm2, %v1470_v43, 0  ;;  %v2464_v43 = vrot.slane %v2459_v34, %v6248_v23 }
 0x392   : > { %v1519_v45 = vpop.permute.xlu1 %1518  ;;  %4997 = vmatpush3.bf16.xpose.msra.mxu1 %v1475_v44  ;;  %v2417_v44 = vunpack.i.h.s16 %v2409_v35 }
 0x393   : > { %5002 = vmatprep.subr.bf16.mxu1 %v5775_v2  ;;  %v1524_v50 = vsel %vm1354_vm2, %v1519_v45, 0  ;;  %v2514_v54 = vmul.bf16 %v2464_v43, %v6225_v14 }
 0x396   : > { %v1568_v46 = vpop.permute.xlu1 %1567 }
 0x397   : > { %v1573_v49 = vsel %vm1354_vm2, %v1568_v46, 0  ;;  %v2471_v46 = vrot.slane %v2466_v36, %v6248_v23 }
 0x398   : > { %5009 = vmatpush3.bf16.xpose.msra.mxu0 %v1573_v49  ;;  %v1465_v49 = vpack.c.bf16 %v6346_v33, %v6346_v33 }
 0x399   : > { %4999 = vmatmul.mubr.msk.bf16.vlgmr.msra.gmra.mrb[8].mxu1 %vm1354_vm2, %v1460_v48  ;;  %5020 = vmatprep.subr.bf16.mxu0 %v5775_v2  ;;  %v2449_v48 = vrot.slane %v2423_v39, %v6248_v23 }
 0x39a   : > { %5003 = vmatpush3.bf16.xpose.msra.mxu1 %v1524_v50  ;;  %5004 = vmatprep.mubr.msk.bf16.mxu1 %vm5776_vm0, %v5775_v2  ;;  %v1617_v56 = vpop.permute.xlu0 %1616  ;;  %v2473_v50 = vpack.i.b16 %v2437_v40, %v2437_v40 }
 0x39b   : > { %5014 = vmatprep.subr.bf16.mxu1 %v5775_v2  ;;  %v1666_v52 = vpop.permute.xlu1 %1665  ;;  %v1622_v1 = vsel %vm1354_vm2, %v1617_v56, 0  ;;  %v2425_v56 = vpack.i.b16 %v2417_v44, %v2417_v44 }
 0x39c   : > { %v1671_v63 = vsel %vm1354_vm2, %v1666_v52, 0 }
 0x39d   : > { %v2457_v4 = vrot.slane %v2425_v56, %v6248_v23 }
 0x39e   : > { %v1715_v18 = vpop.permute.xlu0 %1714 }
 0x39f   : > { %5011 = vmatmul.mubr.msk.bf16.vlgmr.msra.gmra.mrb[8].mxu0 %vm1354_vm2, %v1462_v55  ;;  %v1720_v31 = vsel %vm1354_vm2, %v1715_v18, 0  ;;  %v4826_v55 = vpack.i.b16 %v2409_v35, %v2409_v35  ;;  %v2508_v18 = vpack.i.b16 %v2457_v4, %v2457_v4 }
 0x3a0   : > { %5021 = vmatpush3.bf16.xpose.msra.mxu0 %v1671_v63  ;;  %5022 = vmatprep.mubr.msk.bf16.mxu0 %vm5776_vm0, %v5775_v2  ;;  %v1764_v7 = vpop.permute.xlu1 %1763  ;;  %v2478_v63 = vrot.slane %v2473_v50, %v6248_v23 }
 0x3a1   : > { %5005 = vmatmul.mubr.msk.bf16.vlgmr.msra.gmra.mrb[12].mxu1 %vm1354_vm2, %v1461_v61  ;;  %5032 = vmatprep.subr.bf16.mxu0 %v5775_v2  ;;  %v1769_v25 = vsel %vm1354_vm2, %v1764_v7, 0  ;;  %v2494_v61 = vpack.i.b16 %v2449_v48, %v2449_v48  ;;  %v2513_v28 = vrot.slane %v2508_v18, %v6248_v23 }
 0x3a2   : > { %5015 = vmatpush3.bf16.xpose.msra.mxu1 %v1622_v1  ;;  %5016 = vmatprep.mubr.msk.bf16.mxu1 %vm5776_vm0, %v5775_v2  ;;  %v1813_v45 = vpop.permute.xlu0 %1812  ;;  %v2453_v1 = vrot.slane %v4826_v55, %v6248_v23 }
 0x3a3   : > { %5026 = vmatprep.subr.bf16.mxu1 %v5775_v2  ;;  %v1818_v52 = vsel %vm1354_vm2, %v1813_v45, 0  ;;  %v2499_v7 = vrot.slane %v2494_v61, %v6248_v23 }
 0x3a4   : > { %v2501_v15 = vpack.i.b16 %v2453_v1, %v2453_v1 }
 0x3a5   : > { %v2519_v22 = vmul.bf16 %v2499_v7, %v6225_v14 }
 0x3a7   : > { %5023 = vmatmul.mubr.msk.bf16.vlgmr.msra.gmra.mrb[12].mxu0 %vm1354_vm2, %v1464_v13  ;;  %v2517_v13 = vmul.bf16 %v2485_v0, %v6225_v14  ;;  %v4829_v29 = vcombine.low %v2518_v20, %v2519_v22 }
 0x3a8   : > { %5033 = vmatpush3.bf16.xpose.msra.mxu0 %v1769_v25  ;;  %5034 = vmatprep.mubr.msk.bf16.mxu0 %vm5776_vm0, %v5775_v2  ;;  %v2506_v25 = vrot.slane %v2501_v15, %v6248_v23 }
 0x3a9   : > { %5017 = vmatmul.mubr.msk.bf16.vlgmr.msra.gmra.mrb[16].mxu1 %vm1354_vm2, %v1463_v24  ;;  %5044 = vmatprep.subr.bf16.mxu0 %v5775_v2 }
 0x3aa   : > { %5027 = vmatpush3.bf16.xpose.msra.mxu1 %v1720_v31  ;;  %5028 = vmatprep.mubr.msk.bf16.mxu1 %vm5776_vm0, %v5775_v2  ;;  %v2521_v31 = vmul.bf16 %v2513_v28, %v6225_v14 }
 0x3ab   : > { %5038 = vmatprep.subr.bf16.mxu1 %v5775_v2 }
 0x3af   : > { %5035 = vmatmul.mubr.msk.bf16.vlgmr.msra.gmra.mrb[16].mxu0 %vm1354_vm2, %v1466_v42 }
 0x3b0   : > { %5045 = vmatpush3.bf16.msra.mxu0 %v6212_v9  ;;  %5048 = vmatprep.mubr.msk.bf16.mxu0 %vm5776_vm0, %v5775_v2  ;;  %v2515_v9 = vmul.bf16 %v2471_v46, %v6225_v14 }
 0x3b1   : > { %5029 = vmatmul.mubr.msk.bf16.vlgmr.msra.gmra.mrb[20].mxu1 %vm1354_vm2, %v1465_v49  ;;  %5046 = vmatprep.subr.bf16.mxu0 %v5775_v2 }
 0x3b2   : > { %5039 = vmatpush3.bf16.xpose.msra.mxu1 %v1818_v52  ;;  %5040 = vmatprep.mubr.msk.bf16.mxu1 %vm5776_vm0, %v5775_v2  ;;  %v4827_v5 = vcombine.low %v2514_v54, %v2515_v9 }
 0x3b3   : > { %5052 = vmatprep.subr.bf16.mxu1 %v6235_v17 }
 0x3b4   : > { %5047 = vmatpush3.bf16.msra.mxu0 %v6217_v10  ;;  %v2516_v10 = vmul.bf16 %v2478_v63, %v6225_v14 }
 0x3b5   : > { %5064 = vmatprep.subr.bf16.mxu0 %v5775_v2 }
 0x3b6   : > { %v4828_v24 = vcombine.low %v2516_v10, %v2517_v13 }
 0x3b7   : > { %5049 = vmatmul.mubr.msk.bf16.vlgmr.msra.gmra.mrb[20].mxu0 %vm847_vm1, %v6230_v16 }
 0x3b8   : > { %5066 = vmatprep.mubr.msk.bf16.mxu0 %vm5776_vm0, %v5775_v2 }
 0x3b9   : > { %5041 = vmatmul.mubr.msk.bf16.vlgmr.msra.gmra.mrb[24].mxu1 %vm1354_vm2, %v1467_v12 }
 0x3ba   : > { %5053 = vmatpush3.bf16.msra.mxu1 %v6235_v17  ;;  %5056 = vmatprep.mubr.msk.bf16.mxu1 %vm847_vm1, %v4827_v5  ;;  %v2520_v17 = vmul.bf16 %v2506_v25, %v6225_v14 }
 0x3bb   : > { %5054 = vmatprep.subr.bf16.mxu1 %v6243_v19 }
 0x3bc   : > { %v4830_v34 = vcombine.low %v2520_v17, %v2521_v31 }
 0x3be   : > { %5055 = vmatpush3.bf16.msra.mxu1 %v6243_v19 }
 0x3bf   : > { %5076 = vmatprep.subr.bf16.mxu1 %v5775_v2 }
 0x3c1   : > { %5057 = vmatmul.mubr.msk.bf16.vlgmr.msra.gmra.mrb[28].mxu1 %vm847_vm1, %v4828_v24 }
 0x3c2   : > { %5060 = vmatprep.mubr.msk.bf16.mxu1 %vm847_vm1, %v4829_v29 }
 0x3c9   : > { %5061 = vmatmul.mubr.msk.bf16.gmra.mrb[32].mxu1 %vm847_vm1, %v4830_v34 }
 0x3ca   : > { %5078 = vmatprep.mubr.msk.bf16.mxu1 %vm5776_vm0, %v5775_v2 }
 0x46c   : > { %v6497_v35 = vpop.f32.mrb[8].mxu1 }
 0x46d   : > { %v5000_v19 = vpop.f32.mrb[9].mxu1 }
 0x46e   : > { %v1514_v36 = vpop.f32.mrb[10].mxu1 }
 0x46f   : > { %v5001_v37 = vpop.f32.mrb[11].mxu1 }
 0x472   : > { %v6499_v39 = vpop.f32.mrb[8].mxu0 }
 0x473   : > { %v5012_v40 = vpop.f32.mrb[9].mxu0 }
 0x474   : > { %v6501_v41 = vpop.f32.mrb[12].mxu1  ;;  %v1612_v42 = vpop.f32.mrb[10].mxu0 }
 0x475   : > { %v5006_v43 = vpop.f32.mrb[13].mxu1  ;;  %v5013_v44 = vpop.f32.mrb[11].mxu0 }
 0x476   : > { %v1563_v45 = vpop.f32.mrb[14].mxu1 }
 0x477   : > { %v5007_v46 = vpop.f32.mrb[15].mxu1 }
 0x47a   : > { %v6503_v47 = vpop.f32.mrb[12].mxu0 }
 0x47b   : > { %v5024_v48 = vpop.f32.mrb[13].mxu0 }
 0x47c   : > { %v6505_v49 = vpop.f32.mrb[16].mxu1  ;;  %v1710_v50 = vpop.f32.mrb[14].mxu0 }
 0x47d   : > { %v5018_v51 = vpop.f32.mrb[17].mxu1  ;;  %v5025_v52 = vpop.f32.mrb[15].mxu0 }
 0x47e   : > { %v1661_v54 = vpop.f32.mrb[18].mxu1 }
 0x47f   : > { %v5019_v55 = vpop.f32.mrb[19].mxu1 }
 0x482   : > { %v6507_v56 = vpop.f32.mrb[16].mxu0 }
 0x483   : > { %v5036_v9 = vpop.f32.mrb[17].mxu0 }
 0x484   : > { %v6509_v58 = vpop.f32.mrb[20].mxu1  ;;  %v1808_v61 = vpop.f32.mrb[18].mxu0 }
 0x485   : > { %v5030_v63 = vpop.f32.mrb[21].mxu1  ;;  %v5037_v0 = vpop.f32.mrb[19].mxu0 }
 0x486   : > { %v1759_v1 = vpop.f32.mrb[22].mxu1 }
 0x487   : > { %v5031_v4 = vpop.f32.mrb[23].mxu1 }
 0x48a   : > { %v2379_v5 = vpop.f32.mrb[20].mxu0 }
 0x48b   : > { %v2380_v6 = vadd.f32 %v6308_v38, %v2379_v5  ;;  %v5050_v7 = vpop.f32.mrb[21].mxu0 }
 0x48c   : > { %v6512_v12 = vpop.f32.mrb[24].mxu1  ;;  %v2382_v10 = vpop.f32.mrb[22].mxu0 }
 0x48d   : > { %v2620_v13 = vcombine.high %v2380_v6, %v2380_v6  ;;  %v2627_v15 = vrot.slane %v2380_v6, %v6219_v11  ;;  %v5042_v18 = vpop.f32.mrb[25].mxu1  ;;  %v5051_v20 = vpop.f32.mrb[23].mxu0 }
 0x48e   : > { %v1857_v22 = vpop.f32.mrb[26].mxu1 }
 0x48f   : > { %v2634_v24 = vrot.slane %v2620_v13, %v6219_v11  ;;  %v2635_v25 = vcombine.high %v2627_v15, %v2627_v15  ;;  %v2643_v28 = vrot.slane %v2627_v15, %v6219_v11  ;;  %v5043_v29 = vpop.f32.mrb[27].mxu1 }
 0x491   : > { %v2636_v17 = vcombine.high %v2634_v24, %v2634_v24  ;;  %v2665_v31 = vcombine.high %v2643_v28, %v2643_v28  ;;  %v2657_v38 = vrot.slane %v2635_v25, %v6219_v11  ;;  %v2672_v34 = vrot.slane %v2643_v28, %v6248_v23 }
 0x492   : > { %v2650_v37 = vrot.slane %v2634_v24, %v6219_v11 }
 0x493   : > { %v2680_v19 = vrot.slane %v2665_v31, %v6248_v23  ;;  %v2667_v36 = vcombine.high %v2657_v38, %v2657_v38  ;;  %v2676_v42 = vrot.slane %v2657_v38, %v6248_v23  ;;  %v2664_v46 = vrot.slane %v2636_v17, %v6219_v11 }
 0x494   : > { %v5058_v40 = vpop.f32.mrb[28].mxu1  ;;  %v2666_v55 = vcombine.high %v2650_v37, %v2650_v37  ;;  %v2688_v7 = vrot.slane %v2650_v37, %v6248_v23 }
 0x495   : > { %v2711_v43 = vadd.f32 %v5058_v40, %v2680_v19  ;;  %v2588_v44 = vpop.f32.mrb[29].mxu1  ;;  %v2684_v45 = vrot.slane %v2667_v36, %v6248_v23  ;;  %v2668_v0 = vcombine.high %v2664_v46, %v2664_v46  ;;  %v2692_v28 = vrot.slane %v2664_v46, %v6248_v23 }
 0x496   : > { %v2709_v48 = vadd.f32 %v2672_v34, %v2588_v44  ;;  %v5059_v50 = vpop.f32.mrb[30].mxu1  ;;  %v2696_v5 = vrot.slane %v2666_v55, %v6248_v23 }
 0x497   : > { %v6525_v51 = vadd.f32 %v2711_v43, %v6299_v27  ;;  %v2712_v52 = vadd.f32 %v5059_v50, %v2684_v45  ;;  %v2591_v54 = vpop.f32.mrb[31].mxu1  ;;  %v2700_v22 = vrot.slane %v2668_v0, %v6248_v23 }
 0x498   : > { %v6528_v9 = vadd.f32 %v2709_v48, %v6299_v27  ;;  %v2710_v61 = vadd.f32 %v2676_v42, %v2591_v54 }
 0x499   : > { %v6531_v63 = vadd.f32 %v2712_v52, %v6299_v27  ;;  %v2727_v15 = vmax.f32 %v6525_v51, 0.0 }
 0x49a   : > { %v6534_v1 = vadd.f32 %v2710_v61, %v6299_v27  ;;  %v2725_v4 = vmax.f32 %v6528_v9, 0.0 }
 0x49b   : > { %v2728_v17 = vmax.f32 %v6531_v63, 0.0  ;;  %v2735_v37 = vmul.f32 %v2727_v15, %v6323_v60 }
 0x49c   : > { %v5062_v6 = vpop.f32.mrb[32].mxu1  ;;  %v2733_v10 = vmul.f32 %v2725_v4, %v6323_v60  ;;  %v2726_v13 = vmax.f32 %v6534_v1, 0.0 }
 0x49d   : > { %v2715_v18 = vadd.f32 %v5062_v6, %v2696_v5  ;;  %v2604_v20 = vpop.f32.mrb[33].mxu1  ;;  %v2736_v43 = vmul.f32 %v2728_v17, %v6323_v60 }
 0x49e   : > { %v2713_v24 = vadd.f32 %v2688_v7, %v2604_v20  ;;  %2749 = vrot.lane.b32.xlu1 %v2733_v10, %s5780_s30  ;;  %v5063_v25 = vpop.f32.mrb[34].mxu1  ;;  %v2734_v29 = vmul.f32 %v2726_v13, %v6323_v60 }
 0x49f   : > { %v6548_v31 = vadd.f32 %v2715_v18, %v6299_v27  ;;  %v2716_v38 = vadd.f32 %v5063_v25, %v2700_v22  ;;  %v2607_v34 = vpop.f32.mrb[35].mxu1 }
 0x4a0   : > { %v6551_v19 = vadd.f32 %v2713_v24, %v6299_v27  ;;  %v2714_v36 = vadd.f32 %v2692_v28, %v2607_v34  ;;  %2751 = vrot.lane.b32.xlu0 %v2734_v29, %s5780_s30 }
 0x4a1   : > { %v6556_v40 = vadd.f32 %v2716_v38, %v6299_v27  ;;  %v2731_v48 = vmax.f32 %v6548_v31, 0.0 }
 0x4a2   : > { %v6559_v42 = vadd.f32 %v2714_v36, %v6299_v27  ;;  %2753 = vrot.lane.b32.xlu1 %v2735_v37, %s5780_s30  ;;  %v2729_v44 = vmax.f32 %v6551_v19, 0.0 }
 0x4a3   : > { %v2732_v27 = vmax.f32 %v6556_v40, 0.0  ;;  %v2739_v52 = vmul.f32 %v2731_v48, %v6323_v60 }
 0x4a4   : > { %2755 = vrot.lane.b32.xlu0 %v2736_v43, %s5780_s30  ;;  %v2737_v45 = vmul.f32 %v2729_v44, %v6323_v60  ;;  %v2730_v46 = vmax.f32 %v6559_v42, 0.0 }
 0x4a5   : > { %v2740_v54 = vmul.f32 %v2732_v27, %v6323_v60 }
 0x4a6   : > { %2757 = vrot.lane.b32.xlu1 %v2737_v45, %s5780_s30  ;;  %v2738_v50 = vmul.f32 %v2730_v46, %v6323_v60 }
 0x4a8   : > { %2759 = vrot.lane.b32.xlu0 %v2738_v50, %s5780_s30 }
 0x4aa   : > { %2761 = vrot.lane.b32.xlu1 %v2739_v52, %s5780_s30  ;;  %v1868_v52 = vld [vmem:[%s6167_s22] sm:$0x3] }
 0x4ab   : > { %vm1869_vm3 = vnez %v1868_v52 }
 0x4ac   : > { %2763 = vrot.lane.b32.xlu0 %v2740_v54, %s5780_s30 }
 0x510   : > { %v2750_v55 = vpop.permute.xlu1 %2749 }
 0x511   : > { %v2773_v61 = vsel %vm1354_vm2, %v2750_v55, 0.0 }
 0x512   : > { %v2752_v0 = vpop.permute.xlu0 %2751  ;;  %2774 = vadd.xlane.f32.xlu1 %v2773_v61 }
 0x513   : > { %v2776_v4 = vsel %vm1354_vm2, %v2752_v0, 0.0 }
 0x514   : > { %v2754_v5 = vpop.permute.xlu1 %2753  ;;  %2777 = vadd.xlane.f32.xlu0 %v2776_v4 }
 0x515   : > { %v2779_v10 = vsel %vm1354_vm2, %v2754_v5, 0.0 }
 0x516   : > { %v2756_v6 = vpop.permute.xlu0 %2755 }
 0x517   : > { %v2782_v7 = vsel %vm1354_vm2, %v2756_v6, 0.0 }
 0x518   : > { %2783 = vadd.xlane.f32.xlu1 %v2782_v7  ;;  %v2758_v13 = vpop.permute.xlu1 %2757  ;;  %2780 = vadd.xlane.f32.xlu0 %v2779_v10 }
 0x519   : > { %v2785_v15 = vsel %vm1354_vm2, %v2758_v13, 0.0 }
 0x51a   : > { %v2760_v60 = vpop.permute.xlu0 %2759 }
 0x51b   : > { %v2788_v18 = vsel %vm1354_vm2, %v2760_v60, 0.0  ;;  %v1870_v60 = vsel %vm1869_vm3, 16843009, %v5779_v21 }
 0x51c   : > { %v2762_v20 = vpop.permute.xlu1 %2761  ;;  %2786 = vadd.xlane.f32.xlu0 %v2785_v15  ;;  %2789 = vadd.xlane.f32.xlu1 %v2788_v18 }
 0x51d   : > { %v2791_v24 = vsel %vm1354_vm2, %v2762_v20, 0.0 }
 0x51e   : > { %v2764_v22 = vpop.permute.xlu0 %2763 }
 0x51f   : > { %v2794_v25 = vsel %vm1354_vm2, %v2764_v22, 0.0 }
 0x520   : > { %2792 = vadd.xlane.f32.xlu0 %v2791_v24  ;;  %2795 = vadd.xlane.f32.xlu1 %v2794_v25  ;;  %v1877_v24 = vrot.slane %v1870_v60, %v6219_v11 }
 0x522   : > { %v1878_v52 = vcombine.high %v1877_v24, %v1877_v24 }
 0x524   : > { %v1905_v60 = vpack.c.b16 %v1878_v52, %v1878_v52 }
 0x59f   : > { %v2775_v28 = vpop.xlane.xlu1 %2774 }
 0x5a0   : > { %v2797_v29 = vadd.f32 %v2775_v28, %v6371_v3 }
 0x5a1   : > { %v2778_v17 = vpop.xlane.xlu0 %2777 }
 0x5a2   : > { %v4835_v38 = vmul.f32 -1.442695, %v2797_v29  ;;  %v2798_v34 = vadd.f32 %v2778_v17, %v6371_v3 }
 0x5a4   : > { %5370 = vpow2.f32 %v4835_v38  ;;  %v4836_v36 = vmul.f32 -1.442695, %v2798_v34  ;;  %v1897_v38 = vpack.c.b16 %v1877_v24, %v1877_v24 }
 0x5a5   : > { %v2784_v37 = vpop.xlane.xlu1 %2783  ;;  %v2781_v43 = vpop.xlane.xlu0 %2780 }
 0x5a6   : > { %5372 = vpow2.f32 %v4836_v36  ;;  %v2800_v44 = vadd.f32 %v2784_v37, %v6371_v3  ;;  %v2799_v45 = vadd.f32 %v2781_v43, %v6371_v3 }
 0x5a8   : > { %v4838_v46 = vmul.f32 -1.442695, %v2800_v44  ;;  %v4837_v48 = vmul.f32 -1.442695, %v2799_v45  ;;  %v1898_v44 = vpack.c.b8 %v1897_v38, %v1897_v38  ;;  %v1882_v45 = vshrl.u32 %v1877_v24, 8 }
 0x5a9   : > { %v2790_v50 = vpop.xlane.xlu1 %2789  ;;  %v2787_v27 = vpop.xlane.xlu0 %2786 }
 0x5aa   : > { %5374 = vpow2.f32 %v4838_v46  ;;  %v2802_v54 = vadd.f32 %v2790_v50, %v6371_v3  ;;  %v2801_v55 = vadd.f32 %v2787_v27, %v6371_v3  ;;  %vm1913_vm4 = vnez %v1898_v44 }
 0x5ab   : > { %5376 = vpow2.f32 %v4837_v48 }
 0x5ac   : > { %v4840_v61 = vmul.f32 -1.442695, %v2802_v54  ;;  %v4839_v0 = vmul.f32 -1.442695, %v2801_v55 }
 0x5ad   : > { %v2796_v4 = vpop.xlane.xlu1 %2795  ;;  %v2793_v5 = vpop.xlane.xlu0 %2792 }
 0x5ae   : > { %v5371_v6 = vpop.eup %5370  ;;  %5378 = vpow2.f32 %v4840_v61  ;;  %v2804_v7 = vadd.f32 %v2796_v4, %v6371_v3  ;;  %v2803_v10 = vadd.f32 %v2793_v5, %v6371_v3  ;;  %v1884_v3 = vshrl.u32 %v1877_v24, 16 }
 0x5af   : > { %v2829_v13 = vadd.f32 1.0, %v5371_v6  ;;  %5380 = vpow2.f32 %v4839_v0  ;;  %v1899_v5 = vpack.c.b16 %v1882_v45, %v1882_v45 }
 0x5b0   : > { %v5373_v15 = vpop.eup %5372  ;;  %v4842_v18 = vmul.f32 -1.442695, %v2804_v7  ;;  %v4841_v20 = vmul.f32 -1.442695, %v2803_v10  ;;  %v1901_v48 = vpack.c.b16 %v1884_v3, %v1884_v3  ;;  %v1886_v10 = vshrl.u32 %v1877_v24, 24 }
 0x5b1   : > { %5382 = vrcp.f32 %v2829_v13  ;;  %v2830_v22 = vadd.f32 1.0, %v5373_v15  ;;  %v1893_v15 = vshrl.u32 %v1878_v52, 16  ;;  %v1891_v24 = vshrl.u32 %v1878_v52, 8 }
 0x5b2   : > { %5384 = vpow2.f32 %v4842_v18  ;;  %v1902_v7 = vpack.c.b8 %v1901_v48, %v1901_v48  ;;  %v1906_v3 = vpack.c.b8 %v1905_v60, %v1905_v60 }
 0x5b3   : > { %5386 = vrcp.f32 %v2830_v22 }
 0x5b4   : > { %v5375_v25 = vpop.eup %5374  ;;  %5388 = vpow2.f32 %v4841_v20  ;;  %vm1915_vm5 = vnez %v1902_v7  ;;  %vm1917_vm7 = vnez %v1906_v3 }
 0x5b5   : > { %v5377_v28 = vpop.eup %5376  ;;  %v2832_v29 = vadd.f32 1.0, %v5375_v25  ;;  %v1921_v25 = vsel %vm1913_vm4, 16843009, %v5779_v21  ;;  %v1925_v60 = vsel %vm1917_vm7, 16843009, %v5779_v21 }
 0x5b6   : > { %v2831_v17 = vadd.f32 1.0, %v5377_v28  ;;  %v1900_v28 = vpack.c.b8 %v1899_v5, %v1899_v5 }
 0x5b7   : > { %5390 = vrcp.f32 %v2832_v29 }
 0x5b8   : > { %v5379_v34 = vpop.eup %5378  ;;  %5392 = vrcp.f32 %v2831_v17  ;;  %v1903_v17 = vpack.c.b16 %v1886_v10, %v1886_v10  ;;  %vm1914_vm6 = vnez %v1900_v28 }
 0x5b9   : > { %v5381_v36 = vpop.eup %5380  ;;  %v2834_v37 = vadd.f32 1.0, %v5379_v34  ;;  %v1909_v34 = vpack.c.b16 %v1893_v15, %v1893_v15  ;;  %v1922_v10 = vsel %vm1914_vm6, 16843009, %v5779_v21 }
 0x5ba   : > { %v2833_v43 = vadd.f32 1.0, %v5381_v36  ;;  %v1930_v28 = vunpack.c.0.s8 %v1922_v10 }
 0x5bb   : > { %v5383_v46 = vpop.eup %5382  ;;  %5394 = vrcp.f32 %v2834_v37 }
 0x5bc   : > { %v5385_v50 = vpop.eup %5384  ;;  %5396 = vrcp.f32 %v2833_v43  ;;  %v2853_v27 = vmul.f32 %v5383_v46, %v6528_v9  ;;  %v1929_v43 = vunpack.c.0.s8 %v1921_v25  ;;  %v1923_v46 = vsel %vm1915_vm5, 16843009, %v5779_v21 }
 0x5bd   : > { %v5387_v54 = vpop.eup %5386  ;;  %v2836_v55 = vadd.f32 1.0, %v5385_v50  ;;  %v1904_v50 = vpack.c.b8 %v1903_v17, %v1903_v17  ;;  %v1933_v17 = vunpack.c.0.s8 %v1925_v60 }
 0x5be   : > { %v5389_v61 = vpop.eup %5388  ;;  %v2861_v0 = vpack.c.bf16 %v2853_v27, %v2853_v27  ;;  %v2854_v4 = vmul.f32 %v5387_v54, %v6534_v1  ;;  %v1907_v27 = vpack.c.b16 %v1891_v24, %v1891_v24  ;;  %v1895_v54 = vshrl.u32 %v1878_v52, 24 }
 0x5bf   : > { %5398 = vrcp.f32 %v2836_v55  ;;  %v2835_v6 = vadd.f32 1.0, %v5389_v61  ;;  %v1910_v61 = vpack.c.b8 %v1909_v34, %v1909_v34  ;;  %v1937_v5 = vpack.i.b16 %v1929_v43, %v1929_v43 }
 0x5c0   : > { %2878 = vrot.lane.b32.xlu0 %v2861_v0, %s5781_s4  ;;  %v2862_v13 = vpack.c.bf16 %v2854_v4, %v2854_v4  ;;  %vm1916_vm8 = vnez %v1904_v50  ;;  %v1908_v52 = vpack.c.b8 %v1907_v27, %v1907_v27  ;;  %v1911_v15 = vpack.c.b16 %v1895_v54, %v1895_v54 }
 0x5c1   : > { %v5391_v18 = vpop.eup %5390  ;;  %5400 = vrcp.f32 %v2835_v6  ;;  %v1931_v6 = vunpack.c.0.s8 %v1923_v46  ;;  %vm1919_vm9 = vnez %v1910_v61  ;;  %v1924_v24 = vsel %vm1916_vm8, 16843009, %v5779_v21 }
 0x5c2   : > { %v5393_v20 = vpop.eup %5392  ;;  %2927 = vrot.lane.b32.xlu1 %v2862_v13, %s5781_s4  ;;  %v2856_v22 = vmul.f32 %v5391_v18, %v6531_v63  ;;  %vm1918_vm10 = vnez %v1908_v52  ;;  %v1912_v3 = vpack.c.b8 %v1911_v15, %v1911_v15  ;;  %v1945_v43 = vpack.i.b16 %v1933_v17, %v1933_v17 }
 0x5c3   : > { %v2855_v29 = vmul.f32 %v5393_v20, %v6525_v51  ;;  %v1941_v25 = vpack.i.b16 %v1931_v6, %v1931_v6 }
 0x5c4   : > { %v2864_v38 = vpack.c.bf16 %v2856_v22, %v2856_v22  ;;  %v1938_v22 = vpack.i.b8 %v1937_v5, %v1937_v5  ;;  %vm1920_vm12 = vnez %v1912_v3  ;;  %v1946_v54 = vpack.i.b8 %v1945_v43, %v1945_v43 }
 0x5c5   : > { %v5395_v36 = vpop.eup %5394  ;;  %v2863_v37 = vpack.c.bf16 %v2855_v29, %v2855_v29  ;;  %v1942_v34 = vpack.i.b8 %v1941_v25, %v1941_v25  ;;  %v1928_v61 = vsel %vm1920_vm12, 16843009, %v5779_v21 }
 0x5c6   : > { %v5397_v44 = vpop.eup %5396  ;;  %3025 = vrot.lane.b32.xlu0 %v2864_v38, %s5781_s4  ;;  %v2858_v45 = vmul.f32 %v5395_v36, %v6559_v42  ;;  %v1927_v38 = vsel %vm1919_vm9, 16843009, %v5779_v21  ;;  %vm1953_vm11 = vnez %v1938_v22  ;;  %v1939_v36 = vpack.i.b16 %v1930_v28, %v1930_v28 }
 0x5c7   : > { %2976 = vrot.lane.b32.xlu1 %v2863_v37, %s5781_s4  ;;  %v2857_v48 = vmul.f32 %v5397_v44, %v6551_v19  ;;  %v1932_v37 = vunpack.c.0.s8 %v1924_v24  ;;  %v1935_v44 = vunpack.c.0.s8 %v1927_v38  ;;  %v1961_v46 = vsel %vm1953_vm11, 16843009, %v5779_v21 }
 0x5c8   : > { %v2866_v55 = vpack.c.bf16 %v2858_v45, %v2858_v45  ;;  %v1926_v45 = vsel %vm1918_vm10, 16843009, %v5779_v21  ;;  %vm1955_vm13 = vnez %v1942_v34  ;;  %vm1957_vm15 = vnez %v1946_v54 }
 0x5c9   : > { %v5399_v0 = vpop.eup %5398  ;;  %v2865_v4 = vpack.c.bf16 %v2857_v48, %v2857_v48  ;;  %v1940_v48 = vpack.i.b8 %v1939_v36, %v1939_v36  ;;  %v1943_v50 = vpack.i.b16 %v1932_v37, %v1932_v37  ;;  %v1934_v27 = vunpack.c.0.s8 %v1926_v45 }
 0x5ca   : > { %3123 = vrot.lane.b32.xlu0 %v2866_v55, %s5781_s4  ;;  %v2860_v7 = vmul.f32 %v5399_v0, %v6556_v40  ;;  %v1949_v55 = vpack.i.b16 %v1935_v44, %v1935_v44  ;;  %v1969_v0 = vunpack.c.0.s8 %v1961_v46  ;;  %v1965_v52 = vsel %vm1957_vm15, 16843009, %v5779_v21 }
 0x5cb   : > { %v5401_v13 = vpop.eup %5400  ;;  %3074 = vrot.lane.b32.xlu1 %v2865_v4, %s5781_s4  ;;  %v1963_v4 = vsel %vm1955_vm13, 16843009, %v5779_v21  ;;  %vm1954_vm14 = vnez %v1940_v48  ;;  %v1944_v5 = vpack.i.b8 %v1943_v50, %v1943_v50  ;;  %v1947_v6 = vpack.i.b16 %v1934_v27, %v1934_v27 }
 0x5cc   : > { %v2868_v18 = vpack.c.bf16 %v2860_v7, %v2860_v7  ;;  %v2859_v20 = vmul.f32 %v5401_v13, %v6548_v31  ;;  %v1936_v7 = vunpack.c.0.s8 %v1928_v61  ;;  %v1950_v10 = vpack.i.b8 %v1949_v55, %v1949_v55 }
 0x5cd   : > { %vm1977_vm3 = vcmp.ne.s32.totalorder %v1969_v0, 0  ;;  %v1971_v13 = vunpack.c.0.s8 %v1963_v4  ;;  %v1962_v60 = vsel %vm1954_vm14, 16843009, %v5779_v21  ;;  %vm1956_vm4 = vnez %v1944_v5 }
 0x5ce   : > { %3221 = vrot.lane.b32.xlu0 %v2868_v18, %s5781_s4  ;;  %v2867_v29 = vpack.c.bf16 %v2859_v20, %v2859_v20  ;;  %v1948_v15 = vpack.i.b8 %v1947_v6, %v1947_v6  ;;  %v1951_v18 = vpack.i.b16 %v1936_v7, %v1936_v7  ;;  %vm1959_vm5 = vnez %v1950_v10 }
 0x5cf   : > { %v1985_v20 = vsel %vm1977_vm3, 1, %v5779_v21  ;;  %v1970_v22 = vunpack.c.0.s8 %v1962_v60  ;;  %vm1979_vm6 = vcmp.ne.s32.totalorder %v1971_v13, 0  ;;  %v1973_v25 = vunpack.c.0.s8 %v1965_v52 }
 0x5d0   : > { %3172 = vrot.lane.b32.xlu1 %v2867_v29, %s5781_s4  ;;  %v1964_v28 = vsel %vm1956_vm4, 16843009, %v5779_v21  ;;  %v1967_v29 = vsel %vm1959_vm5, 16843009, %v5779_v21  ;;  %vm1958_vm7 = vnez %v1948_v15  ;;  %v1952_v17 = vpack.i.b8 %v1951_v18, %v1951_v18 }
 0x5d1   : > { %v1996_v24 = vrot.slane %v1985_v20, %v6248_v23  ;;  %v1987_v38 = vsel %vm1979_vm6, 1, %v5779_v21  ;;  %vm1978_vm8 = vcmp.ne.s32.totalorder %v1970_v22, 0  ;;  %v1972_v3 = vunpack.c.0.s8 %v1964_v28 }
 0x5d2   : > { %vm1981_vm9 = vcmp.ne.s32.totalorder %v1973_v25, 0  ;;  %v1975_v34 = vunpack.c.0.s8 %v1967_v29  ;;  %v1966_v36 = vsel %vm1958_vm7, 16843009, %v5779_v21  ;;  %v1860_v37 = vmul.f32 0.5, %v6497_v35 }
 0x5d3   : > { %vm1960_vm10 = vnez %v1952_v17  ;;  %vm2025_vm11 = vcmp.eq.s32.totalorder %v1996_v24, 1  ;;  %v2004_v43 = vrot.slane %v1987_v38, %v6248_v23  ;;  %v1986_v44 = vsel %vm1978_vm8, 1, %v5779_v21 }
 0x5d4   : > { %v1989_v45 = vsel %vm1981_vm9, 1, %v5779_v21  ;;  %vm1980_vm12 = vcmp.ne.s32.totalorder %v1972_v3, 0  ;;  %v1974_v46 = vunpack.c.0.s8 %v1966_v36  ;;  %vm1983_vm13 = vcmp.ne.s32.totalorder %v1975_v34, 0 }
 0x5d5   : > { %v1968_v48 = vsel %vm1960_vm10, 16843009, %v5779_v21  ;;  %v1862_v50 = vmul.f32 0.5, %v6499_v39  ;;  %v6635_v27 = vsel %vm2025_vm11, %v1860_v37, -1e+09  ;;  %vm2041_vm14 = vcmask 64512  }
 0x5d6   : > { %v2000_v35 = vrot.slane %v1986_v44, %v6248_v23  ;;  %vm2027_vm15 = vcmp.eq.s32.totalorder %v2004_v43, 1  ;;  %v2012_v54 = vrot.slane %v1989_v45, %v6248_v23  ;;  %v1988_v55 = vsel %vm1980_vm12, 1, %v5779_v21 }
 0x5d7   : > { %v1991_v61 = vsel %vm1983_vm13, 1, %v5779_v21  ;;  %vm1982_vm3 = vcmp.ne.s32.totalorder %v1974_v46, 0  ;;  %v1976_v0 = vunpack.c.0.s8 %v1968_v48  ;;  %v1861_v4 = vmul.f32 0.5, %v6501_v41 }
 0x5d8   : > { %v2042_v5 = vsel %vm2041_vm14, %v6635_v27, -inf  ;;  %v1864_v39 = vmul.f32 0.5, %v6503_v47  ;;  %v6645_v6 = vsel %vm2027_vm15, %v1862_v50, -1e+09  ;;  %vm2026_vm4 = vcmp.eq.s32.totalorder %v2000_v35, 1 }
 0x5d9   : > { %v2008_v7 = vrot.slane %v1988_v55, %v6248_v23  ;;  %vm2029_vm5 = vcmp.eq.s32.totalorder %v2012_v54, 1  ;;  %v2020_v10 = vrot.slane %v1991_v61, %v6248_v23  ;;  %v1990_v13 = vsel %vm1982_vm3, 1, %v5779_v21 }
 0x5da   : > { %vm1984_vm6 = vcmp.ne.s32.totalorder %v1976_v0, 0  ;;  %v1863_v60 = vmul.f32 0.5, %v6505_v49  ;;  %v2048_v41 = vsel %vm2041_vm14, %v6645_v6, -inf  ;;  %v6653_v52 = vsel %vm2026_vm4, %v1861_v4, -1e+09 }
 0x5db   : > { %v1866_v47 = vmul.f32 0.5, %v6507_v56  ;;  %v6656_v15 = vsel %vm2029_vm5, %v1864_v39, -1e+09  ;;  %vm2028_vm7 = vcmp.eq.s32.totalorder %v2008_v7, 1  ;;  %v2016_v18 = vrot.slane %v1990_v13, %v6248_v23 }
 0x5dc   : > { %vm2031_vm8 = vcmp.eq.s32.totalorder %v2020_v10, 1  ;;  %v1992_v20 = vsel %vm1984_vm6, 1, %v5779_v21  ;;  %v2045_v22 = vsel %vm2041_vm14, %v6653_v52, -inf  ;;  %v1865_v49 = vmul.f32 0.5, %v6509_v58 }
 0x5dd   : > { %v2054_v25 = vsel %vm2041_vm14, %v6656_v15, -inf  ;;  %v6665_v28 = vsel %vm2028_vm7, %v1863_v60, -1e+09  ;;  %v6667_v56 = vsel %vm2031_vm8, %v1866_v47, -1e+09  ;;  %vm2030_vm9 = vcmp.eq.s32.totalorder %v2016_v18, 1 }
 0x5de   : > { %v2024_v29 = vrot.slane %v1992_v20, %v6248_v23  ;;  %v2051_v17 = vsel %vm2041_vm14, %v6665_v28, -inf  ;;  %v1867_v24 = vmul.f32 0.5, %v6512_v12  ;;  %v2060_v58 = vsel %vm2041_vm14, %v6667_v56, -inf }
 0x5df   : > { %v6675_v38 = vsel %vm2030_vm9, %v1865_v49, -1e+09  ;;  %v2869_v44 = vpack.c.bf16 %v6528_v9, %v6528_v9  ;;  %v2871_v35 = vpack.c.bf16 %v6525_v51, %v6525_v51  ;;  %v2870_v55 = vpack.c.bf16 %v6534_v1, %v6534_v1  ;;  %v3277_v49 = vld [vmem:[%s6174_s23] sm:$0x3]  ;;  %s5785_s23 = smov 96  }
 0x5e0   : > { %vm2032_vm10 = vcmp.eq.s32.totalorder %v2024_v29, 1  ;;  %v2057_v3 = vsel %vm2041_vm14, %v6675_v38, -inf  ;;  %v2872_v7 = vpack.c.bf16 %v6531_v63, %v6531_v63  ;;  %v2875_v60 = vpack.c.bf16 %v6548_v31, %v6548_v31 }
 0x5e1   : > { %v6679_v34 = vsel %vm2032_vm10, %v1867_v24, -1e+09  ;;  %v2874_v47 = vpack.c.bf16 %v6559_v42, %v6559_v42  ;;  %v2876_v20 = vpack.c.bf16 %v6556_v40, %v6556_v40  ;;  %vm3278_vm11 = vnez %v3277_v49 }
 0x5e2   : > { %v2063_v36 = vsel %vm2041_vm14, %v6679_v34, -inf }
 0x5ed   : > { %2043 = vmax.xlane.f32.xlu0 %v2042_v5  ;;  %v2873_v5 = vpack.c.bf16 %v6551_v19, %v6551_v19 }
 0x5f1   : > { %2049 = vmax.xlane.f32.xlu0 %v2048_v41 }
 0x5f4   : > { %2046 = vmax.xlane.f32.xlu1 %v2045_v22  ;;  %v5782_v22 = vmov 12  }
 0x5f5   : > { %2055 = vmax.xlane.f32.xlu0 %v2054_v25  ;;  %5319 = vset.pattern.permute.xlu1 %v5782_v22  ;;  %v3279_v25 = vsel %vm3278_vm11, 16843009, %v5779_v21 }
 0x5f6   : > { %5318 = vset.pattern.permute.xlu0 %v5782_v22  ;;  %v3286_v29 = vrot.slane %v3279_v25, %v6219_v11 }
 0x5f8   : > { %2052 = vmax.xlane.f32.xlu1 %v2051_v17  ;;  %v3306_v17 = vpack.c.b16 %v3286_v29, %v3286_v29  ;;  %v3293_v24 = vshrl.u32 %v3286_v29, 16 }
 0x5f9   : > { %2061 = vmax.xlane.f32.xlu0 %v2060_v58 }
 0x5fa   : > { %v3307_v58 = vpack.c.b8 %v3306_v17, %v3306_v17 }
 0x5fc   : > { %2058 = vmax.xlane.f32.xlu1 %v2057_v3  ;;  %v3291_v3 = vshrl.u32 %v3286_v29, 8  ;;  %vm3322_vm12 = vnez %v3307_v58 }
 0x600   : > { %2064 = vmax.xlane.f32.xlu1 %v2063_v36  ;;  %v3310_v36 = vpack.c.b16 %v3293_v24, %v3293_v24 }
 0x632   : > { %v2879_v37 = vpop.permute.xlu0 %2878 }
 0x633   : > { %v2884_v12 = vsel %vm1354_vm2, %v2879_v37, 0  ;;  %v3308_v37 = vpack.c.b16 %v3291_v3, %v3291_v3 }
 0x634   : > { %v2928_v43 = vpop.permute.xlu1 %2927  ;;  %5065 = vmatpush3.bf16.xpose.msra.mxu0 %v2884_v12  ;;  %v3330_v12 = vsel %vm3322_vm12, 16843009, %v5779_v21 }
 0x635   : > { %5070 = vmatprep.subr.bf16.mxu0 %v5775_v2  ;;  %v2933_v48 = vsel %vm1354_vm2, %v2928_v43, 0  ;;  %v3311_v43 = vpack.c.b8 %v3310_v36, %v3310_v36 }
 0x638   : > { %v3026_v54 = vpop.permute.xlu0 %3025 }
 0x639   : > { %v2977_v45 = vpop.permute.xlu1 %2976  ;;  %v3031_v0 = vsel %vm1354_vm2, %v3026_v54, 0 }
 0x63a   : > { %v2982_v46 = vsel %vm1354_vm2, %v2977_v45, 0  ;;  %v3295_v45 = vshrl.u32 %v3286_v29, 24 }
 0x63b   : > { %5077 = vmatpush3.bf16.xpose.msra.mxu1 %v2982_v46  ;;  %5067 = vmatmul.mubr.msk.bf16.vlgmr.msra.gmra.mrb[24].mxu0 %vm1354_vm2, %v2869_v44  ;;  %v6743_v44 = vcombine.high %v3286_v29, %v3286_v29  ;;  %v3309_v46 = vpack.c.b8 %v3308_v37, %v3308_v37 }
 0x63c   : > { %5071 = vmatpush3.bf16.xpose.msra.mxu0 %v2933_v48  ;;  %5088 = vmatprep.subr.bf16.mxu1 %v5775_v2  ;;  %v3124_v39 = vpop.permute.xlu0 %3123  ;;  %v3338_v48 = vunpack.c.0.s8 %v3330_v12  ;;  %v3312_v11 = vpack.c.b16 %v3295_v45, %v3295_v45 }
 0x63d   : > { %5072 = vmatprep.mubr.msk.bf16.mxu0 %vm5776_vm0, %v5775_v2  ;;  %5082 = vmatprep.subr.bf16.mxu0 %v5775_v2  ;;  %v3075_v50 = vpop.permute.xlu1 %3074  ;;  %v3129_v13 = vsel %vm1354_vm2, %v3124_v39, 0  ;;  %vm3323_vm13 = vnez %v3309_v46 }
 0x63e   : > { %v3080_v61 = vsel %vm1354_vm2, %v3075_v50, 0  ;;  %v3314_v50 = vpack.c.b16 %v6743_v44, %v6743_v44 }
 0x640   : > { %v3222_v41 = vpop.permute.xlu0 %3221 }
 0x641   : > { %v3227_v18 = vsel %vm1354_vm2, %v3222_v41, 0 }
 0x642   : > { %5079 = vmatmul.mubr.msk.bf16.vlgmr.msra.gmra.mrb[36].mxu1 %vm1354_vm2, %v2871_v35  ;;  %v3173_v4 = vpop.permute.xlu1 %3172  ;;  %v3346_v35 = vpack.i.b16 %v3338_v48, %v3338_v48 }
 0x643   : > { %5089 = vmatpush3.bf16.xpose.msra.mxu1 %v3080_v61  ;;  %5073 = vmatmul.mubr.msk.bf16.vlgmr.msra.gmra.mrb[28].mxu0 %vm1354_vm2, %v2870_v55  ;;  %v3178_v10 = vsel %vm1354_vm2, %v3173_v4, 0  ;;  %v3315_v55 = vpack.c.b8 %v3314_v50, %v3314_v50  ;;  %v3302_v61 = vshrl.u32 %v6743_v44, 16  ;;  %v3313_v4 = vpack.c.b8 %v3312_v11, %v3312_v11 }
 0x644   : > { %5083 = vmatpush3.bf16.xpose.msra.mxu0 %v3031_v0  ;;  %5090 = vmatprep.mubr.msk.bf16.mxu1 %vm5776_vm0, %v5775_v2  ;;  %v3331_v0 = vsel %vm3323_vm13, 16843009, %v5779_v21  ;;  %v3347_v39 = vpack.i.b8 %v3346_v35, %v3346_v35 }
 0x645   : > { %5100 = vmatprep.subr.bf16.mxu1 %v5775_v2  ;;  %5084 = vmatprep.mubr.msk.bf16.mxu0 %vm5776_vm0, %v5775_v2  ;;  %vm3326_vm15 = vnez %v3315_v55  ;;  %vm3325_vm3 = vnez %v3313_v4 }
 0x646   : > { %5094 = vmatprep.subr.bf16.mxu0 %v5775_v2  ;;  %vm3362_vm4 = vnez %v3347_v39 }
 0x647   : > { %v3370_v22 = vsel %vm3362_vm4, 16843009, %v5779_v21 }
 0x648   : > { %v3378_v24 = vunpack.c.0.s8 %v3370_v22 }
 0x64a   : > { %5091 = vmatmul.mubr.msk.bf16.vlgmr.msra.gmra.mrb[40].mxu1 %vm1354_vm2, %v2873_v5  ;;  %vm3386_vm8 = vcmp.ne.s32.totalorder %v3378_v24, 0 }
 0x64b   : > { %5101 = vmatpush3.bf16.xpose.msra.mxu1 %v3178_v10  ;;  %5085 = vmatmul.mubr.msk.bf16.vlgmr.msra.gmra.mrb[32].mxu0 %vm1354_vm2, %v2872_v7  ;;  %v3339_v7 = vunpack.c.0.s8 %v3331_v0  ;;  %v3318_v10 = vpack.c.b16 %v3302_v61, %v3302_v61  ;;  %v3394_v11 = vsel %vm3386_vm8, 1, %v5779_v21 }
 0x64c   : > { %5095 = vmatpush3.bf16.xpose.msra.mxu0 %v3129_v13  ;;  %5102 = vmatprep.mubr.msk.bf16.mxu1 %vm5776_vm0, %v5775_v2  ;;  %v3405_v61 = vrot.slane %v3394_v11, %v6248_v23 }
 0x64d   : > { %5096 = vmatprep.mubr.msk.bf16.mxu0 %vm5776_vm0, %v5775_v2  ;;  %5106 = vmatprep.subr.bf16.mxu0 %v5775_v2  ;;  %v3348_v41 = vpack.i.b16 %v3339_v7, %v3339_v7 }
 0x64e   : > { %5112 = vmatprep.subr.bf16.mxu1 %v5775_v2  ;;  %vm3434_vm13 = vcmp.eq.s32.totalorder %v3405_v61, 1 }
 0x64f   : > { %v3349_v17 = vpack.i.b8 %v3348_v41, %v3348_v41 }
 0x651   : > { %vm3363_vm7 = vnez %v3349_v17 }
 0x652   : > { %5103 = vmatmul.mubr.msk.bf16.vlgmr.msra.gmra.mrb[44].mxu1 %vm1354_vm2, %v2875_v60  ;;  %v3334_v60 = vsel %vm3326_vm15, 16843009, %v5779_v21  ;;  %v3371_v48 = vsel %vm3363_vm7, 16843009, %v5779_v21 }
 0x653   : > { %5097 = vmatmul.mubr.msk.bf16.vlgmr.msra.gmra.mrb[36].mxu0 %vm1354_vm2, %v2874_v47  ;;  %5114 = vmatprep.mubr.msk.bf16.mxu1 %vm5776_vm0, %v5775_v2  ;;  %v3333_v47 = vsel %vm3325_vm3, 16843009, %v5779_v21  ;;  %v3342_v25 = vunpack.c.0.s8 %v3334_v60 }
 0x654   : > { %5107 = vmatpush3.bf16.xpose.msra.mxu0 %v3227_v18  ;;  %5108 = vmatprep.mubr.msk.bf16.mxu0 %vm5776_vm0, %v5775_v2  ;;  %v3319_v18 = vpack.c.b8 %v3318_v10, %v3318_v10  ;;  %v3341_v29 = vunpack.c.0.s8 %v3333_v47 }
 0x655   : > { %5118 = vmatprep.subr.bf16.mxu0 %v5775_v2  ;;  %v3354_v3 = vpack.i.b16 %v3342_v25, %v3342_v25 }
 0x656   : > { %vm3328_vm5 = vnez %v3319_v18  ;;  %v3352_v36 = vpack.i.b16 %v3341_v29, %v3341_v29 }
 0x657   : > { %v3336_v37 = vsel %vm3328_vm5, 16843009, %v5779_v21  ;;  %v3355_v45 = vpack.i.b8 %v3354_v3, %v3354_v3 }
 0x658   : > { %v3344_v46 = vunpack.c.0.s8 %v3336_v37  ;;  %v3353_v50 = vpack.i.b8 %v3352_v36, %v3352_v36 }
 0x659   : > { %vm3366_vm10 = vnez %v3355_v45 }
 0x65a   : > { %v3358_v55 = vpack.i.b16 %v3344_v46, %v3344_v46  ;;  %vm3365_vm11 = vnez %v3353_v50  ;;  %v3374_v4 = vsel %vm3366_vm10, 16843009, %v5779_v21 }
 0x65b   : > { %5109 = vmatmul.mubr.msk.bf16.vlgmr.msra.gmra.mrb[40].mxu0 %vm1354_vm2, %v2876_v20  ;;  %vm3324_vm2 = vnez %v3311_v43  ;;  %v3304_v20 = vshrl.u32 %v6743_v44, 24  ;;  %v3382_v47 = vunpack.c.0.s8 %v3374_v4 }
 0x65c   : > { %5120 = vmatprep.mubr.msk.bf16.mxu0 %vm5776_vm0, %v5775_v2  ;;  %v3332_v54 = vsel %vm3324_vm2, 16843009, %v5779_v21  ;;  %v3359_v39 = vpack.i.b8 %v3358_v55, %v3358_v55 }
 0x65d   : > { %v3340_v5 = vunpack.c.0.s8 %v3332_v54  ;;  %v3320_v58 = vpack.c.b16 %v3304_v20, %v3304_v20  ;;  %v3379_v54 = vunpack.c.0.s8 %v3371_v48  ;;  %vm3390_vm3 = vcmp.ne.s32.totalorder %v3382_v47, 0 }
 0x65e   : > { %vm3368_vm15 = vnez %v3359_v39  ;;  %v3398_v45 = vsel %vm3390_vm3, 1, %v5779_v21 }
 0x65f   : > { %v3350_v13 = vpack.i.b16 %v3340_v5, %v3340_v5  ;;  %v3321_v43 = vpack.c.b8 %v3320_v58, %v3320_v58  ;;  %vm3387_vm2 = vcmp.ne.s32.totalorder %v3379_v54, 0  ;;  %v3373_v5 = vsel %vm3365_vm11, 16843009, %v5779_v21 }
 0x660   : > { %v3395_v20 = vsel %vm3387_vm2, 1, %v5779_v21  ;;  %v3381_v22 = vunpack.c.0.s8 %v3373_v5  ;;  %v3376_v3 = vsel %vm3368_vm15, 16843009, %v5779_v21  ;;  %v3421_v39 = vrot.slane %v3398_v45, %v6248_v23 }
 0x661   : > { %v3351_v49 = vpack.i.b8 %v3350_v13, %v3350_v13  ;;  %vm3329_vm9 = vnez %v3321_v43  ;;  %v3409_v58 = vrot.slane %v3395_v20, %v6248_v23  ;;  %v3384_v54 = vunpack.c.0.s8 %v3376_v3 }
 0x662   : > { %v3337_v0 = vsel %vm3329_vm9, 16843009, %v5779_v21  ;;  %vm3389_vm4 = vcmp.ne.s32.totalorder %v3381_v22, 0  ;;  %vm3438_vm9 = vcmp.eq.s32.totalorder %v3421_v39, 1 }
 0x663   : > { %vm3364_vm6 = vnez %v3351_v49  ;;  %v3345_v13 = vunpack.c.0.s8 %v3337_v0  ;;  %vm3392_vm8 = vcmp.ne.s32.totalorder %v3384_v54, 0 }
 0x664   : > { %v3372_v12 = vsel %vm3364_vm6, 16843009, %v5779_v21  ;;  %vm3435_vm6 = vcmp.eq.s32.totalorder %v3409_v58, 1  ;;  %v3400_v22 = vsel %vm3392_vm8, 1, %v5779_v21  ;;  %vm2201_vm8 = vcmask 1044484  }
 0x665   : > { %v3380_v35 = vunpack.c.0.s8 %v3372_v12  ;;  %v3360_v24 = vpack.i.b16 %v3345_v13, %v3345_v13  ;;  %v3429_v45 = vrot.slane %v3400_v22, %v6248_v23 }
 0x667   : > { %vm3388_vm12 = vcmp.ne.s32.totalorder %v3380_v35, 0  ;;  %v3361_v46 = vpack.i.b8 %v3360_v24, %v3360_v24  ;;  %v3397_v35 = vsel %vm3389_vm4, 1, %v5779_v21 }
 0x668   : > { %v3396_v10 = vsel %vm3388_vm12, 1, %v5779_v21  ;;  %vm3440_vm12 = vcmp.eq.s32.totalorder %v3429_v45, 1 }
 0x669   : > { %v3413_v29 = vrot.slane %v3396_v10, %v6248_v23  ;;  %v3417_v10 = vrot.slane %v3397_v35, %v6248_v23  ;;  %vm3369_vm7 = vnez %v3361_v46 }
 0x66b   : > { %vm3436_vm5 = vcmp.eq.s32.totalorder %v3413_v29, 1  ;;  %vm3437_vm10 = vcmp.eq.s32.totalorder %v3417_v10, 1 }
 0x70e   : > { %v2920_v7 = vpop.f32.mrb[24].mxu0 }
 0x70f   : > { %v3269_v60 = vmul.f32 0.5, %v2920_v7  ;;  %v5068_v41 = vpop.f32.mrb[25].mxu0 }
 0x710   : > { %v2923_v18 = vpop.f32.mrb[26].mxu0  ;;  %v3377_v41 = vsel %vm3369_vm7, 16843009, %v5779_v21  ;;  %vm2199_vm7 = vcmask 1043459  }
 0x711   : > { %v5069_v49 = vpop.f32.mrb[27].mxu0  ;;  %v6764_v25 = vsel %vm3434_vm13, %v3269_v60, -1e+09 }
 0x712   : > { %v3450_v17 = vsel %vm2041_vm14, %v6764_v25, -inf }
 0x713   : > { %3451 = vmax.xlane.f32.xlu1 %v3450_v17 }
 0x715   : > { %v3018_v36 = vpop.f32.mrb[36].mxu1 }
 0x716   : > { %v3271_v37 = vmul.f32 0.5, %v3018_v36  ;;  %v5080_v12 = vpop.f32.mrb[37].mxu1  ;;  %v2969_v43 = vpop.f32.mrb[28].mxu0  ;;  %v3385_v36 = vunpack.c.0.s8 %v3377_v41 }
 0x717   : > { %v3270_v48 = vmul.f32 0.5, %v2969_v43  ;;  %v3021_v50 = vpop.f32.mrb[38].mxu1  ;;  %v5074_v11 = vpop.f32.mrb[29].mxu0 }
 0x718   : > { %v5081_v55 = vpop.f32.mrb[39].mxu1  ;;  %v2972_v61 = vpop.f32.mrb[30].mxu0  ;;  %v6773_v0 = vsel %vm3436_vm5, %v3271_v37, -1e+09  ;;  %vm3393_vm11 = vcmp.ne.s32.totalorder %v3385_v36, 0  ;;  %vm2196_vm5 = vcmask 1041409  }
 0x719   : > { %v3456_v4 = vsel %vm2041_vm14, %v6773_v0, -inf  ;;  %v5075_v5 = vpop.f32.mrb[31].mxu0  ;;  %v6778_v7 = vsel %vm3435_vm6, %v3270_v48, -1e+09  ;;  %v3300_v61 = vshrl.u32 %v6743_v44, 8  ;;  %vm2197_vm6 = vcmask 1042434  }
 0x71a   : > { %3457 = vmax.xlane.f32.xlu0 %v3456_v4  ;;  %v3453_v60 = vsel %vm2041_vm14, %v6778_v7, -inf  ;;  %v3401_v4 = vsel %vm3393_vm11, 1, %v5779_v21  ;;  %vm2207_vm11 = vcmask 1047559  }
 0x71b   : > { %v3433_v41 = vrot.slane %v3401_v4, %v6248_v23 }
 0x71d   : > { %v3116_v13 = vpop.f32.mrb[40].mxu1  ;;  %vm3441_vm2 = vcmp.eq.s32.totalorder %v3433_v41, 1 }
 0x71e   : > { %v3273_v47 = vmul.f32 0.5, %v3116_v13  ;;  %v5092_v18 = vpop.f32.mrb[41].mxu1  ;;  %3454 = vmax.xlane.f32.xlu0 %v3453_v60  ;;  %v3067_v20 = vpop.f32.mrb[32].mxu0 }
 0x71f   : > { %v3272_v49 = vmul.f32 0.5, %v3067_v20  ;;  %v3119_v29 = vpop.f32.mrb[42].mxu1  ;;  %v5086_v17 = vpop.f32.mrb[33].mxu0 }
 0x720   : > { %v5093_v24 = vpop.f32.mrb[43].mxu1  ;;  %v3070_v58 = vpop.f32.mrb[34].mxu0  ;;  %v6785_v3 = vsel %vm3438_vm9, %v3273_v47, -1e+09  ;;  %v3316_v47 = vpack.c.b16 %v3300_v61, %v3300_v61  ;;  %vm2203_vm9 = vcmask 1045509  }
 0x721   : > { %v3462_v37 = vsel %vm2041_vm14, %v6785_v3, -inf  ;;  %v5087_v12 = vpop.f32.mrb[35].mxu0  ;;  %v6789_v43 = vsel %vm3437_vm10, %v3272_v49, -1e+09  ;;  %vm2205_vm10 = vcmask 1046534  }
 0x722   : > { %3463 = vmax.xlane.f32.xlu0 %v3462_v37  ;;  %v3459_v46 = vsel %vm2041_vm14, %v6789_v43, -inf  ;;  %v3317_v49 = vpack.c.b8 %v3316_v47, %v3316_v47  ;;  %v2044_v37 = vpop.xlane.xlu0 %2043 }
 0x723   : > { %3460 = vmax.xlane.f32.xlu1 %v3459_v46  ;;  %v2047_v46 = vpop.xlane.xlu1 %2046 }
 0x724   : > { %vm3327_vm13 = vnez %v3317_v49 }
 0x725   : > { %v3214_v48 = vpop.f32.mrb[44].mxu1  ;;  %v3335_v24 = vsel %vm3327_vm13, 16843009, %v5779_v21  ;;  %vm3928_vm13 = vcmask 1043456  }
 0x726   : > { %v3275_v50 = vmul.f32 0.5, %v3214_v48  ;;  %v5104_v11 = vpop.f32.mrb[45].mxu1  ;;  %v3165_v35 = vpop.f32.mrb[36].mxu0  ;;  %v3343_v58 = vunpack.c.0.s8 %v3335_v24 }
 0x727   : > { %v3217_v54 = vpop.f32.mrb[46].mxu1  ;;  %v5098_v55 = vpop.f32.mrb[37].mxu0 }
 0x728   : > { %v5105_v5 = vpop.f32.mrb[47].mxu1  ;;  %v3168_v39 = vpop.f32.mrb[38].mxu0  ;;  %v6796_v10 = vsel %vm3440_vm12, %v3275_v50, -1e+09  ;;  %v3356_v36 = vpack.i.b16 %v3343_v58, %v3343_v58  ;;  %v2067_v50 = vsub.f32 %v6653_v52, %v2047_v46  ;;  %v3274_v52 = vmul.f32 0.5, %v3165_v35 }
 0x729   : > { %v3468_v13 = vsel %vm2041_vm14, %v6796_v10, -inf  ;;  %v5099_v60 = vpop.f32.mrb[39].mxu0  ;;  %v2050_v45 = vpop.xlane.xlu0 %2049 }
 0x72a   : > { %3469 = vmax.xlane.f32.xlu0 %v3468_v13  ;;  %v3357_v12 = vpack.i.b8 %v3356_v36, %v3356_v36  ;;  %v2068_v54 = vsub.f32 %v6645_v6, %v2050_v45 }
 0x72c   : > { %vm3367_vm15 = vnez %v3357_v12  ;;  %v2078_v55 = vmul.f32 1.442695, %v2068_v54 }
 0x72d   : > { %v3375_v48 = vsel %vm3367_vm15, 16843009, %v5779_v21  ;;  %v2056_v11 = vpop.xlane.xlu0 %2055 }
 0x72e   : > { %v3263_v18 = vpop.f32.mrb[40].mxu0 }
 0x72f   : > { %v3276_v20 = vmul.f32 0.5, %v3263_v18  ;;  %v5110_v22 = vpop.f32.mrb[41].mxu0 }
 0x730   : > { %v3266_v44 = vpop.f32.mrb[42].mxu0 }
 0x731   : > { %v5111_v29 = vpop.f32.mrb[43].mxu0  ;;  %v6801_v17 = vsel %vm3441_vm2, %v3276_v20, -1e+09  ;;  %v2062_v61 = vpop.xlane.xlu0 %2061 }
 0x732   : > { %v2072_v5 = vsub.f32 %v6667_v56, %v2062_v61  ;;  %v3471_v18 = vsel %vm2041_vm14, %v6801_v17, -inf  ;;  %v2053_v44 = vpop.xlane.xlu1 %2052  ;;  %v2066_v29 = vsub.f32 %v6635_v27, %v2044_v37 }
 0x733   : > { %v2069_v58 = vsub.f32 %v6665_v28, %v2053_v44 }
 0x734   : > { %3550 = vperm.xlu1 %5319, %v6534_v1   ;;  %v3383_v1 = vunpack.c.0.s8 %v3375_v48  ;;  %v2086_v13 = vmul.f32 1.442695, %v2072_v5  ;;  %v2074_v24 = vmul.f32 1.442695, %v2066_v29 }
 0x735   : > { %v2080_v12 = vmul.f32 1.442695, %v2069_v58 }
 0x736   : > { %vm3391_vm3 = vcmp.ne.s32.totalorder %v3383_v1, 0  ;;  %v2059_v36 = vpop.xlane.xlu1 %2058 }
 0x737   : > { %v2071_v45 = vsub.f32 %v6675_v38, %v2059_v36 }
 0x738   : > { %3553 = vperm.xlu1 %5319, %v6525_v51   ;;  %v2076_v51 = vmul.f32 1.442695, %v2067_v50 }
 0x739   : > { %v2084_v46 = vmul.f32 1.442695, %v2071_v45  ;;  %v3774_v45 = vld [vmem:[#allocation16] sm:$0x1] }
 0x73a   : > { %5402 = vpow2.f32 %v2076_v51 }
 0x73b   : > { %5404 = vpow2.f32 %v2078_v55 }
 0x73c   : > { %3556 = vperm.xlu1 %5319, %v6531_v63   ;;  %v2070_v63 = vsub.f32 %v6656_v15, %v2056_v11 }
 0x73e   : > { %v2082_v4 = vmul.f32 1.442695, %v2070_v63 }
 0x740   : > { %3547 = vperm.xlu0 %5318, %v6528_v9   ;;  %v3399_v9 = vsel %vm3391_vm3, 1, %v5779_v21  ;;  %5406 = vpow2.f32 %v2082_v4 }
 0x741   : > { %v3425_v39 = vrot.slane %v3399_v9, %v6248_v23  ;;  %5408 = vpow2.f32 %v2086_v13 }
 0x742   : > { %5410 = vpow2.f32 %v2074_v24 }
 0x743   : > { %vm3439_vm4 = vcmp.eq.s32.totalorder %v3425_v39, 1  ;;  %5412 = vpow2.f32 %v2080_v12  ;;  %v849_v12 = vsel %vm847_vm1, %v6230_v16, 0 }
 0x744   : > { %v6815_v6 = vpop.eup %5402  ;;  %v6817_v60 = vsel %vm3439_vm4, %v3274_v52, -1e+09  ;;  %5414 = vpow2.f32 %v2084_v46  ;;  %5113 = vmatpush3.bf16.xpose.msra.mxu1 %v849_v12  ;;  %v3775_v46 = vpack.c.bf16 %v3774_v45, %v3774_v45 }
 0x745   : > { %v2093_v15 = vsel %vm2041_vm14, %v6815_v6, 0.0  ;;  %v6821_v41 = vpop.eup %5404  ;;  %v3465_v56 = vsel %vm2041_vm14, %v6817_v60, -inf  ;;  %5124 = vmatprep.subr.bf16.mxu1 %v5775_v2 }
 0x746   : > { %v2096_v35 = vsel %vm2041_vm14, %v6821_v41, 0.0 }
 0x74a   : > { %v6827_v47 = vpop.eup %5406 }
 0x74b   : > { %v2102_v20 = vsel %vm2041_vm14, %v6827_v47, 0.0  ;;  %v6833_v22 = vpop.eup %5408 }
 0x74c   : > { %v2108_v49 = vsel %vm2041_vm14, %v6833_v22, 0.0 }
 0x75f   : > { %2094 = vadd.xlane.f32.xlu0 %v2093_v15 }
 0x760   : > { %3466 = vmax.xlane.f32.xlu1 %v3465_v56 }
 0x763   : > { %2097 = vadd.xlane.f32.xlu0 %v2096_v35 }
 0x764   : > { %3472 = vmax.xlane.f32.xlu1 %v3471_v18 }
 0x767   : > { %2103 = vadd.xlane.f32.xlu0 %v2102_v20 }
 0x76b   : > { %2109 = vadd.xlane.f32.xlu0 %v2108_v49 }
 0x775   : > { %3559 = vperm.xlu1 %5319, %v6551_v19   ;;  %v6844_v19 = vpop.xlane.xlu1 %2064 }
 0x779   : > { %3562 = vperm.xlu1 %5319, %v6559_v42   ;;  %v6846_v42 = vpop.eup %5410 }
 0x77a   : > { %v6850_v27 = vpop.eup %5412 }
 0x77b   : > { %v2099_v38 = vsel %vm2041_vm14, %v6850_v27, 0.0  ;;  %v6856_v50 = vpop.eup %5414 }
 0x77c   : > { %v2105_v55 = vsel %vm2041_vm14, %v6856_v50, 0.0 }
 0x77d   : > { %3565 = vperm.xlu1 %5319, %v6548_v31  }
 0x781   : > { %3568 = vperm.xlu1 %5319, %v6556_v40   ;;  %v2090_v40 = vsel %vm2041_vm14, %v6846_v42, 0.0 }
 0x7a0   : > { %v3452_v31 = vpop.xlane.xlu1 %3451 }
 0x7a1   : > { %v3474_v28 = vsub.f32 %v6764_v25, %v3452_v31 }
 0x7a3   : > { %v3482_v1 = vmul.f32 1.442695, %v3474_v28 }
 0x7a5   : > { %2091 = vadd.xlane.f32.xlu1 %v2090_v40 }
 0x7a7   : > { %v3458_v37 = vpop.xlane.xlu0 %3457 }
 0x7a8   : > { %v3476_v48 = vsub.f32 %v6773_v0, %v3458_v37 }
 0x7a9   : > { %2100 = vadd.xlane.f32.xlu1 %v2099_v38 }
 0x7aa   : > { %v3486_v11 = vmul.f32 1.442695, %v3476_v48 }
 0x7ab   : > { %v3455_v54 = vpop.xlane.xlu0 %3454 }
 0x7ac   : > { %5416 = vpow2.f32 %v3486_v11  ;;  %v3475_v51 = vsub.f32 %v6778_v7, %v3455_v54 }
 0x7ad   : > { %2106 = vadd.xlane.f32.xlu1 %v2105_v55  ;;  %5418 = vpow2.f32 %v3482_v1 }
 0x7ae   : > { %v3484_v25 = vmul.f32 1.442695, %v3475_v51 }
 0x7af   : > { %v3464_v63 = vpop.xlane.xlu0 %3463 }
 0x7b0   : > { %5420 = vpow2.f32 %v3484_v25  ;;  %v3478_v0 = vsub.f32 %v6785_v3, %v3464_v63  ;;  %v3461_v61 = vpop.xlane.xlu1 %3460 }
 0x7b1   : > { %v3477_v9 = vsub.f32 %v6789_v43, %v3461_v61 }
 0x7b2   : > { %v3490_v4 = vmul.f32 1.442695, %v3478_v0 }
 0x7b3   : > { %v3488_v5 = vmul.f32 1.442695, %v3477_v9 }
 0x7b4   : > { %5422 = vpow2.f32 %v3490_v4  ;;  %v6888_v24 = vpop.permute.xlu1 %3550 }
 0x7b5   : > { %5424 = vpow2.f32 %v3488_v5  ;;  %v3577_v12 = vrot.slane %v6888_v24, %v6197_v8 }
 0x7b6   : > { %v6863_v39 = vpop.eup %5416 }
 0x7b7   : > { %v3470_v7 = vpop.xlane.xlu0 %3469  ;;  %v3504_v52 = vsel %vm2041_vm14, %v6863_v39, 0.0  ;;  %v6867_v13 = vpop.eup %5418 }
 0x7b8   : > { %v3480_v15 = vsub.f32 %v6796_v10, %v3470_v7  ;;  %3505 = vadd.xlane.f32.xlu0 %v3504_v52  ;;  %v3498_v43 = vsel %vm2041_vm14, %v6867_v13, 0.0  ;;  %v6892_v58 = vpop.permute.xlu1 %3553 }
 0x7ba   : > { %v6870_v56 = vpop.eup %5420  ;;  %v3494_v3 = vmul.f32 1.442695, %v3480_v15 }
 0x7bb   : > { %v3501_v35 = vsel %vm2041_vm14, %v6870_v56, 0.0 }
 0x7bc   : > { %5426 = vpow2.f32 %v3494_v3  ;;  %3499 = vadd.xlane.f32.xlu0 %v3498_v43  ;;  %3502 = vadd.xlane.f32.xlu1 %v3501_v35  ;;  %v6895_v36 = vpop.permute.xlu1 %3556  ;;  %v3581_v43 = vrot.slane %v6892_v58, %v6197_v8 }
 0x7be   : > { %v6876_v18 = vpop.eup %5422 }
 0x7bf   : > { %v6878_v20 = vpop.eup %5424  ;;  %v3510_v10 = vsel %vm2041_vm14, %v6876_v18, 0.0  ;;  %v3548_v55 = vpop.permute.xlu0 %3547 }
 0x7c0   : > { %3511 = vadd.xlane.f32.xlu0 %v3510_v10  ;;  %v3507_v49 = vsel %vm2041_vm14, %v6878_v20, 0.0 }
 0x7c1   : > { %3508 = vadd.xlane.f32.xlu1 %v3507_v49 }
 0x7c6   : > { %v6884_v44 = vpop.eup %5426 }
 0x7c7   : > { %v3516_v29 = vsel %vm2041_vm14, %v6884_v44, 0.0 }
 0x7c8   : > { %3517 = vadd.xlane.f32.xlu0 %v3516_v29 }
 0x7de   : > { %2139 = vperm.xlu0 %5318, %v6319_v57   ;;  %v3777_v57 = vpack.i.b16 %v3775_v46, %v3775_v46 }
 0x7e0   : > { %v3782_v40 = vrot.slane %v3777_v57, %v6248_v23  ;;  %v3573_v57 = vrot.slane %v3548_v55, %v6197_v8 }
 0x7e2   : > { %2148 = vperm.xlu0 %5318, %v6321_v59  }
 0x7e6   : > { %2154 = vperm.xlu0 %5318, %v6346_v33   ;;  %v2073_v33 = vsub.f32 %v6679_v34, %v6844_v19 }
 0x7e8   : > { %v2088_v38 = vmul.f32 1.442695, %v2073_v33 }
 0x7ea   : > { %2160 = vperm.xlu0 %5318, %v6344_v32   ;;  %v3783_v32 = vmul.bf16 %v3782_v40, %v6225_v14 }
 0x7ec   : > { %5115 = vmatmul.mubr.msk.bf16.vlgmr.msra.gmra.mrb[48].mxu1 %vm847_vm1, %v3783_v32  ;;  %v6928_v25 = vpop.xlane.xlu0 %2094  ;;  %v3585_v32 = vrot.slane %v6895_v36, %v6197_v8 }
 0x7ed   : > { %v3467_v31 = vpop.xlane.xlu1 %3466  ;;  %5126 = vmatprep.mubr.msk.bf16.mxu1 %vm5776_vm0, %v5775_v2 }
 0x7ee   : > { %v3479_v59 = vsub.f32 %v6817_v60, %v3467_v31 }
 0x7f0   : > { %v3492_v28 = vmul.f32 1.442695, %v3479_v59  ;;  %v6930_v0 = vpop.xlane.xlu0 %2097 }
 0x7f1   : > { %v3473_v37 = vpop.xlane.xlu1 %3472 }
 0x7f2   : > { %5428 = vpow2.f32 %v3492_v28  ;;  %v3481_v48 = vsub.f32 %v6801_v17, %v3473_v37 }
 0x7f4   : > { %v3496_v1 = vmul.f32 1.442695, %v3481_v48  ;;  %v6934_v4 = vpop.xlane.xlu0 %2103 }
 0x7f5   : > { %v3560_v54 = vpop.permute.xlu1 %3559 }
 0x7f6   : > { %5430 = vpow2.f32 %v3496_v1  ;;  %v3589_v28 = vrot.slane %v3560_v54, %v6197_v8 }
 0x7f7   : > { %5432 = vpow2.f32 %v2088_v38 }
 0x7f9   : > { %v6926_v51 = vpop.permute.xlu1 %3562 }
 0x7fc   : > { %v6910_v23 = vpop.eup %5428 }
 0x7fd   : > { %v3513_v34 = vsel %vm2041_vm14, %v6910_v23, 0.0  ;;  %v3566_v63 = vpop.permute.xlu1 %3565 }
 0x7fe   : > { %3514 = vadd.xlane.f32.xlu1 %v3513_v34  ;;  %v3597_v54 = vrot.slane %v3566_v63, %v6197_v8 }
 0x800   : > { %v6914_v60 = vpop.eup %5430 }
 0x801   : > { %v3519_v17 = vsel %vm2041_vm14, %v6914_v60, 0.0  ;;  %v6918_v19 = vpop.eup %5432  ;;  %v6932_v61 = vpop.permute.xlu1 %3568 }
 0x802   : > { %3520 = vadd.xlane.f32.xlu1 %v3519_v17  ;;  %v2111_v11 = vsel %vm2041_vm14, %v6918_v19, 0.0 }
 0x806   : > { %2112 = vadd.xlane.f32.xlu1 %v2111_v11 }
 0x817   : > { %2142 = vperm.xlu1 %5319, %v6325_v62  }
 0x81b   : > { %2145 = vperm.xlu1 %5319, %v6317_v53   ;;  %v6938_v53 = vpop.xlane.xlu0 %2109 }
 0x81f   : > { %2151 = vperm.xlu1 %5319, %v6341_v30  }
 0x823   : > { %2157 = vperm.xlu1 %5319, %v6339_v26  }
 0x832   : > { %v2092_v9 = vpop.xlane.xlu1 %2091 }
 0x836   : > { %v6936_v62 = vpop.xlane.xlu1 %2100 }
 0x83a   : > { %v6940_v30 = vpop.xlane.xlu1 %2106 }
 0x845   : > { %v3506_v26 = vpop.xlane.xlu0 %3505 }
 0x846   : > { %5434 = vrcp.f32 %v3506_v26 }
 0x849   : > { %v3503_v5 = vpop.xlane.xlu1 %3502  ;;  %v3500_v7 = vpop.xlane.xlu0 %3499 }
 0x84a   : > { %5436 = vrcp.f32 %v3503_v5 }
 0x84b   : > { %5438 = vrcp.f32 %v3500_v7 }
 0x84d   : > { %v3512_v52 = vpop.xlane.xlu0 %3511 }
 0x84e   : > { %5440 = vrcp.f32 %v3512_v52  ;;  %v3509_v15 = vpop.xlane.xlu1 %3508 }
 0x84f   : > { %5442 = vrcp.f32 %v3509_v15  ;;  %v3593_v15 = vrot.slane %v6926_v51, %v6197_v8 }
 0x850   : > { %v5435_v3 = vpop.eup %5434  ;;  %5444 = vrcp.f32 %v2092_v9 }
 0x851   : > { %v3532_v35 = vmul.f32 %v5435_v3, %v6863_v39 }
 0x853   : > { %v3660_v10 = vmul.f32 %v3581_v43, %v3532_v35 }
 0x854   : > { %v5437_v49 = vpop.eup %5436 }
 0x855   : > { %v5439_v29 = vpop.eup %5438  ;;  %v3518_v45 = vpop.xlane.xlu0 %3517  ;;  %v3672_v46 = vsel %vm2041_vm14, %v3660_v10, 0.0  ;;  %v3531_v31 = vmul.f32 %v5437_v49, %v6870_v56 }
 0x856   : > { %5446 = vrcp.f32 %v3518_v45  ;;  %3673 = vadd.xlane.f32.xlu0 %v3672_v46  ;;  %v3530_v58 = vmul.f32 %v5439_v29, %v6867_v13 }
 0x857   : > { %v3659_v59 = vmul.f32 %v3577_v12, %v3531_v31 }
 0x858   : > { %v5441_v39 = vpop.eup %5440  ;;  %v3658_v40 = vmul.f32 %v3573_v57, %v3530_v58 }
 0x859   : > { %v5443_v33 = vpop.eup %5442  ;;  %v3669_v24 = vsel %vm2041_vm14, %v3659_v59, 0.0  ;;  %v3534_v37 = vmul.f32 %v5441_v39, %v6876_v18 }
 0x85a   : > { %3670 = vadd.xlane.f32.xlu0 %v3669_v24  ;;  %v3666_v56 = vsel %vm2041_vm14, %v3658_v40, 0.0  ;;  %v3533_v48 = vmul.f32 %v5443_v33, %v6878_v20  ;;  %v5445_v11 = vpop.eup %5444 }
 0x85b   : > { %3667 = vadd.xlane.f32.xlu1 %v3666_v56  ;;  %v3662_v13 = vmul.f32 %v3589_v28, %v3534_v37  ;;  %v2122_v20 = vmul.f32 %v5445_v11, %v6846_v42 }
 0x85c   : > { %v3661_v38 = vmul.f32 %v3585_v32, %v3533_v48 }
 0x85d   : > { %v3678_v1 = vsel %vm2041_vm14, %v3662_v13, 0.0  ;;  %v2140_v34 = vpop.permute.xlu0 %2139 }
 0x85e   : > { %3679 = vadd.xlane.f32.xlu0 %v3678_v1  ;;  %v3675_v17 = vsel %vm2041_vm14, %v3661_v38, 0.0  ;;  %v2167_v36 = vrot.slane %v2140_v34, %v6197_v8  ;;  %v4852_v38 = vld [vmem:[#allocation13] ss:$0 sm:$0xff] }
 0x85f   : > { %3676 = vadd.xlane.f32.xlu1 %v3675_v17 }
 0x860   : > { %v5447_v18 = vpop.eup %5446  ;;  %v2259_v26 = vmul.f32 %v2167_v36, %v2122_v20 }
 0x861   : > { %v3536_v55 = vmul.f32 %v5447_v18, %v6884_v44  ;;  %v2149_v49 = vpop.permute.xlu0 %2148 }
 0x862   : > { %v2267_v7 = vsel %vm2041_vm14, %v2259_v26, 0.0 }
 0x863   : > { %v3664_v9 = vmul.f32 %v3597_v54, %v3536_v55  ;;  %v6996_v54 = vld [vmem:[%s6202_s12] sm:$0xff] }
 0x864   : > { %v3757_v36 = vmul.f32 %v6996_v54, %v4852_v38 }
 0x865   : > { %v3684_v5 = vsel %vm2041_vm14, %v3664_v9, 0.0  ;;  %v2155_v40 = vpop.permute.xlu0 %2154 }
 0x866   : > { %3685 = vadd.xlane.f32.xlu0 %v3684_v5  ;;  %v2187_v56 = vrot.slane %v2155_v40, %v6197_v8  ;;  %v4851_v5 = vld [vmem:[#allocation14] ss:$0 sm:$0xff] }
 0x869   : > { %v2161_v11 = vpop.permute.xlu0 %2160 }
 0x86a   : > { %2268 = vadd.xlane.f32.xlu0 %v2267_v7  ;;  %v2195_v26 = vrot.slane %v2161_v11, %v6197_v8 }
 0x88b   : > { %v3515_v52 = vpop.xlane.xlu1 %3514 }
 0x88c   : > { %5448 = vrcp.f32 %v3515_v52 }
 0x88d   : > { %5450 = vrcp.f32 %v6928_v25 }
 0x88e   : > { %5452 = vrcp.f32 %v6930_v0 }
 0x88f   : > { %v3521_v63 = vpop.xlane.xlu1 %3520 }
 0x890   : > { %5454 = vrcp.f32 %v3521_v63  ;;  %v7006_v63 = vld [vmem:[%s6207_s21] sm:$0xff] }
 0x891   : > { %5456 = vrcp.f32 %v6934_v4  ;;  %v3601_v4 = vrot.slane %v6932_v61, %v6197_v8  ;;  %v2179_v61 = vrot.slane %v2149_v49, %v6197_v8 }
 0x892   : > { %5458 = vrcp.f32 %v6936_v62 }
 0x893   : > { %v2113_v44 = vpop.xlane.xlu1 %2112  ;;  %5460 = vrcp.f32 %v6938_v53 }
 0x894   : > { %5462 = vrcp.f32 %v6940_v30 }
 0x895   : > { %5464 = vrcp.f32 %v2113_v44  ;;  %v3746_v44 = vmul.f32 %v7006_v63, %v4851_v5 }
 0x896   : > { %v5449_v42 = vpop.eup %5448 }
 0x897   : > { %v2143_v3 = vpop.permute.xlu1 %2142  ;;  %v3535_v43 = vmul.f32 %v5449_v42, %v6910_v23  ;;  %v5451_v35 = vpop.eup %5450  ;;  %v3747_v42 = vsel %vm847_vm1, %v3746_v44, 0.0 }
 0x898   : > { %v5453_v25 = vpop.eup %5452  ;;  %v2171_v62 = vrot.slane %v2143_v3, %v6197_v8  ;;  %v2123_v45 = vmul.f32 %v5451_v35, %v6815_v6 }
 0x899   : > { %v3663_v0 = vmul.f32 %v3593_v15, %v3535_v43  ;;  %v2124_v23 = vmul.f32 %v5453_v25, %v6821_v41 }
 0x89a   : > { %v5455_v10 = vpop.eup %5454  ;;  %v2260_v58 = vmul.f32 %v2171_v62, %v2123_v45 }
 0x89b   : > { %v2146_v53 = vpop.permute.xlu1 %2145  ;;  %v3681_v29 = vsel %vm2041_vm14, %v3663_v0, 0.0  ;;  %v3537_v51 = vmul.f32 %v5455_v10, %v6914_v60  ;;  %v5457_v30 = vpop.eup %5456 }
 0x89c   : > { %v2175_v12 = vrot.slane %v2146_v53, %v6197_v8  ;;  %3682 = vadd.xlane.f32.xlu1 %v3681_v29  ;;  %v5459_v31 = vpop.eup %5458  ;;  %v2126_v60 = vmul.f32 %v5457_v30, %v6827_v47  ;;  %v2270_v13 = vsel %vm2041_vm14, %v2260_v58, 0.0 }
 0x89d   : > { %v3665_v46 = vmul.f32 %v3601_v4, %v3537_v51  ;;  %v5461_v28 = vpop.eup %5460  ;;  %v2125_v6 = vmul.f32 %v5459_v31, %v6850_v27 }
 0x89e   : > { %v2261_v57 = vmul.f32 %v2175_v12, %v2124_v23  ;;  %v5463_v24 = vpop.eup %5462  ;;  %v2128_v1 = vmul.f32 %v5461_v28, %v6833_v22 }
 0x89f   : > { %v2152_v59 = vpop.permute.xlu1 %2151  ;;  %v3687_v39 = vsel %vm2041_vm14, %v3665_v46, 0.0  ;;  %v2262_v32 = vmul.f32 %v2179_v61, %v2125_v6  ;;  %v5465_v47 = vpop.eup %5464  ;;  %v2127_v27 = vmul.f32 %v5463_v24, %v6856_v50  ;;  %v3758_v50 = vsel %vm847_vm1, %v3757_v36, 0.0 }
 0x8a0   : > { %v2183_v41 = vrot.slane %v2152_v59, %v6197_v8  ;;  %3688 = vadd.xlane.f32.xlu1 %v3687_v39  ;;  %v2273_v33 = vsel %vm2041_vm14, %v2261_v57, 0.0  ;;  %v2129_v22 = vmul.f32 %v5465_v47, %v6918_v19 }
 0x8a1   : > { %2274 = vadd.xlane.f32.xlu0 %v2273_v33  ;;  %v2264_v55 = vmul.f32 %v2187_v56, %v2127_v27  ;;  %v2276_v20 = vsel %vm2041_vm14, %v2262_v32, 0.0 }
 0x8a2   : > { %v2263_v37 = vmul.f32 %v2183_v41, %v2126_v60  ;;  %v2266_v52 = vmul.f32 %v2195_v26, %v2129_v22 }
 0x8a3   : > { %v2158_v48 = vpop.permute.xlu1 %2157  ;;  %v2282_v7 = vsel %vm2041_vm14, %v2264_v55, 0.0 }
 0x8a4   : > { %v2191_v34 = vrot.slane %v2158_v48, %v6197_v8  ;;  %2271 = vadd.xlane.f32.xlu1 %v2270_v13  ;;  %v2279_v17 = vsel %vm2041_vm14, %v2263_v37, 0.0  ;;  %v2288_v19 = vsel %vm2041_vm14, %v2266_v52, 0.0  ;;  %v3828_v52 = vld [vmem:[%s6167_s22] sm:$0x3]  ;;  %s7290_s22 = sld [smem:[#allocation38_spill]] }
 0x8a5   : > { %2280 = vadd.xlane.f32.xlu0 %v2279_v17  ;;  %vm3829_vm12 = vnez %v3828_v52 }
 0x8a6   : > { %v2265_v18 = vmul.f32 %v2191_v34, %v2128_v1 }
 0x8a8   : > { %2277 = vadd.xlane.f32.xlu1 %v2276_v20  ;;  %v2285_v9 = vsel %vm2041_vm14, %v2265_v18, 0.0 }
 0x8a9   : > { %2286 = vadd.xlane.f32.xlu0 %v2285_v9 }
 0x8ac   : > { %2283 = vadd.xlane.f32.xlu1 %v2282_v7 }
 0x8ad   : > { %3759 = vadd.xlane.f32.xlu0 %v3758_v50 }
 0x8b0   : > { %2289 = vadd.xlane.f32.xlu1 %v2288_v19 }
 0x8b4   : > { %3748 = vadd.xlane.f32.xlu1 %v3747_v42  ;;  %v3866_v42 = vsel %vm3829_vm12, 16843009, %v5779_v21 }
 0x8bf   : > { %v7011_v15 = vpop.f32.mrb[48].mxu1 }
 0x8c0   : > { %v5116_v3 = vpop.f32.mrb[49].mxu1 }
 0x8c1   : > { %v3824_v43 = vpop.f32.mrb[50].mxu1 }
 0x8c2   : > { %v5117_v35 = vpop.f32.mrb[51].mxu1 }
 0x8c3   : > { %v3867_v35 = vunpack.c.0.s8 %v3866_v42 }
 0x8c5   : > { %vm3868_vm2 = vcmp.ne.s32.totalorder %v3867_v35, 0 }
 0x8e3   : > { %v3674_v25 = vpop.xlane.xlu0 %3673 }
 0x8e4   : > { %v3709_v12 = vrot.slane %v3674_v25, %v6197_v8 }
 0x8e7   : > { %v3671_v0 = vpop.xlane.xlu0 %3670 }
 0x8e8   : > { %v3668_v10 = vpop.xlane.xlu1 %3667  ;;  %v3705_v4 = vrot.slane %v3671_v0, %v6197_v8 }
 0x8e9   : > { %v3701_v49 = vrot.slane %v3668_v10, %v6197_v8 }
 0x8eb   : > { %v3680_v62 = vpop.xlane.xlu0 %3679  ;;  %v3730_v29 = vsel %vm2196_vm5, %v3705_v4, %v3701_v49 }
 0x8ec   : > { %v3677_v53 = vpop.xlane.xlu1 %3676  ;;  %v3731_v30 = vsel %vm2197_vm6, %v3709_v12, %v3730_v29  ;;  %v3717_v46 = vrot.slane %v3680_v62, %v6197_v8 }
 0x8ed   : > { %v3713_v51 = vrot.slane %v3677_v53, %v6197_v8 }
 0x8ef   : > { %v3732_v45 = vsel %vm2199_vm7, %v3713_v51, %v3731_v30 }
 0x8f0   : > { %v3733_v58 = vsel %vm2201_vm8, %v3717_v46, %v3732_v45 }
 0x8f3   : > { %v3686_v23 = vpop.xlane.xlu0 %3685 }
 0x8f4   : > { %v3725_v39 = vrot.slane %v3686_v23, %v6197_v8  ;;  %v3929_v23 = vsel %vm3928_vm13, %v6230_v16, 0 }
 0x8f5   : > { %5119 = vmatpush3.bf16.msra.mxu0 %v3929_v23 }
 0x8f6   : > { %5130 = vmatprep.subr.bf16.mxu0 %v5775_v2 }
 0x8f7   : > { %v2269_v57 = vpop.xlane.xlu0 %2268 }
 0x8f8   : > { %v2302_v24 = vrot.slane %v2269_v57, %v6197_v8 }
 0x929   : > { %v3683_v31 = vpop.xlane.xlu1 %3682 }
 0x92a   : > { %v3721_v61 = vrot.slane %v3683_v31, %v6197_v8 }
 0x92c   : > { %v3734_v59 = vsel %vm2203_vm9, %v3721_v61, %v3733_v58 }
 0x92d   : > { %v3689_v40 = vpop.xlane.xlu1 %3688  ;;  %v3735_v33 = vsel %vm2205_vm10, %v3725_v39, %v3734_v59  ;;  %v3975_v59 = vsel %vm3928_vm13, %v6225_v14, 0 }
 0x92e   : > { %v3729_v60 = vrot.slane %v3689_v40, %v6197_v8  ;;  %v2275_v41 = vpop.xlane.xlu0 %2274  ;;  %5125 = vmatpush3.bf16.msra.mxu1 %v3975_v59  ;;  %v5326_v40 = vld [vmem:[%s7220_s14] sm:$0xff]  }
 0x92f   : > { %v2310_v48 = vrot.slane %v2275_v41, %v6197_v8  ;;  %5138 = vmatprep.subr.bf16.mxu1 %v5775_v2 }
 0x930   : > { %v3736_v28 = vsel %vm2207_vm11, %v3729_v60, %v3735_v33  ;;  %v5328_v60 = vld [vmem:[%s7220_s14 + $0x8] sm:$0xff]  }
 0x931   : > { %3738 = vst.msk [vmem:[#allocation3] sm:$0xff] %vm2041_vm14, %v3736_v28  ;;  %v2272_v6 = vpop.xlane.xlu1 %2271 }
 0x932   : > { %v2306_v37 = vrot.slane %v2272_v6, %v6197_v8  ;;  %v2281_v56 = vpop.xlane.xlu0 %2280  ;;  %v5327_v6 = vld [vmem:[%s7219_s13] sm:$0xff]  }
 0x933   : > { %v2318_v17 = vrot.slane %v2281_v56, %v6197_v8 }
 0x934   : > { %v2331_v32 = vsel %vm2196_vm5, %v2306_v37, %v2302_v24  ;;  %v5329_v37 = vld [vmem:[%s7219_s13 + $0x8] sm:$0xff]  }
 0x935   : > { %v2278_v13 = vpop.xlane.xlu1 %2277  ;;  %v2332_v47 = vsel %vm2197_vm6, %v2310_v48, %v2331_v32  ;;  %v5332_v32 = vld [vmem:[%s7224_s18] sm:$0xff]  }
 0x936   : > { %v2314_v38 = vrot.slane %v2278_v13, %v6197_v8  ;;  %v2287_v11 = vpop.xlane.xlu0 %2286  ;;  %v5330_v48 = vld [vmem:[%s7221_s15] sm:$0xff]  }
 0x937   : > { %v2326_v20 = vrot.slane %v2287_v11, %v6197_v8 }
 0x938   : > { %v2333_v1 = vsel %vm2199_vm7, %v2314_v38, %v2332_v47  ;;  %v3832_v34 = vld [vmem:[#allocation3] sm:$0xff] }
 0x939   : > { %v2284_v27 = vpop.xlane.xlu1 %2283  ;;  %3833 = vxpose.xlu0.b32.start.end [1/1] (short) (narrow) %v3832_v34, 8  ;;  %v2334_v36 = vsel %vm2201_vm8, %v2318_v17, %v2333_v1  ;;  %v5331_v1 = vld [vmem:[%s7221_s15 + $0x8] sm:$0xff]  }
 0x93a   : > { %v2322_v18 = vrot.slane %v2284_v27, %v6197_v8  ;;  %v3760_v5 = vpop.xlane.xlu0 %3759  ;;  %v5334_v34 = vld [vmem:[%s7224_s18 + $0x8] sm:$0xff]   ;;  %v5333_v27 = vld [vmem:[%s7288_s20] sm:$0xff]  }
 0x93b   : > { %v3765_v7 = vrot.slane %v3760_v5, %v6197_v8 }
 0x93c   : > { %v2335_v55 = vsel %vm2203_vm9, %v2322_v18, %v2334_v36  ;;  %v5335_v18 = vld [vmem:[%s7288_s20 + $0x8] sm:$0xff]  }
 0x93d   : > { %v2290_v22 = vpop.xlane.xlu1 %2289  ;;  %v2336_v26 = vsel %vm2205_vm10, %v2326_v20, %v2335_v55  ;;  %v5336_v55 = vld [vmem:[%s7289_s5] sm:$0xff]  }
 0x93e   : > { %v2330_v9 = vrot.slane %v2290_v22, %v6197_v8 }
 0x940   : > { %v2337_v50 = vsel %vm2207_vm11, %v2330_v9, %v2336_v26 }
 0x941   : > { %2339 = vst.msk [vmem:[#allocation2] sm:$0xff] %vm2041_vm14, %v2337_v50  ;;  %v3749_v44 = vpop.xlane.xlu1 %3748  ;;  %v5337_v50 = vld [vmem:[%s7289_s5 + $0x8] sm:$0xff]  }
 0x942   : > { %v3773_v19 = vadd.f32 %v3765_v7, %v3749_v44 }
 0x944   : > { %v3827_v3 = vadd.f32 %v7011_v15, %v3773_v19 }
 0x948   : > { %v3830_v43 = vld [vmem:[#allocation2] sm:$0xff] }
 0x949   : > { %v3831_v25 = vadd.f32 %v3830_v43, %v3827_v3 }
 0x9b9   : > { %v3849_v0 = vpop.trf.xlu0 }
 0x9ba   : > { %v3865_v10 = vadd.f32 %v3849_v0, %v3831_v25  ;;  %v4865_v0 = vld [vmem:[%s7290_s22] ss:$0 sm:$0xff] }
 0x9bc   : > { %v3869_v49 = vsel %vm3868_vm2, %v3865_v10, -1e+09 }
 0x9bd   : > { %3881 = vxpose.xlu1.b32.start.end [1/1] (short) (narrow) %v3869_v49, 8  ;;  %v3870_v4 = vsel %vm2041_vm14, %v3869_v49, -inf }
 0x9be   : > { %3871 = vmax.xlane.f32.xlu0 %v3870_v4 }
 0xa3d   : > { %v3897_v8 = vpop.trf.xlu1 }
 0xa3e   : > { %v3913_v62 = vsel %vm2041_vm14, %v3897_v8, -inf }
 0xa3f   : > { %3914 = vmax.xlane.f32.xlu1 %v3913_v62 }
 0xa4b   : > { %v3872_v53 = vpop.xlane.xlu0 %3871 }
 0xa4c   : > { %v3873_v29 = vsub.f32 %v3869_v49, %v3872_v53 }
 0xa4e   : > { %v3874_v21 = vmul.f32 1.442695, %v3873_v29 }
 0xa50   : > { %5466 = vpow2.f32 %v3874_v21 }
 0xa5a   : > { %v5467_v15 = vpop.eup %5466 }
 0xa5b   : > { %v3876_v51 = vsel %vm2041_vm14, %v5467_v15, 0.0 }
 0xa5c   : > { %3877 = vadd.xlane.f32.xlu0 %v3876_v51 }
 0xacc   : > { %v3915_v12 = vpop.xlane.xlu1 %3914 }
 0xacd   : > { %v3916_v30 = vsub.f32 %v3897_v8, %v3915_v12 }
 0xacf   : > { %v3917_v45 = vmul.f32 1.442695, %v3916_v30 }
 0xad1   : > { %5468 = vpow2.f32 %v3917_v45 }
 0xadb   : > { %v5469_v46 = vpop.eup %5468 }
 0xadc   : > { %v3919_v31 = vsel %vm2041_vm14, %v5469_v46, 0.0 }
 0xadd   : > { %3920 = vadd.xlane.f32.xlu1 %v3919_v31 }
 0xae9   : > { %v3878_v57 = vpop.xlane.xlu0 %3877 }
 0xaea   : > { %5470 = vrcp.f32 %v3878_v57 }
 0xaf4   : > { %v5471_v61 = vpop.eup %5470 }
 0xaf5   : > { %v3880_v58 = vmul.f32 %v5471_v61, %v5467_v15 }
 0xaf7   : > { %v3924_v39 = vpack.c.bf16 %v3880_v58, %v3880_v58 }
 0xaf9   : > { %5121 = vmatmul.mubr.msk.bf16.vlgmr.msra.gmra.mrb[44].mxu0 %vm2041_vm14, %v3924_v39 }
 0xafa   : > { %5134 = vmatprep.mubr.msk.bf16.mxu0 %vm5776_vm0, %v5775_v2  ;;  %5131 = vmatpush3.bf16.msra.mxu0 %v5326_v40 }
 0xafb   : > { %5132 = vmatprep.subr.bf16.mxu0 %v5775_v2 }
 0xafe   : > { %5133 = vmatpush3.bf16.msra.mxu0 %v5328_v60 }
 0xaff   : > { %5146 = vmatprep.subr.bf16.mxu0 %v5775_v2 }
 0xb6a   : > { %v3921_v41 = vpop.xlane.xlu1 %3920 }
 0xb6b   : > { %5472 = vrcp.f32 %v3921_v41 }
 0xb75   : > { %v5473_v33 = vpop.eup %5472 }
 0xb76   : > { %v3923_v28 = vmul.f32 %v5473_v33, %v5469_v46 }
 0xb78   : > { %v3971_v24 = vpack.c.bf16 %v3923_v28, %v3923_v28 }
 0xb7a   : > { %5127 = vmatmul.mubr.msk.bf16.vlgmr.msra.gmra.mrb[52].mxu1 %vm2041_vm14, %v3971_v24 }
 0xb7b   : > { %5139 = vmatpush3.bf16.msra.mxu1 %v5327_v6  ;;  %5142 = vmatprep.mubr.msk.bf16.mxu1 %vm5776_vm0, %v5775_v2  ;;  %v4876_v6 = vld [vmem:[%s7291_s24] ss:$0 sm:$0xff] }
 0xb7c   : > { %5140 = vmatprep.subr.bf16.mxu1 %v5775_v2 }
 0xb7f   : > { %5141 = vmatpush3.bf16.msra.mxu1 %v5329_v37 }
 0xb80   : > { %5154 = vmatprep.subr.bf16.mxu1 %v5775_v2 }
 0xb82   : > { %5143 = vmatmul.mubr.msk.bf16.vlgmr.msra.gmra.mrb[56].mxu1 %vm847_vm1, %v6225_v14 }
 0xb83   : > { %5158 = vmatprep.mubr.msk.bf16.mxu1 %vm5776_vm0, %v5775_v2  ;;  %5155 = vmatpush3.bf16.msra.mxu1 %v5332_v32 }
 0xb84   : > { %5156 = vmatprep.subr.bf16.mxu1 %v5775_v2 }
 0xb87   : > { %5157 = vmatpush3.bf16.msra.mxu1 %v5334_v34 }
 0xb88   : > { %5170 = vmatprep.subr.bf16.mxu1 %v5775_v2 }
 0xbcc   : > { %v3965_v56 = vpop.f32.mrb[44].mxu0 }
 0xbcd   : > { %v4032_v13 = vpack.c.bf16 %v3965_v56, %v3965_v56  ;;  %4406 = vrot.lane.b32.xlu1 %v3965_v56, %s5783_s1  ;;  %v5122_v14 = vpop.f32.mrb[45].mxu0  ;;  %v4017_v17 = vmul.f32 %v7006_v63, %v3965_v56 }
 0xbce   : > { %v3968_v38 = vpop.f32.mrb[46].mxu0 }
 0xbcf   : > { %v5123_v47 = vpop.f32.mrb[47].mxu0  ;;  %5135 = vmatmul.mubr.msk.bf16.vlgmr.msra.gmra.mrb[48].mxu0 %vm847_vm1, %v4032_v13  ;;  %v4140_v11 = vpack.c.bf16 %v4017_v17, %v4017_v17 }
 0xbd0   : > { %5147 = vmatpush3.bf16.msra.mxu0 %v5330_v48  ;;  %5150 = vmatprep.mubr.msk.bf16.mxu0 %vm5776_vm0, %v5775_v2 }
 0xbd1   : > { %5148 = vmatprep.subr.bf16.mxu0 %v5775_v2 }
 0xbd4   : > { %5149 = vmatpush3.bf16.msra.mxu0 %v5331_v1 }
 0xbd5   : > { %5162 = vmatprep.subr.bf16.mxu0 %v5775_v2 }
 0xbd7   : > { %5151 = vmatmul.mubr.msk.bf16.vlgmr.msra.gmra.mrb[52].mxu0 %vm847_vm1, %v4140_v11 }
 0xbd8   : > { %5163 = vmatpush3.bf16.msra.mxu0 %v5333_v27  ;;  %5166 = vmatprep.mubr.msk.bf16.mxu0 %vm5776_vm0, %v5775_v2 }
 0xbd9   : > { %5164 = vmatprep.subr.bf16.mxu0 %v5775_v2 }
 0xbdc   : > { %5165 = vmatpush3.bf16.msra.mxu0 %v5335_v18 }
 0xbdd   : > { %5178 = vmatprep.subr.bf16.mxu0 %v5775_v2 }
 0xbdf   : > { %5167 = vmatmul.mubr.msk.bf16.vlgmr.msra.gmra.mrb[56].mxu0 %vm847_vm1, %v6230_v16 }
 0xbe0   : > { %5180 = vmatprep.mubr.msk.bf16.mxu0 %vm5776_vm0, %v5775_v2 }
 0xc3f   : > { %v4407_v31 = vpop.permute.xlu1 %4406 }
 0xc4d   : > { %v4011_v36 = vpop.f32.mrb[52].mxu1 }
 0xc4e   : > { %v4018_v20 = vmul.f32 %v6996_v54, %v4011_v36  ;;  %v4223_v22 = vpack.c.bf16 %v4011_v36, %v4011_v36  ;;  %4411 = vrot.lane.b32.xlu0 %v4011_v36, %s5783_s1  ;;  %v5128_v9 = vpop.f32.mrb[53].mxu1  ;;  %s7292_s1 = sld [smem:[#allocation42_spill]] }
 0xc4f   : > { %v4014_v26 = vpop.f32.mrb[54].mxu1 }
 0xc50   : > { %5159 = vmatmul.mubr.msk.bf16.vlgmr.msra.gmra.mrb[60].mxu1 %vm847_vm1, %v4223_v22  ;;  %4521 = vrot.lane.b32.xlu1 %v4018_v20, %s5784_s16  ;;  %v5129_v16 = vpop.f32.mrb[55].mxu1  ;;  %v4331_v7 = vpack.c.bf16 %v4018_v20, %v4018_v20 }
 0xc51   : > { %5171 = vmatpush3.bf16.msra.mxu1 %v5336_v55  ;;  %5174 = vmatprep.mubr.msk.bf16.mxu1 %vm5776_vm0, %v5775_v2 }
 0xc52   : > { %4516 = vrot.lane.b32.xlu0 %v4017_v17, %s5784_s16  ;;  %5172 = vmatprep.subr.bf16.mxu1 %v5775_v2 }
 0xc54   : > { %s7161_s4 = scalar_lea.hbm %s7292_s1, %s4882_s8 }
 0xc55   : > { %5173 = vmatpush3.bf16.msra.mxu1 %v5337_v50  ;;  %v4134_v5 = vpop.f32.mrb[56].mxu1 }
 0xc56   : > { %v5144_v52 = vpop.f32.mrb[57].mxu1 }
 0xc57   : > { %v4137_v44 = vpop.f32.mrb[58].mxu1 }
 0xc58   : > { %5175 = vmatmul.mubr.msk.bf16.vlgmr.msra.gmra.mrb[64].mxu1 %vm847_vm1, %v4331_v7  ;;  %v5145_v19 = vpop.f32.mrb[59].mxu1 }
 0xca2   : > { %v4082_v42 = vpop.f32.mrb[48].mxu0 }
 0xca3   : > { %v4135_v3 = vadd.f32 %v4134_v5, %v4082_v42  ;;  %v5136_v43 = vpop.f32.mrb[49].mxu0 }
 0xca4   : > { %v4085_v35 = vpop.f32.mrb[50].mxu0 }
 0xca5   : > { %v5137_v25 = vpop.f32.mrb[51].mxu0 }
 0xcaa   : > { %v4190_v10 = vpop.f32.mrb[52].mxu0 }
 0xcab   : > { %v4196_v49 = vadd.f32 %v4190_v10, %v4135_v3  ;;  %v5152_v4 = vpop.f32.mrb[53].mxu0 }
 0xcac   : > { %v4193_v8 = vpop.f32.mrb[54].mxu0 }
 0xcad   : > { %v4203_v62 = vadd.f32 %v4865_v0, %v4196_v49  ;;  %v5153_v53 = vpop.f32.mrb[55].mxu0 }
 0xcaf   : > { %v4866_v29 = vmul.f32 -1.442695, %v4203_v62 }
 0xcb1   : > { %5474 = vpow2.f32 %v4866_v29 }
 0xcb2   : > { %v4325_v21 = vpop.f32.mrb[56].mxu0 }
 0xcb3   : > { %v5168_v15 = vpop.f32.mrb[57].mxu0 }
 0xcb4   : > { %v4328_v51 = vpop.f32.mrb[58].mxu0 }
 0xcb5   : > { %v5169_v23 = vpop.f32.mrb[59].mxu0 }
 0xcbb   : > { %v5475_v12 = vpop.eup %5474 }
 0xcbc   : > { %v4207_v30 = vadd.f32 1.0, %v5475_v12 }
 0xcbe   : > { %5476 = vrcp.f32 %v4207_v30 }
 0xcc0   : > { %v4412_v45 = vpop.permute.xlu0 %4411 }
 0xcc2   : > { %v4522_v17 = vpop.permute.xlu1 %4521 }
 0xcc4   : > { %v4517_v61 = vpop.permute.xlu0 %4516 }
 0xcc8   : > { %v5477_v46 = vpop.eup %5476 }
 0xcc9   : > { %v4409_v57 = vmul.f32 %v5477_v46, %v4407_v31  ;;  %v4519_v58 = vmul.f32 %v5477_v46, %v4517_v61  ;;  %v4401_v16 = vmul.f32 %v7006_v63, %v5477_v46 }
 0xccb   : > { %v4415_v59 = vpack.c.bf16 %v4409_v57, %v4409_v57  ;;  %v4525_v39 = vpack.c.bf16 %v4519_v58, %v4519_v58  ;;  %v4403_v50 = vpack.c.bf16 %v4401_v16, %v4401_v16 }
 0xccd   : > { %4418 = vrot.lane.b32.xlu0 %v4415_v59, %s5785_s23 }
 0xcd1   : > { %4528 = vrot.lane.b32.xlu0 %v4525_v39, %s5784_s16 }
 0xd23   : > { %v4273_v40 = vpop.f32.mrb[60].mxu1 }
 0xd24   : > { %v4326_v60 = vadd.f32 %v4325_v21, %v4273_v40  ;;  %v5160_v41 = vpop.f32.mrb[61].mxu1 }
 0xd25   : > { %v4276_v33 = vpop.f32.mrb[62].mxu1 }
 0xd26   : > { %v5161_v28 = vpop.f32.mrb[63].mxu1 }
 0xd2b   : > { %v4381_v24 = vpop.f32.mrb[64].mxu1 }
 0xd2c   : > { %v4387_v37 = vadd.f32 %v4381_v24, %v4326_v60  ;;  %v5176_v32 = vpop.f32.mrb[65].mxu1 }
 0xd2d   : > { %v4384_v56 = vpop.f32.mrb[66].mxu1 }
 0xd2e   : > { %v4394_v48 = vadd.f32 %v4876_v6, %v4387_v37  ;;  %v5177_v13 = vpop.f32.mrb[67].mxu1 }
 0xd30   : > { %v4877_v14 = vmul.f32 -1.442695, %v4394_v48 }
 0xd32   : > { %5478 = vpow2.f32 %v4877_v14 }
 0xd3c   : > { %v5479_v38 = vpop.eup %5478 }
 0xd3d   : > { %v4398_v47 = vadd.f32 1.0, %v5479_v38 }
 0xd3f   : > { %5480 = vrcp.f32 %v4398_v47  ;;  %v4419_v9 = vpop.permute.xlu0 %4418 }
 0xd43   : > { %v4529_v7 = vpop.permute.xlu0 %4528 }
 0xd49   : > { %v5481_v1 = vpop.eup %5480 }
 0xd4a   : > { %v4414_v34 = vmul.f32 %v5481_v1, %v4412_v45  ;;  %v4524_v11 = vmul.f32 %v5481_v1, %v4522_v17  ;;  %v4402_v20 = vmul.f32 %v6996_v54, %v5481_v1 }
 0xd4c   : > { %v4416_v27 = vpack.c.bf16 %v4414_v34, %v4414_v34  ;;  %v4526_v18 = vpack.c.bf16 %v4524_v11, %v4524_v11  ;;  %v4404_v22 = vpack.c.bf16 %v4402_v20, %v4402_v20 }
 0xd4e   : > { %4421 = vrot.lane.b32.xlu1 %v4416_v27, %s5785_s23  ;;  %v4473_v26 = vsel %vm847_vm1, %v4404_v22, 0  ;;  %s5786_s23 = smov [#allocation17]  }
 0xd4f   : > { %s5688_s12 = sshll.u32 %s5786_s23, 4  ;;  %s5689_s12 = int_to_ptr.vmem [resolvable:$false] %s5688_s12 }
 0xd50   : > { %s5690_s21 = scalar_lea.vmem %s5689_s12, 256 }
 0xd52   : > { %4531 = vrot.lane.b32.xlu1 %v4526_v18, %s5784_s16  ;;  %s4596_s16 = sshll.u32 %s798_s3, 4  ;;  %s7163_s16 = int_to_ptr.vmem [resolvable:$true] %s4596_s16 }
 0xd53   : > { %s5684_s22 = scalar_lea.vmem %s7163_s16, 128  ;;  %p5691_p9 = scmp.lt.s32.totalorder %s7163_s16, %s5689_s12 }
 0xd54   : > { %p5685_p2 = scmp.ne.s32.totalorder %s7163_s16, %s5684_s22  ;;  %p5692_p0 = scmp.lt.s32.totalorder %s5690_s21, %s5684_s22 }
 0xd56   : > { %p5686_p11 = pnand %p5685_p2, %p7293_p6  ;;  %p5693_p7 = por %p5692_p0, %p5691_p9 }
 0xd58   : > { %p5687_p5 = pneg %p5686_p11 }
 0xd5a   : > { %p5694_p12 = pnand %p5693_p7, %p5687_p5 }
 0xdc0   : > { %v4422_v36 = vpop.permute.xlu1 %4421 }
 0xdc1   : > { %v4427_v55 = vsel %vm847_vm1, %v4422_v36, 0 }
 0xdc2   : > { %5179 = vmatpush3.bf16.xpose.msra.mxu0 %v4427_v55 }
 0xdc3   : > { %5184 = vmatprep.subr.bf16.mxu0 %v5775_v2 }
 0xdc4   : > { %v4532_v54 = vpop.permute.xlu1 %4531 }
 0xdc5   : > { %v4537_v5 = vsel %vm847_vm1, %v4532_v54, 0 }
 0xdc9   : > { %5181 = vmatmul.mubr.msk.bf16.vlgmr.msra.gmra.mrb[60].mxu0 %vm847_vm1, %v4419_v9 }
 0xdca   : > { %5185 = vmatpush3.bf16.xpose.msra.mxu0 %v4473_v26  ;;  %5186 = vmatprep.mubr.msk.bf16.mxu0 %vm5776_vm0, %v5775_v2 }
 0xdcb   : > { %5190 = vmatprep.subr.bf16.mxu0 %v5775_v2 }
 0xdd5   : > { %5187 = vmatmul.mubr.msk.bf16.vlgmr.msra.gmra.mrb[60].mxu0 %vm847_vm1, %v4403_v50 }
 0xdd6   : > { %5191 = vmatpush3.bf16.xpose.msra.mxu0 %v4537_v5  ;;  %5192 = vmatprep.mubr.msk.bf16.mxu0 %vm5776_vm0, %v5775_v2 }
 0xde1   : > { %5193 = vmatmul.mubr.msk.bf16.vlgmr.msra.gmra.mrb[60].mxu0 %vm847_vm1, %v4529_v7 }
 0xeb4   : > { %v4573_v63 = vpop.f32.mrb[60].mxu0 }
 0xeb5   : > { %v4580_v52 = vmax.f32 %v4573_v63, 0.0  ;;  %v5194_v44 = vpop.f32.mrb[61].mxu0 }
 0xeb6   : > { %v4576_v2 = vpop.f32.mrb[62].mxu0 }
 0xeb7   : > { %v5195_v19 = vpop.f32.mrb[63].mxu0  ;;  %4581 = vst.msk [vmem:[%s798_s3] sm:$0xff] %vm2041_vm14, %v4580_v52 }
 0xeb8   : > { %5697 = shalt.err (!%p5694_p12)
}
 0xeb9   : > { %s5698_s11 = scalar_lea.hbm %s7161_s4, 128  ;;  %s5702_s8 = scalar_lea.hbm %s7292_s1, 256 }
 0xeba   : > { %p5699_p8 = scmp.ne.s32.totalorder %s7161_s4, %s5698_s11  ;;  %p5703_p13 = scmp.lt.u32.totalorder %s7161_s4, %s7292_s1 }
 0xebb   : > { %p5704_p1 = scmp.lt.u32.totalorder %s5702_s8, %s5698_s11  ;;  %p5706_p2 = scmp.lt.u32.totalorder %s5698_s11, %s7161_s4 }
 0xebc   : > { %p5700_p10 = pnand %p5699_p8, %p7293_p6 }
 0xebd   : > { %p5705_p3 = por %p5704_p1, %p5703_p13 }
 0xebe   : > { %p5701_p4 = pneg %p5700_p10 }
 0xebf   : > { %p5707_p11 = por %p5706_p2, %p5705_p3 }
 0xec1   : > { %p5708_p5 = pnand %p5707_p11, %p5701_p4 }
 0xec3   : > { %5711 = shalt.err (!%p5708_p5)
}
 0xec4   : > { %5228 = dma.vmem_to_hbm [thread:$0]  (%p7293_p6), %s7163_s16, 128, %s7161_s4, %s4583_s0  }
 0xec5 PF: > { %s4608_s30 = sand.u32 1, %s5754_s26   ;;  %p7294_p9 = scmp.ne.s32.totalorder %s7272_s29, 0 }
 0xec6   : > { %p7295_p0 = scmp.ge.s32.totalorder %s5766_s28, 2  ;;  %s4609_s22 = scalar_lea.sflag [#allocation7], %s4608_s30 }
 0xec8   : > { %p5254_p7 = pnand %p7295_p0, %p7294_p9 }
 0xeca   : > { %5749 = dma.done.wait (!%p5254_p7), %s4609_s22, 128  }
 0xecb   : > { %5751 = vsyncadd (!%p5254_p7), %s4609_s22, 4294967168  ;;  %s7296_s28 = sld [smem:[#allocation25_spill]]  ;;  %s7297_s23 = sld [smem:[#allocation24_spill]] }
 0xecc   : > { %s7298_s3 = sld [smem:[#allocation26_spill]]  ;;  %s7299_s26 = smov %s5758_s27 }
 0xed1   : > { %p41_p12 = scmp.ge.s32.totalorder %s7296_s28, 4   ;;  %s7300_s27 = smov %s7297_s23 }
 0xed3   :  { %43 = sbr.rel (!%p41_p12) target bundleno = 26 (0x1a), region = 188 }
 0xeda   :  { %4614 = vsyncpa [#allocation6], 1 }
 0xedb   :  { %4616 = vsyncpa [#allocation6 + $0x1], 1 }
 0xedc   :  { %4617 = vsyncpa [#allocation9], 1 }
 0xedd   :  { %4619 = vsyncpa [#allocation9 + $0x1], 1 }
 0xede   :  { %4620 = vsyncpa [#allocation12], 1 }
 0xedf   :  { %4621 = vsyncpa [#allocation15], 1 }
 0xee0   :  { %4622 = vsyncpa [#allocation7], 1 }
 0xee1   :  { %4624 = vsyncpa [#allocation7 + $0x1], 1 }

</bundles_post_ra>
